<compile_context>
chip_gen: v7x
topology: tpu7x:2x2x1
jax: 0.10.0
libtpu: 0.0.40
codegen_flags: <defaults>
</compile_context>

<pallas_src>
import jax
import jax.numpy as jnp
from jax import lax
from jax.experimental import pallas as pl
from jax.experimental.pallas import tpu as pltpu


def _vmem_limit_bytes():
    """Generation-aware scoped-VMEM budget (v5e/v6e: 128 MiB phys, v7x: 64)."""
    try:
        cap = int(pltpu.get_tpu_info().vmem_capacity_bytes)
        if cap <= 0:
            cap = 64 * 1024 * 1024
    except Exception:
        cap = 64 * 1024 * 1024
    return int(min(cap - cap // 4, 96 * 1024 * 1024))


def conv_block_forward(x_nchw, w1_oihw, w2_oihw, bn1, bn2, eps=1e-5,
                       band_h=None):
    """Inference-mode ConvBlock forward (pool_type='avg', pool_size=(2, 2)).

    bn1/bn2 = (gamma, beta, running_mean, running_var), each shape (Cout,).
    """
    x = jnp.transpose(x_nchw, (0, 2, 3, 1))                   # NCHW -> NHWC
    B, H, W, Cin = x.shape
    assert H % 2 == 0 and W % 2 == 0, "2x2 pooling needs even H and W"
    Cout = w1_oihw.shape[0]
    Cp = ((Cout + 127) // 128) * 128                          # lane-dense out
    Cip = ((Cin + 15) // 16) * 16                             # bf16-tile K pieces
    Wp = W + 2                                                # padded width
    Ho, Wo = H // 2, W // 2

    # ---- band height: even divisor of H, sized so per-band buffers are small
    if band_h is None:
        target = max(2, min(H, 4096 // Wp))
        if target % 2:
            target -= 1
        band_h = 2
        for cand in range(max(target, 2), 1, -2):
            if H % cand == 0:
                band_h = cand
                break
    BH = band_h
    assert BH % 2 == 0 and H % BH == 0, "band_h must be an even divisor of H"
    n_bands = H // BH

    Rb1 = (BH + 2) * Wp            # conv1 rows per band (incl. 1-row halo/side)
    Rb2 = BH * Wp                  # conv2 rows per band
    Rb_in = (BH + 4) * Wp + 2      # input rows per band (+2 slice-overrun rows)
    OFF = 8                        # sublane-aligned interior offset in scratch

    # ---- input: zero-pad (+1 col each side for the conv, +2 rows each side so
    # the first/last band's halo reads valid zeros), pad channels, then gather
    # per-band row windows (only the 4 halo rows per band are duplicated). ----
    x_ext = jnp.pad(x, ((0, 0), (2, 2), (1, 1), (0, Cip - Cin)))
    x_ext = x_ext.astype(jnp.bfloat16)
    row_idx = jnp.arange(n_bands)[:, None] * BH + jnp.arange(BH + 4)[None, :]
    xb = x_ext[:, row_idx]                                    # (B,nb,BH+4,Wp,Cip)
    xb = xb.reshape(B, n_bands, (BH + 4) * Wp, Cip)
    xb = jnp.pad(xb, ((0, 0), (0, 0), (0, 2), (0, 0)))        # (B,nb,Rb_in,Cip)

    # ---- weights: OIHW -> per-row-group (3, 3*Cin, Cout) slabs, padded, bf16 -
    w1 = jnp.transpose(w1_oihw, (2, 3, 1, 0))                 # (3,3,Cin,Cout)
    w1 = jnp.pad(w1, ((0, 0), (0, 0), (0, Cip - Cin), (0, Cp - Cout)))
    w1 = w1.reshape(3, 3 * Cip, Cp).astype(jnp.bfloat16)
    w2 = jnp.transpose(w2_oihw, (2, 3, 1, 0))                 # (3,3,Cout,Cout)
    w2 = jnp.pad(w2, ((0, 0), (0, 0), (0, Cp - Cout), (0, Cp - Cout)))
    w2 = w2.reshape(3, 3 * Cp, Cp).astype(jnp.bfloat16)

    # ---- fold BatchNorm (running stats, bias-free convs) into scale/shift ---
    def fold_bn(bn, post_scale):
        gamma, beta, mean, var = bn
        s = gamma / jnp.sqrt(var + eps)
        scale = (s * post_scale).astype(jnp.float32)
        shift = ((beta - mean * s) * post_scale).astype(jnp.float32)
        return (jnp.pad(scale, (0, Cp - Cout)).reshape(1, Cp),
                jnp.pad(shift, (0, Cp - Cout)).reshape(1, Cp))

    s1, b1 = fold_bn(bn1, 1.0)
    s2, b2 = fold_bn(bn2, 0.25)        # fold the 2x2 avg-pool divisor in

    def kernel(x_ref, w1_ref, s1_ref, b1_ref, w2_ref, s2_ref, b2_ref,
               out_ref, h1p_ref):
        j = pl.program_id(1)           # band index

        # ---- conv1: 3 row-grouped im2col matmuls (K = 3*Cip), f32 acc -------
        acc1 = None
        for dy in range(3):
            base = dy * Wp
            grp = jnp.concatenate(
                [x_ref[base + dx:base + dx + Rb1, :] for dx in range(3)],
                axis=-1)
            d = jnp.dot(grp, w1_ref[dy], preferred_element_type=jnp.float32)
            acc1 = d if acc1 is None else acc1 + d
        h1 = jnp.maximum(acc1 * s1_ref[...] + b1_ref[...], 0.0)  # BN1 + ReLU

        # zero the wrap-around garbage columns and the out-of-image halo rows;
        # they land exactly on the zero padding of conv2's input.
        rows = lax.broadcasted_iota(jnp.int32, (Rb1, 1), 0)
        ok = (rows % Wp) < W
        ok = jnp.logical_and(ok, jnp.logical_or(j > 0, rows >= Wp))
        ok = jnp.logical_and(ok, jnp.logical_or(j < n_bands - 1,
                                                rows < (BH + 1) * Wp))
        h1 = jnp.where(ok, h1, 0.0)

        # ---- bf16 padded intermediate (interior at sublane-aligned OFF) -----
        h1p_ref[0:OFF, :] = jnp.zeros((OFF, Cp), jnp.bfloat16)
        h1p_ref[OFF:OFF + Rb1, :] = h1.astype(jnp.bfloat16)
        h1p_ref[OFF + Rb1:OFF + Rb1 + 1, :] = jnp.zeros((1, Cp), jnp.bfloat16)

        # ---- conv2: 3 row-grouped matmuls (K = 3*Cp), bf16 x bf16 -> f32 ----
        acc2 = None
        for dy in range(3):
            base = OFF - 1 + dy * Wp
            grp = jnp.concatenate(
                [h1p_ref[base + dx:base + dx + Rb2, :] for dx in range(3)],
                axis=-1)
            d = jnp.dot(grp, w2_ref[dy], preferred_element_type=jnp.float32)
            acc2 = d if acc2 is None else acc2 + d
        h2 = jnp.maximum(acc2 * s2_ref[...] + b2_ref[...], 0.0)  # BN2*0.25+ReLU

        # ---- 2x2 avg pool (0.25 already folded): vertical add first on the
        # flat layout, then column drop + horizontal pairing on half the rows -
        v = h2.reshape(BH // 2, 2, Wp, Cp)
        v = v[:, 0, :, :] + v[:, 1, :, :]                      # (BH//2, Wp, Cp)
        v = v[:, :W, :].reshape(BH // 2, Wo, 2, Cp)
        out_ref[...] = (v[:, :, 0, :] + v[:, :, 1, :]).astype(out_ref.dtype)

    out = pl.pallas_call(
        kernel,
        grid=(B, n_bands),
        out_shape=jax.ShapeDtypeStruct((B, Ho, Wo, Cp), jnp.bfloat16),
        in_specs=[
            pl.BlockSpec((None, None, Rb_in, Cip), lambda b, j: (b, j, 0, 0)),
            pl.BlockSpec((3, 3 * Cip, Cp), lambda b, j: (0, 0, 0)),
            pl.BlockSpec((1, Cp), lambda b, j: (0, 0)),
            pl.BlockSpec((1, Cp), lambda b, j: (0, 0)),
            pl.BlockSpec((3, 3 * Cp, Cp), lambda b, j: (0, 0, 0)),
            pl.BlockSpec((1, Cp), lambda b, j: (0, 0)),
            pl.BlockSpec((1, Cp), lambda b, j: (0, 0)),
        ],
        out_specs=pl.BlockSpec((None, BH // 2, Wo, Cp),
                               lambda b, j: (b, j, 0, 0)),
        scratch_shapes=[pltpu.VMEM((OFF + Rb1 + 1, Cp), jnp.bfloat16)],
        compiler_params=pltpu.CompilerParams(
            dimension_semantics=("parallel", "parallel"),
            vmem_limit_bytes=_vmem_limit_bytes()),
    )(xb, w1, s1, b1, w2, s2, b2)

    # TODO(synk): for chained ConvBlocks keep the padded bf16 NHWC layout here
    # instead of slicing / transposing back to f32 NCHW per block.
    out = out[:, :, :, :Cout].astype(jnp.float32)              # drop channel pad
    return jnp.transpose(out, (0, 3, 1, 2))                    # NHWC -> NCHW


# ------------------------- pure-JAX reference --------------------------------
def ref_forward(x, w1, w2, bn1, bn2, eps=1e-5):
    """Reference with bf16-rounded conv operands / f32 accumulation (mirrors
    the kernel's MXU precision); everything else in f32."""
    def bn_apply(y, bn):
        gamma, beta, mean, var = bn
        s = gamma / jnp.sqrt(var + eps)
        return y * s[None, :, None, None] + (beta - mean * s)[None, :, None, None]

    rt = lambda a: a.astype(jnp.bfloat16).astype(jnp.float32)
    dn = ('NCHW', 'OIHW', 'NCHW')
    y = lax.conv_general_dilated(rt(x), rt(w1), (1, 1), 'SAME',
                                 dimension_numbers=dn,
                                 precision=lax.Precision.HIGHEST)
    y = jax.nn.relu(bn_apply(y, bn1))
    y = lax.conv_general_dilated(rt(y), rt(w2), (1, 1), 'SAME',
                                 dimension_numbers=dn,
                                 precision=lax.Precision.HIGHEST)
    y = jax.nn.relu(bn_apply(y, bn2))
    B, C, H, W = y.shape
    return y.reshape(B, C, H // 2, 2, W // 2, 2).mean(axis=(3, 5))


def xavier_uniform(key, out_c, in_c, kh, kw):
    fan_in, fan_out = in_c * kh * kw, out_c * kh * kw
    bound = (6.0 / (fan_in + fan_out)) ** 0.5
    return jax.random.uniform(key, (out_c, in_c, kh, kw), jnp.float32,
                              minval=-bound, maxval=bound)


if __name__ == "__main__":
    B, Cin, Cout, H, W = 2, 4, 8, 16, 16

    key = jax.random.PRNGKey(0)
    kx, k1, k2, kb = jax.random.split(key, 4)

    x = jax.random.normal(kx, (B, Cin, H, W), jnp.float32)     # NCHW input
    w1 = xavier_uniform(k1, Cout, Cin, 3, 3)
    w2 = xavier_uniform(k2, Cout, Cout, 3, 3)

    # non-trivial (but deterministic) BN running stats to exercise the fold
    kg1, kb1, km1, kv1, kg2, kb2, km2, kv2 = jax.random.split(kb, 8)

    def rand_bn(kg, kbt, km, kv):
        return (1.0 + 0.2 * jax.random.normal(kg, (Cout,), jnp.float32),
                0.1 * jax.random.normal(kbt, (Cout,), jnp.float32),
                0.1 * jax.random.normal(km, (Cout,), jnp.float32),
                1.0 + 0.2 * jax.random.uniform(kv, (Cout,), jnp.float32))

    bn1 = rand_bn(kg1, kb1, km1, kv1)
    bn2 = rand_bn(kg2, kb2, km2, kv2)

    # band_h=8 -> 2 row-bands per image, exercising the banded/halo path
    out = jax.block_until_ready(
        conv_block_forward(x, w1, w2, bn1, bn2, band_h=8))
    ref = ref_forward(x, w1, w2, bn1, bn2)

    assert out.shape == (B, Cout, H // 2, W // 2), out.shape
    # bf16 matmul operands + bf16 output -> bf16-appropriate tolerance
    err = float(jnp.max(jnp.abs(out - ref)))
    assert jnp.allclose(out, ref, atol=2e-2, rtol=2e-2), err
    print("KERNEL_OK")
</pallas_src>

<mosaic_0001>
module attributes {stable_mosaic.version = 11 : i64} {
  func.func @kernel(%arg0: i32, %arg1: i32, %arg2: memref<1x1x218x16xbf16, #tpu.memory_space<vmem>>, %arg3: memref<3x48x128xbf16, #tpu.memory_space<vmem>>, %arg4: memref<1x128xf32, #tpu.memory_space<vmem>>, %arg5: memref<1x128xf32, #tpu.memory_space<vmem>>, %arg6: memref<3x384x128xbf16, #tpu.memory_space<vmem>>, %arg7: memref<1x128xf32, #tpu.memory_space<vmem>>, %arg8: memref<1x128xf32, #tpu.memory_space<vmem>>, %arg9: memref<1x4x8x128xbf16, #tpu.memory_space<vmem>>, %arg10: memref<189x128xbf16, #tpu.memory_space<vmem>>) attributes {dimension_semantics = [#tpu.dimension_semantics<parallel>, #tpu.dimension_semantics<parallel>], iteration_bounds = array<i64: 2, 2>, scalar_prefetch = 0 : i64, scratch_operands = 1 : i64, tpu.core_type = #tpu.core_type<tc>, window_params = [{transform_indices = @transform_0, window_bounds = array<i64: 1, 1, 218, 16>}, {pipeline_mode = #tpu.pipeline_mode<synchronous>, transform_indices = @transform_1, window_bounds = array<i64: 3, 48, 128>}, {pipeline_mode = #tpu.pipeline_mode<synchronous>, transform_indices = @transform_2, window_bounds = array<i64: 1, 128>}, {pipeline_mode = #tpu.pipeline_mode<synchronous>, transform_indices = @transform_3, window_bounds = array<i64: 1, 128>}, {pipeline_mode = #tpu.pipeline_mode<synchronous>, transform_indices = @transform_4, window_bounds = array<i64: 3, 384, 128>}, {pipeline_mode = #tpu.pipeline_mode<synchronous>, transform_indices = @transform_5, window_bounds = array<i64: 1, 128>}, {pipeline_mode = #tpu.pipeline_mode<synchronous>, transform_indices = @transform_6, window_bounds = array<i64: 1, 128>}, {transform_indices = @transform_7, window_bounds = array<i64: 1, 4, 8, 128>}]} {
    %c0 = arith.constant 0 : index
    %c0_0 = arith.constant 0 : index
    %c0_1 = arith.constant 0 : index
    %c0_2 = arith.constant 0 : index
    %0 = vector.load %arg2[%c0, %c0_0, %c0_1, %c0_2] : memref<1x1x218x16xbf16, #tpu.memory_space<vmem>>, vector<1x1x180x16xbf16>
    %1 = vector.shape_cast %0 : vector<1x1x180x16xbf16> to vector<180x16xbf16>
    %c0_3 = arith.constant 0 : index
    %c0_4 = arith.constant 0 : index
    %c1 = arith.constant 1 : index
    %c0_5 = arith.constant 0 : index
    %2 = vector.load %arg2[%c0_3, %c0_4, %c1, %c0_5] : memref<1x1x218x16xbf16, #tpu.memory_space<vmem>>, vector<1x1x180x16xbf16>
    %3 = vector.shape_cast %2 : vector<1x1x180x16xbf16> to vector<180x16xbf16>
    %c0_6 = arith.constant 0 : index
    %c0_7 = arith.constant 0 : index
    %c2 = arith.constant 2 : index
    %c0_8 = arith.constant 0 : index
    %4 = vector.load %arg2[%c0_6, %c0_7, %c2, %c0_8] : memref<1x1x218x16xbf16, #tpu.memory_space<vmem>>, vector<1x1x180x16xbf16>
    %5 = vector.shape_cast %4 : vector<1x1x180x16xbf16> to vector<180x16xbf16>
    %6 = tpu.concatenate %1, %3, %5 in 1 : vector<180x16xbf16>, vector<180x16xbf16>, vector<180x16xbf16> -> vector<180x48xbf16>
    %c0_9 = arith.constant 0 : index
    %c0_10 = arith.constant 0 : index
    %c0_11 = arith.constant 0 : index
    %7 = vector.load %arg3[%c0_9, %c0_10, %c0_11] : memref<3x48x128xbf16, #tpu.memory_space<vmem>>, vector<1x48x128xbf16>
    %8 = vector.shape_cast %7 : vector<1x48x128xbf16> to vector<48x128xbf16>
    %cst = arith.constant dense<0.000000e+00> : vector<180x128xf32>
    %9 = tpu.matmul %6, %8, %cst {dimension_numbers = #tpu.dot_dimension_numbers<[1], [0], [0], [1], [0, 0, 1, 1], [], []>} : vector<180x48xbf16>, vector<48x128xbf16>, vector<180x128xf32> -> vector<180x128xf32>
    %c0_12 = arith.constant 0 : index
    %c0_13 = arith.constant 0 : index
    %c18 = arith.constant 18 : index
    %c0_14 = arith.constant 0 : index
    %10 = vector.load %arg2[%c0_12, %c0_13, %c18, %c0_14] : memref<1x1x218x16xbf16, #tpu.memory_space<vmem>>, vector<1x1x180x16xbf16>
    %11 = vector.shape_cast %10 : vector<1x1x180x16xbf16> to vector<180x16xbf16>
    %c0_15 = arith.constant 0 : index
    %c0_16 = arith.constant 0 : index
    %c19 = arith.constant 19 : index
    %c0_17 = arith.constant 0 : index
    %12 = vector.load %arg2[%c0_15, %c0_16, %c19, %c0_17] : memref<1x1x218x16xbf16, #tpu.memory_space<vmem>>, vector<1x1x180x16xbf16>
    %13 = vector.shape_cast %12 : vector<1x1x180x16xbf16> to vector<180x16xbf16>
    %c0_18 = arith.constant 0 : index
    %c0_19 = arith.constant 0 : index
    %c20 = arith.constant 20 : index
    %c0_20 = arith.constant 0 : index
    %14 = vector.load %arg2[%c0_18, %c0_19, %c20, %c0_20] : memref<1x1x218x16xbf16, #tpu.memory_space<vmem>>, vector<1x1x180x16xbf16>
    %15 = vector.shape_cast %14 : vector<1x1x180x16xbf16> to vector<180x16xbf16>
    %16 = tpu.concatenate %11, %13, %15 in 1 : vector<180x16xbf16>, vector<180x16xbf16>, vector<180x16xbf16> -> vector<180x48xbf16>
    %c1_21 = arith.constant 1 : index
    %c0_22 = arith.constant 0 : index
    %c0_23 = arith.constant 0 : index
    %17 = vector.load %arg3[%c1_21, %c0_22, %c0_23] : memref<3x48x128xbf16, #tpu.memory_space<vmem>>, vector<1x48x128xbf16>
    %18 = vector.shape_cast %17 : vector<1x48x128xbf16> to vector<48x128xbf16>
    %cst_24 = arith.constant dense<0.000000e+00> : vector<180x128xf32>
    %19 = tpu.matmul %16, %18, %cst_24 {dimension_numbers = #tpu.dot_dimension_numbers<[1], [0], [0], [1], [0, 0, 1, 1], [], []>} : vector<180x48xbf16>, vector<48x128xbf16>, vector<180x128xf32> -> vector<180x128xf32>
    %20 = arith.addf %9, %19 : vector<180x128xf32>
    %c0_25 = arith.constant 0 : index
    %c0_26 = arith.constant 0 : index
    %c36 = arith.constant 36 : index
    %c0_27 = arith.constant 0 : index
    %21 = vector.load %arg2[%c0_25, %c0_26, %c36, %c0_27] : memref<1x1x218x16xbf16, #tpu.memory_space<vmem>>, vector<1x1x180x16xbf16>
    %22 = vector.shape_cast %21 : vector<1x1x180x16xbf16> to vector<180x16xbf16>
    %c0_28 = arith.constant 0 : index
    %c0_29 = arith.constant 0 : index
    %c37 = arith.constant 37 : index
    %c0_30 = arith.constant 0 : index
    %23 = vector.load %arg2[%c0_28, %c0_29, %c37, %c0_30] : memref<1x1x218x16xbf16, #tpu.memory_space<vmem>>, vector<1x1x180x16xbf16>
    %24 = vector.shape_cast %23 : vector<1x1x180x16xbf16> to vector<180x16xbf16>
    %c0_31 = arith.constant 0 : index
    %c0_32 = arith.constant 0 : index
    %c38 = arith.constant 38 : index
    %c0_33 = arith.constant 0 : index
    %25 = vector.load %arg2[%c0_31, %c0_32, %c38, %c0_33] : memref<1x1x218x16xbf16, #tpu.memory_space<vmem>>, vector<1x1x180x16xbf16>
    %26 = vector.shape_cast %25 : vector<1x1x180x16xbf16> to vector<180x16xbf16>
    %27 = tpu.concatenate %22, %24, %26 in 1 : vector<180x16xbf16>, vector<180x16xbf16>, vector<180x16xbf16> -> vector<180x48xbf16>
    %c2_34 = arith.constant 2 : index
    %c0_35 = arith.constant 0 : index
    %c0_36 = arith.constant 0 : index
    %28 = vector.load %arg3[%c2_34, %c0_35, %c0_36] : memref<3x48x128xbf16, #tpu.memory_space<vmem>>, vector<1x48x128xbf16>
    %29 = vector.shape_cast %28 : vector<1x48x128xbf16> to vector<48x128xbf16>
    %cst_37 = arith.constant dense<0.000000e+00> : vector<180x128xf32>
    %30 = tpu.matmul %27, %29, %cst_37 {dimension_numbers = #tpu.dot_dimension_numbers<[1], [0], [0], [1], [0, 0, 1, 1], [], []>} : vector<180x48xbf16>, vector<48x128xbf16>, vector<180x128xf32> -> vector<180x128xf32>
    %31 = arith.addf %20, %30 : vector<180x128xf32>
    %c0_38 = arith.constant 0 : index
    %c0_39 = arith.constant 0 : index
    %32 = vector.load %arg4[%c0_38, %c0_39] : memref<1x128xf32, #tpu.memory_space<vmem>>, vector<1x128xf32>
    %33 = vector.broadcast %32 : vector<1x128xf32> to vector<180x128xf32>
    %34 = arith.mulf %31, %33 : vector<180x128xf32>
    %c0_40 = arith.constant 0 : index
    %c0_41 = arith.constant 0 : index
    %35 = vector.load %arg5[%c0_40, %c0_41] : memref<1x128xf32, #tpu.memory_space<vmem>>, vector<1x128xf32>
    %36 = vector.broadcast %35 : vector<1x128xf32> to vector<180x128xf32>
    %37 = arith.addf %34, %36 : vector<180x128xf32>
    %cst_42 = arith.constant 0.000000e+00 : f32
    %38 = vector.broadcast %cst_42 : f32 to vector<180x128xf32>
    %39 = arith.maximumf %37, %38 : vector<180x128xf32>
    %40 = tpu.iota {dimensions = array<i32: 0>} : vector<180x1xi32>
    %c18_i32 = arith.constant 18 : i32
    %c0_i32 = arith.constant 0 : i32
    %41 = arith.cmpi eq, %c18_i32, %c0_i32 : i32
    %c1_i32 = arith.constant 1 : i32
    %42 = arith.select %41, %c1_i32, %c18_i32 : i32
    %43 = vector.broadcast %42 : i32 to vector<180x1xi32>
    %44 = arith.remsi %40, %43 : vector<180x1xi32>
    %c0_i32_43 = arith.constant 0 : i32
    %45 = vector.broadcast %c0_i32_43 : i32 to vector<180x1xi32>
    %46 = arith.cmpi ne, %44, %45 : vector<180x1xi32>
    %c0_i32_44 = arith.constant 0 : i32
    %47 = vector.broadcast %c0_i32_44 : i32 to vector<180x1xi32>
    %48 = arith.cmpi slt, %44, %47 : vector<180x1xi32>
    %c0_i32_45 = arith.constant 0 : i32
    %49 = arith.cmpi slt, %42, %c0_i32_45 : i32
    %50 = vector.broadcast %49 : i1 to vector<180x1xi1>
    %51 = vector.broadcast %50 : vector<180x1xi1> to vector<180x1xi1>
    %52 = arith.xori %48, %51 : vector<180x1xi1>
    %53 = arith.andi %52, %46 : vector<180x1xi1>
    %54 = vector.broadcast %42 : i32 to vector<180x1xi32>
    %55 = arith.addi %44, %54 : vector<180x1xi32>
    %56 = arith.select %53, %55, %44 : vector<180x1xi1>, vector<180x1xi32>
    %c16_i32 = arith.constant 16 : i32
    %57 = vector.broadcast %c16_i32 : i32 to vector<180x1xi32>
    %58 = arith.cmpi slt, %56, %57 : vector<180x1xi32>
    %c0_i32_46 = arith.constant 0 : i32
    %59 = arith.cmpi sgt, %arg1, %c0_i32_46 : i32
    %c18_i32_47 = arith.constant 18 : i32
    %60 = vector.broadcast %c18_i32_47 : i32 to vector<180x1xi32>
    %61 = arith.cmpi sge, %40, %60 : vector<180x1xi32>
    %62 = vector.broadcast %59 : i1 to vector<180x1xi1>
    %63 = arith.ori %62, %61 : vector<180x1xi1>
    %64 = arith.andi %58, %63 : vector<180x1xi1>
    %c1_i32_48 = arith.constant 1 : i32
    %65 = arith.cmpi slt, %arg1, %c1_i32_48 : i32
    %c162_i32 = arith.constant 162 : i32
    %66 = vector.broadcast %c162_i32 : i32 to vector<180x1xi32>
    %67 = arith.cmpi slt, %40, %66 : vector<180x1xi32>
    %68 = vector.broadcast %65 : i1 to vector<180x1xi1>
    %69 = arith.ori %68, %67 : vector<180x1xi1>
    %70 = arith.andi %64, %69 : vector<180x1xi1>
    %cst_49 = arith.constant 0.000000e+00 : f32
    %71 = vector.shape_cast %70 : vector<180x1xi1> to vector<180x1xi1>
    %72 = vector.broadcast %71 : vector<180x1xi1> to vector<180x128xi1>
    %73 = vector.broadcast %cst_49 : f32 to vector<180x128xf32>
    %74 = arith.select %72, %39, %73 : vector<180x128xi1>, vector<180x128xf32>
    %cst_50 = arith.constant 0.000000e+00 : bf16
    %75 = vector.broadcast %cst_50 : bf16 to vector<8x128xbf16>
    %c0_51 = arith.constant 0 : index
    %c0_52 = arith.constant 0 : index
    %76 = vector.load %arg10[%c0_51, %c0_52] : memref<189x128xbf16, #tpu.memory_space<vmem>>, vector<8x128xbf16>
    tpu.vector_store %arg10[%c0_51, %c0_52], %75 {strides = array<i32>} : memref<189x128xbf16, #tpu.memory_space<vmem>>, vector<8x128xbf16>,
    %77 = arith.truncf %74 : vector<180x128xf32> to vector<180x128xbf16>
    %c8 = arith.constant 8 : index
    %c0_53 = arith.constant 0 : index
    %78 = vector.load %arg10[%c8, %c0_53] : memref<189x128xbf16, #tpu.memory_space<vmem>>, vector<180x128xbf16>
    tpu.vector_store %arg10[%c8, %c0_53], %77 {strides = array<i32>} : memref<189x128xbf16, #tpu.memory_space<vmem>>, vector<180x128xbf16>,
    %cst_54 = arith.constant 0.000000e+00 : bf16
    %79 = vector.broadcast %cst_54 : bf16 to vector<1x128xbf16>
    %c188 = arith.constant 188 : index
    %c0_55 = arith.constant 0 : index
    %80 = vector.load %arg10[%c188, %c0_55] : memref<189x128xbf16, #tpu.memory_space<vmem>>, vector<1x128xbf16>
    tpu.vector_store %arg10[%c188, %c0_55], %79 {strides = array<i32>} : memref<189x128xbf16, #tpu.memory_space<vmem>>, vector<1x128xbf16>,
    %c7 = arith.constant 7 : index
    %c0_56 = arith.constant 0 : index
    %81 = vector.load %arg10[%c7, %c0_56] : memref<189x128xbf16, #tpu.memory_space<vmem>>, vector<144x128xbf16>
    %c8_57 = arith.constant 8 : index
    %c0_58 = arith.constant 0 : index
    %82 = vector.load %arg10[%c8_57, %c0_58] : memref<189x128xbf16, #tpu.memory_space<vmem>>, vector<144x128xbf16>
    %c9 = arith.constant 9 : index
    %c0_59 = arith.constant 0 : index
    %83 = vector.load %arg10[%c9, %c0_59] : memref<189x128xbf16, #tpu.memory_space<vmem>>, vector<144x128xbf16>
    %84 = tpu.concatenate %81, %82, %83 in 1 : vector<144x128xbf16>, vector<144x128xbf16>, vector<144x128xbf16> -> vector<144x384xbf16>
    %c0_60 = arith.constant 0 : index
    %c0_61 = arith.constant 0 : index
    %c0_62 = arith.constant 0 : index
    %85 = vector.load %arg6[%c0_60, %c0_61, %c0_62] : memref<3x384x128xbf16, #tpu.memory_space<vmem>>, vector<1x384x128xbf16>
    %86 = vector.shape_cast %85 : vector<1x384x128xbf16> to vector<384x128xbf16>
    %cst_63 = arith.constant dense<0.000000e+00> : vector<144x128xf32>
    %87 = tpu.matmul %84, %86, %cst_63 {dimension_numbers = #tpu.dot_dimension_numbers<[1], [0], [0], [1], [0, 0, 1, 1], [], []>} : vector<144x384xbf16>, vector<384x128xbf16>, vector<144x128xf32> -> vector<144x128xf32>
    %c25 = arith.constant 25 : index
    %c0_64 = arith.constant 0 : index
    %88 = vector.load %arg10[%c25, %c0_64] : memref<189x128xbf16, #tpu.memory_space<vmem>>, vector<144x128xbf16>
    %c26 = arith.constant 26 : index
    %c0_65 = arith.constant 0 : index
    %89 = vector.load %arg10[%c26, %c0_65] : memref<189x128xbf16, #tpu.memory_space<vmem>>, vector<144x128xbf16>
    %c27 = arith.constant 27 : index
    %c0_66 = arith.constant 0 : index
    %90 = vector.load %arg10[%c27, %c0_66] : memref<189x128xbf16, #tpu.memory_space<vmem>>, vector<144x128xbf16>
    %91 = tpu.concatenate %88, %89, %90 in 1 : vector<144x128xbf16>, vector<144x128xbf16>, vector<144x128xbf16> -> vector<144x384xbf16>
    %c1_67 = arith.constant 1 : index
    %c0_68 = arith.constant 0 : index
    %c0_69 = arith.constant 0 : index
    %92 = vector.load %arg6[%c1_67, %c0_68, %c0_69] : memref<3x384x128xbf16, #tpu.memory_space<vmem>>, vector<1x384x128xbf16>
    %93 = vector.shape_cast %92 : vector<1x384x128xbf16> to vector<384x128xbf16>
    %cst_70 = arith.constant dense<0.000000e+00> : vector<144x128xf32>
    %94 = tpu.matmul %91, %93, %cst_70 {dimension_numbers = #tpu.dot_dimension_numbers<[1], [0], [0], [1], [0, 0, 1, 1], [], []>} : vector<144x384xbf16>, vector<384x128xbf16>, vector<144x128xf32> -> vector<144x128xf32>
    %95 = arith.addf %87, %94 : vector<144x128xf32>
    %c43 = arith.constant 43 : index
    %c0_71 = arith.constant 0 : index
    %96 = vector.load %arg10[%c43, %c0_71] : memref<189x128xbf16, #tpu.memory_space<vmem>>, vector<144x128xbf16>
    %c44 = arith.constant 44 : index
    %c0_72 = arith.constant 0 : index
    %97 = vector.load %arg10[%c44, %c0_72] : memref<189x128xbf16, #tpu.memory_space<vmem>>, vector<144x128xbf16>
    %c45 = arith.constant 45 : index
    %c0_73 = arith.constant 0 : index
    %98 = vector.load %arg10[%c45, %c0_73] : memref<189x128xbf16, #tpu.memory_space<vmem>>, vector<144x128xbf16>
    %99 = tpu.concatenate %96, %97, %98 in 1 : vector<144x128xbf16>, vector<144x128xbf16>, vector<144x128xbf16> -> vector<144x384xbf16>
    %c2_74 = arith.constant 2 : index
    %c0_75 = arith.constant 0 : index
    %c0_76 = arith.constant 0 : index
    %100 = vector.load %arg6[%c2_74, %c0_75, %c0_76] : memref<3x384x128xbf16, #tpu.memory_space<vmem>>, vector<1x384x128xbf16>
    %101 = vector.shape_cast %100 : vector<1x384x128xbf16> to vector<384x128xbf16>
    %cst_77 = arith.constant dense<0.000000e+00> : vector<144x128xf32>
    %102 = tpu.matmul %99, %101, %cst_77 {dimension_numbers = #tpu.dot_dimension_numbers<[1], [0], [0], [1], [0, 0, 1, 1], [], []>} : vector<144x384xbf16>, vector<384x128xbf16>, vector<144x128xf32> -> vector<144x128xf32>
    %103 = arith.addf %95, %102 : vector<144x128xf32>
    %c0_78 = arith.constant 0 : index
    %c0_79 = arith.constant 0 : index
    %104 = vector.load %arg7[%c0_78, %c0_79] : memref<1x128xf32, #tpu.memory_space<vmem>>, vector<1x128xf32>
    %105 = vector.broadcast %104 : vector<1x128xf32> to vector<144x128xf32>
    %106 = arith.mulf %103, %105 : vector<144x128xf32>
    %c0_80 = arith.constant 0 : index
    %c0_81 = arith.constant 0 : index
    %107 = vector.load %arg8[%c0_80, %c0_81] : memref<1x128xf32, #tpu.memory_space<vmem>>, vector<1x128xf32>
    %108 = vector.broadcast %107 : vector<1x128xf32> to vector<144x128xf32>
    %109 = arith.addf %106, %108 : vector<144x128xf32>
    %cst_82 = arith.constant 0.000000e+00 : f32
    %110 = vector.broadcast %cst_82 : f32 to vector<144x128xf32>
    %111 = arith.maximumf %109, %110 : vector<144x128xf32>
    %112 = vector.shape_cast %111 : vector<144x128xf32> to vector<4x2x18x128xf32>
    %113 = vector.extract_strided_slice %112 {offsets = [0, 0, 0, 0], sizes = [4, 1, 18, 128], strides = [1, 1, 1, 1]} : vector<4x2x18x128xf32> to vector<4x1x18x128xf32>
    %114 = vector.shape_cast %113 : vector<4x1x18x128xf32> to vector<4x18x128xf32>
    %115 = vector.extract_strided_slice %112 {offsets = [0, 1, 0, 0], sizes = [4, 1, 18, 128], strides = [1, 1, 1, 1]} : vector<4x2x18x128xf32> to vector<4x1x18x128xf32>
    %116 = vector.shape_cast %115 : vector<4x1x18x128xf32> to vector<4x18x128xf32>
    %117 = arith.addf %114, %116 : vector<4x18x128xf32>
    %118 = vector.extract_strided_slice %117 {offsets = [0, 0, 0], sizes = [4, 16, 128], strides = [1, 1, 1]} : vector<4x18x128xf32> to vector<4x16x128xf32>
    %119 = vector.shape_cast %118 : vector<4x16x128xf32> to vector<4x8x2x128xf32>
    %120 = vector.extract_strided_slice %119 {offsets = [0, 0, 0, 0], sizes = [4, 8, 1, 128], strides = [1, 1, 1, 1]} : vector<4x8x2x128xf32> to vector<4x8x1x128xf32>
    %121 = vector.shape_cast %120 : vector<4x8x1x128xf32> to vector<4x8x128xf32>
    %122 = vector.extract_strided_slice %119 {offsets = [0, 0, 1, 0], sizes = [4, 8, 1, 128], strides = [1, 1, 1, 1]} : vector<4x8x2x128xf32> to vector<4x8x1x128xf32>
    %123 = vector.shape_cast %122 : vector<4x8x1x128xf32> to vector<4x8x128xf32>
    %124 = arith.addf %121, %123 : vector<4x8x128xf32>
    %125 = arith.truncf %124 : vector<4x8x128xf32> to vector<4x8x128xbf16>
    %c0_83 = arith.constant 0 : index
    %c0_84 = arith.constant 0 : index
    %c0_85 = arith.constant 0 : index
    %c0_86 = arith.constant 0 : index
    %126 = vector.load %arg9[%c0_83, %c0_84, %c0_85, %c0_86] : memref<1x4x8x128xbf16, #tpu.memory_space<vmem>>, vector<1x4x8x128xbf16>
    %127 = vector.shape_cast %126 : vector<1x4x8x128xbf16> to vector<4x8x128xbf16>
    %128 = vector.shape_cast %125 : vector<4x8x128xbf16> to vector<1x4x8x128xbf16>
    tpu.vector_store %arg9[%c0_83, %c0_84, %c0_85, %c0_86], %128 {strides = array<i32>} : memref<1x4x8x128xbf16, #tpu.memory_space<vmem>>, vector<1x4x8x128xbf16>,
    return
  }
  func.func @transform_0(%arg0: i32, %arg1: i32) -> (i32, i32, i32, i32) {
    %c0_i32 = arith.constant 0 : i32
    %c0_i32_0 = arith.constant 0 : i32
    %c0_i32_1 = arith.constant 0 : i32
    return %arg0, %arg1, %c0_i32, %c0_i32_0 : i32, i32, i32, i32
  }
  func.func @transform_1(%arg0: i32, %arg1: i32) -> (i32, i32, i32) {
    %c0_i32 = arith.constant 0 : i32
    %c0_i32_0 = arith.constant 0 : i32
    %c0_i32_1 = arith.constant 0 : i32
    %c0_i32_2 = arith.constant 0 : i32
    return %c0_i32, %c0_i32_0, %c0_i32_1 : i32, i32, i32
  }
  func.func @transform_2(%arg0: i32, %arg1: i32) -> (i32, i32) {
    %c0_i32 = arith.constant 0 : i32
    %c0_i32_0 = arith.constant 0 : i32
    %c0_i32_1 = arith.constant 0 : i32
    return %c0_i32, %c0_i32_0 : i32, i32
  }
  func.func @transform_3(%arg0: i32, %arg1: i32) -> (i32, i32) {
    %c0_i32 = arith.constant 0 : i32
    %c0_i32_0 = arith.constant 0 : i32
    %c0_i32_1 = arith.constant 0 : i32
    return %c0_i32, %c0_i32_0 : i32, i32
  }
  func.func @transform_4(%arg0: i32, %arg1: i32) -> (i32, i32, i32) {
    %c0_i32 = arith.constant 0 : i32
    %c0_i32_0 = arith.constant 0 : i32
    %c0_i32_1 = arith.constant 0 : i32
    %c0_i32_2 = arith.constant 0 : i32
    return %c0_i32, %c0_i32_0, %c0_i32_1 : i32, i32, i32
  }
  func.func @transform_5(%arg0: i32, %arg1: i32) -> (i32, i32) {
    %c0_i32 = arith.constant 0 : i32
    %c0_i32_0 = arith.constant 0 : i32
    %c0_i32_1 = arith.constant 0 : i32
    return %c0_i32, %c0_i32_0 : i32, i32
  }
  func.func @transform_6(%arg0: i32, %arg1: i32) -> (i32, i32) {
    %c0_i32 = arith.constant 0 : i32
    %c0_i32_0 = arith.constant 0 : i32
    %c0_i32_1 = arith.constant 0 : i32
    return %c0_i32, %c0_i32_0 : i32, i32
  }
  func.func @transform_7(%arg0: i32, %arg1: i32) -> (i32, i32, i32, i32) {
    %c0_i32 = arith.constant 0 : i32
    %c0_i32_0 = arith.constant 0 : i32
    %c0_i32_1 = arith.constant 0 : i32
    return %arg0, %arg1, %c0_i32, %c0_i32_0 : i32, i32, i32, i32
  }
}

</mosaic_0001>

<bundles_post_ra>
// kernel: tpu_custom_call.1
= control target key start
LH: loop header
LB: loop body
LE: loop exit
PB: predicated region body
PF: predicated region fallthrough
CT: control target
= control target key end

     0   :  { %12 = vsyncpa [#allocation4], 0  ;;  %s10274_s0 = inlined_call_operand.vmem [shape: bf16[2,2,218,16], index: 0, kind: input, shape index: {}]   ;;  %s10275_s1 = inlined_call_operand.vmem [shape: bf16[3,48,128], index: 1, kind: input, shape index: {}]   ;;  %s10276_s2 = inlined_call_operand.vmem [shape: f32[1,128], index: 2, kind: input, shape index: {}]   ;;  %s10277_s3 = inlined_call_operand.vmem [shape: f32[1,128], index: 3, kind: input, shape index: {}]   ;;  %s10278_s4 = inlined_call_operand.hbm [shape: bf16[3,384,128], index: 4, kind: input, shape index: {}]   ;;  %s10279_s5 = inlined_call_operand.vmem [shape: f32[1,128], index: 5, kind: input, shape index: {}]   ;;  %s10280_s6 = inlined_call_operand.vmem [shape: f32[1,128], index: 6, kind: input, shape index: {}]   ;;  %s10281_s7 = inlined_call_operand.hbm [shape: bf16[2,8,8,128], index: 7, kind: output, shape index: {}]  }
   0x1   :  { %13 = vsyncpa [#allocation5], 0 }
   0x2   :  { %15 = vsyncpa [#allocation5 + $0x1], 0  ;;  %s7515_s24 = smov 0   ;;  %s7517_s25 = smov 0  }
   0x3   :  { %s7519_s26 = smov 0   ;;  %s7521_s27 = smov 0  }
   0x4   :  { %s7523_s28 = smov 0   ;;  %s7525_s29 = smov 0  }
   0x5   :  { %s7527_s30 = smov 0   ;;  %s7529_s8 = smov 0  }
   0x6 LB: > { %s5885_s9 = sadd.s32 4294967295, %s7461_s8   ;;  %s5886_s10 = sadd.s32 4294967294, %s7461_s8   ;;  %s7461_s8 = sphi %s7529_s8, %s21_s8   ;;  %s7457_s30 = sphi %s7527_s30, %s10538_s30   ;;  %s7453_s29 = sphi %s7525_s29, %s10537_s29   ;;  %s7449_s28 = sphi %s7523_s28, %s10536_s28   ;;  %s7445_s27 = sphi %s7521_s27, %s10535_s27   ;;  %s7441_s26 = sphi %s7519_s26, %s10534_s26   ;;  %s7437_s25 = sphi %s7517_s25, %s10533_s25   ;;  %s7433_s24 = sphi %s7515_s24, %s10532_s24  }
   0x7   : > { %s30_s11 = sadd.s32 1, %s7453_s29  ;;  %s33_s12 = sadd.s32 1, %s7457_s30 }
   0x8   : > { %p31_p0 = scmp.ge.s32.totalorder %s30_s11, 2  ;;  %s196_s13 = sadd.s32 1, %s7441_s26 }
   0x9   : > { %p206_p1 = scmp.ne.s32.totalorder %s7441_s26, %s7437_s25  ;;  %p207_p2 = scmp.eq.s32.totalorder %s5885_s9, 3 }
   0xa   : > { %s10540_s11 = smov (%p31_p0, %s30_s11), 0  ;;  %s10542_s12 = smov (!%p31_p0, %s33_s12), %s7457_s30 }
   0xb   : > { %10303 = sst [smem:[#allocation9_spill]] %s10540_s11  ;;  %s192_s14 = ssub.s32 %s7453_s29, %s10540_s11 }
   0xc   : > { %p7567_p3 = por %p207_p2, %p206_p1  ;;  %p35_p4 = scmp.ge.s32.totalorder %s10542_s12, 2 }
   0xd   : > { %p212_p5 = scmp.ne.s32.totalorder %s7437_s25, %s7433_s24  ;;  %p213_p6 = scmp.eq.s32.totalorder %s5886_s10, 3 }
   0xe   : > { %s10304_s15 = scalar_select %p7567_p3, 1, 0 }
   0xf   : > { %p5887_p7 = scmp.ge.s32.totalorder %s7461_s8, 1  ;;  %s10544_s12 = smov (%p35_p4, %s10542_s12), 0 }
  0x10   : > { %10305 = sst [smem:[#allocation10_spill]] %s10544_s12  ;;  %p7576_p8 = por %p213_p6, %p212_p5 }
  0x11   : > { %p220_p9 = scmp.lt.s32.totalorder %s7461_s8, 5  ;;  %s191_s17 = ssub.s32 %s7457_s30, %s10544_s12 }
  0x12   : > { %s10306_s16 = scalar_select %p7576_p8, 1, 0 }
  0x13   : > { %s193_s18 = sor.u32 %s192_s14, %s191_s17  ;;  %p7583_p10 = pnand %p5887_p7, %p220_p9 }
  0x14   : > { %p194_p11 = scmp.eq.s32.totalorder %s193_s18, 0  ;;  %p7587_p12 = scmp.eq.s32.totalorder %s5885_s9, 0 }
  0x15   : > { %s10307_s19 = scalar_select %p7583_p10, 1, 0 }
  0x16   : > { %s10308_s20 = scalar_select %p7587_p12, 1, 0 }
  0x17   : > { %p7098_p13 = pneg %p7583_p10  ;;  %s7463_s22 = smov [#allocation3]  }
  0x18   : > { %s7594_s21 = scalar_select %p194_p11, %s7441_s26, %s196_s13  }
  0x19   : > { %s241_s23 = sshll.u32 %s7463_s22, 4  ;;  %p7598_p0 = pnand %p7587_p12, %p7098_p13  ;;  %s242_s23 = int_to_ptr.vmem [resolvable:$true] %s241_s23 }
  0x1a   : > { %s7335_s9 = scalar_lea.hbm %s10278_s4, 9216 }
  0x1b   : > { %p7336_p1 = scmp.ne.s32.totalorder %s10278_s4, %s7335_s9  ;;  %p7337_p2 = pneg %p7598_p0 }
  0x1c   : > { %p7342_p6 = scmp.lt.u32.totalorder %s7335_s9, %s10278_s4 }
  0x1d   : > { %p7338_p4 = pnand %p7337_p2, %p7336_p1 }
  0x1f   : > { %p7339_p5 = pneg %p7338_p4 }
  0x21   : > { %p7344_p7 = pnand %p7342_p6, %p7339_p5 }
  0x23   : > { %7347 = shalt.err (!%p7344_p7)
}
  0x24   : > { %s7348_s11 = scalar_lea.vmem %s242_s23, 9216  ;;  %p7356_p8 = scmp.lt.s32.totalorder %s242_s23, %s242_s23 }
  0x25   : > { %p7349_p9 = scmp.ne.s32.totalorder %s242_s23, %s7348_s11  ;;  %p7357_p3 = scmp.lt.s32.totalorder %s7348_s11, %s7348_s11 }
  0x27   : > { %p7351_p11 = pnand %p7349_p9, %p7337_p2  ;;  %p7358_p12 = por %p7357_p3, %p7356_p8 }
  0x29   : > { %p7352_p13 = pneg %p7351_p11 }
  0x2b   : > { %p7359_p10 = pnand %p7358_p12, %p7352_p13 }
  0x2d   : > { %7362 = shalt.err (!%p7359_p10)
}
  0x2e   : > { %s7464_s12 = smov 64   ;;  %s7465_s14 = smov 4  }
  0x2f   : > { %7101 = dma.hbm_to_vmem [thread:$0]  (!%p7598_p0), %s10278_s4, 9216, %s242_s23, [#allocation4], %s7464_s12, %s7464_s12, %s7465_s14  }
  0x30   : > { %p10310_p1 = scmp.ne.s32.totalorder %s10307_s19, 0 }
  0x32   : > { %275 = sbr.rel (%p10310_p1) target bundleno = 1133 (0x46d), region = 48 }
  0x39   : > { %p10311_p4 = scmp.ne.s32.totalorder %s10308_s20, 0 }
  0x3b   : > { %7424 = dma.done.wait (%p10311_p4), [#allocation4], 9216  }
  0x3c   : > { %7426 = vsyncadd (%p10311_p4), [#allocation4], 4294958080  ;;  %p311_p3 = scmp.lt.s32.totalorder %s7449_s28, 1  ;;  %p313_p8 = scmp.lt.s32.totalorder %s7445_s27, 1  ;;  %vm10288_vm0 = vcmask 1046528   ;;  %v7211_v0 = vld [vmem:[%s10275_s1 + $0x18] sm:$0xff]  }
  0x3d   : > { %6610 = vmatprep.subr.bf16.mxu0 %v7211_v0  ;;  %vm10289_vm1 = vsmask.f32 7424  ;;  %s7466_s18 = smov 32   ;;  %vm579_vm2 = vcmask 130048   ;;  %vm605_vm3 = vcmask 261120   ;;  %vm782_vm4 = vcmask 392192  }
  0x3e   : > { %s312_s11 = scalar_select %p311_p3, %s7449_s28, 1  ;;  %6611 = vmatpush3.bf16.msra.mxu0 %v7211_v0  ;;  %vm1440_vm5 = vcmask 1045504  }
  0x3f   : > { %s314_s10 = scalar_select %p313_p8, %s7445_s27, 1 }
  0x40   : > { %s7045_s23 = smul.u32 56, %s312_s11  ;;  %s7467_s11 = smov 16  }
  0x41   : > { %s7044_s9 = smul.u32 28, %s314_s10  ;;  %p2167_p10 = scmp.gt.s32.totalorder %s7445_s27, 0 }
  0x42   : > { %s6184_s22 = sshll.u32 %s7445_s27, 2  ;;  %p10528_p0 = scmp.ne.s32.totalorder %s10304_s15, 0 }
  0x43   : > { %s317_s19 = sadd.s32 %s7045_s23, %s7044_s9  ;;  %s7472_s9 = smov [#allocation6]  }
  0x44   : > { %s5893_s20 = sshll.u32 %s317_s19, 2  ;;  %s308_s19 = sand.u32 1, %s7437_s25  }
  0x45   : > { %s7636_s17 = scalar_lea.vmem %s10274_s0, %s5893_s20  ;;  %s5892_s13 = sshll.u32 %s308_s19, 4 }
  0x46   : > { %v7639_v1 = vld [vmem:[%s7636_s17 + $0x10] sm:$0xff]   ;;  %v7642_v2 = vld [vmem:[%s7636_s17 + $0x18] sm:$0xff]   ;;  %v7645_v3 = vld [vmem:[%s7636_s17 + $0x20] sm:$0xff]   ;;  %s6185_s20 = sshll.u32 %s7449_s28, 3  ;;  %s10222_s10 = scalar_lea.sflag [#allocation5], %s308_s19 }
  0x47   : > { %v7648_v4 = vrot.slane %v7639_v1, 1  ;;  %v537_v5 = vrot.slane %v7642_v2, 1  ;;  %v433_v6 = vshll.u32 %v7642_v2, 16  ;;  %v437_v7 = vshrl.u32 %v7642_v2, 16  ;;  %v7654_v8 = vld [vmem:[%s7636_s17 + $0xc] sm:$0xf]  ;;  %s5785_s12 = sadd.s32 %s6185_s20, %s6184_s22 }
  0x48   : > { %v441_v9 = vshll.u32 %v7645_v3, 16  ;;  %v425_v10 = vshll.u32 %v7639_v1, 16  ;;  %v429_v11 = vshrl.u32 %v7639_v1, 16  ;;  %v539_v12 = vrot.slane %v7645_v3, 1  ;;  %v636_v13 = vld [vmem:[%s7636_s17 + $0x8] sm:$0xe] }
  0x49   : > { %v538_v14 = vsel %vm10288_vm0, %v7648_v4, %v537_v5  ;;  %v435_v15 = vrot.slane %v433_v6, 1  ;;  %v7664_v16 = vcombine.low %v636_v13, %v7654_v8  ;;  %v641_v17 = vld [vmem:[%s7636_s17 + $0x8] sm:$0xc]  ;;  %v7677_v25 = vld [vmem:[%s7636_s17 + $0x30] sm:$0xff]   ;;  %v7683_v29 = vld [vmem:[%s7636_s17 + $0x38] sm:$0xff]   ;;  %v445_v41 = vshrl.u32 %v7645_v3, 16 }
  0x4a   : > { %v7668_v18 = vld [vmem:[%s7636_s17 + $0x28] sm:$0xff]   ;;  %559 = vrot.lane.b32.xlu1 %v538_v14, %s7466_s18  ;;  %v443_v19 = vrot.slane %v441_v9, 1  ;;  %v7671_v20 = vrot.slane %v425_v10, 1  ;;  %v5912_v21 = vcombine.low %v641_v17, %v7654_v8  ;;  %v457_v33 = vshll.u32 %v7677_v25, 16  ;;  %v7694_v40 = vld [vmem:[%s7636_s17 + $0x40] sm:$0xff]   ;;  %v7714_v53 = vld [vmem:[%s7636_s17 + $0x50] sm:$0xff]  }
  0x4b   : > { %v439_v22 = vor.u32 %v437_v7, %v435_v15  ;;  %v657_v23 = vshrl.u32 %v7664_v16, 16  ;;  %v659_v24 = vshll.u32 %v7664_v16, 16  ;;  %v449_v26 = vshll.u32 %v7668_v18, 16  ;;  %v7708_v50 = vld [vmem:[%s7636_s17 + $0x48] sm:$0xff]   ;;  %v7723_v61 = vld [vmem:[%s7636_s17 + $0x58] sm:$0xff]   ;;  %s6186_s28 = sshll.u32 %s5785_s12, 6 }
  0x4c   : > { %v431_v27 = vor.u32 %v429_v11, %v7671_v20  ;;  %v453_v28 = vshrl.u32 %v7668_v18, 16  ;;  %v691_v35 = vrot.slane %v5912_v21, 1  ;;  %v540_v36 = vsel %vm10288_vm0, %v537_v5, %v539_v12  ;;  %v7735_v10 = vld [vmem:[%s7636_s17 + $0x60] ss:$0 sps:$4 sm:$0xff]  }
  0x4d   : > { %v444_v30 = vsel %vm10289_vm1, %v439_v22, %v443_v19  ;;  %v661_v31 = vrot.slane %v659_v24, 1  ;;  %v451_v32 = vrot.slane %v449_v26, 1  ;;  %v459_v39 = vrot.slane %v457_v33, 1  ;;  %v322_v17 = vld [vmem:[%s7636_s17] sm:$0xf] }
  0x4e   : > { %510 = vrot.lane.b32.xlu1 %v444_v30, %s7467_s11  ;;  %v436_v34 = vsel %vm10289_vm1, %v431_v27, %v435_v15  ;;  %v465_v42 = vshll.u32 %v7683_v29, 16  ;;  %v541_v44 = vrot.slane %v7668_v18, 1  ;;  %v543_v45 = vrot.slane %v7677_v25, 1  ;;  %v1117_v26 = vld [vmem:[%s7636_s17 + $0x10] sm:$0xc] }
  0x4f   : > { %508 = vrot.lane.b32.xlu0 %v436_v34, %s7467_s11  ;;  %v662_v37 = vor.u32 %v661_v31, %v657_v23  ;;  %v455_v38 = vor.u32 %v453_v28, %v451_v32  ;;  %v469_v48 = vshrl.u32 %v7683_v29, 16  ;;  %v473_v49 = vshll.u32 %v7694_v40, 16  ;;  %v324_v23 = vld [vmem:[%s7636_s17 + $0x8] sm:$0xf]  ;;  %v7759_v30 = vld [vmem:[%s7636_s17 + $0x14] sm:$0xf] }
  0x50   : > { %v467_v47 = vrot.slane %v465_v42, 1  ;;  %v692_v51 = vsel %vm10288_vm0, %v691_v35, %v7648_v4  ;;  %v447_v52 = vor.u32 %v445_v41, %v443_v19  ;;  %v544_v54 = vsel %vm10288_vm0, %v541_v44, %v543_v45  ;;  %v323_v19 = vld [vmem:[%s7636_s17 + $0x4] sm:$0xf]  ;;  %v346_v35 = vld [vmem:[%s7636_s17] sm:$0xe] }
  0x51   : > { %v663_v43 = vsel %vm10289_vm1, %v662_v37, %v7671_v20  ;;  %v460_v46 = vsel %vm10289_vm1, %v455_v38, %v459_v39  ;;  %v475_v56 = vrot.slane %v473_v49, 1  ;;  %v481_v57 = vshll.u32 %v7708_v50, 16  ;;  %v7213_v37 = vld [vmem:[%s10275_s1 + $0x28] sm:$0xff]  }
  0x52   : > { %561 = vrot.lane.b32.xlu1 %v540_v36, %s7466_s18  ;;  %v471_v55 = vor.u32 %v469_v48, %v467_v47  ;;  %v452_v58 = vsel %vm10289_vm1, %v447_v52, %v451_v32  ;;  %v461_v59 = vshrl.u32 %v7677_v25, 16  ;;  %v545_v60 = vrot.slane %v7683_v29, 1  ;;  %v7212_v36 = vld [vmem:[%s10275_s1 + $0x20] sm:$0xff]  }
  0x53   : > { %680 = vrot.lane.b32.xlu0 %v663_v43, %s7467_s11  ;;  %v547_v62 = vrot.slane %v7694_v40, 1  ;;  %v489_v63 = vshll.u32 %v7714_v53, 16  ;;  %v483_v5 = vrot.slane %v481_v57, 1  ;;  %v485_v6 = vshrl.u32 %v7708_v50, 16  ;;  %6612 = vmatprep.subr.bf16.mxu0 %v7212_v36 }
  0x54   : > { %v476_v0 = vsel %vm10289_vm1, %v471_v55, %v475_v56  ;;  %v542_v7 = vsel %vm10288_vm0, %v539_v12, %v541_v44  ;;  %v463_v9 = vor.u32 %v461_v59, %v459_v39  ;;  %v665_v11 = vshll.u32 %v7723_v61, 16  ;;  %v7777_v39 = vld [vmem:[%s7636_s17 + $0x58] ss:$0 sps:$4 sm:$0x77]   ;;  %6613 = vmatpush3.bf16.msra.mxu0 %v7212_v36  ;;  %v7812_v59 = vld [vmem:[%s7636_s17 + $0x28] sm:$0xff]  }
  0x55   : > { %v491_v13 = vrot.slane %v489_v63, 1  ;;  %v477_v14 = vshrl.u32 %v7694_v40, 16  ;;  %v549_v15 = vrot.slane %v7708_v50, 1  ;;  %v548_v3 = vsel %vm10288_vm0, %v545_v60, %v547_v62  ;;  %6614 = vmatprep.subr.bf16.mxu0 %v7213_v37 }
  0x56   : > { %514 = vrot.lane.b32.xlu1 %v460_v46, %s7467_s11  ;;  %v487_v12 = vor.u32 %v485_v6, %v483_v5  ;;  %v7748_v21 = vrot.slane %v7714_v53, 1  ;;  %v669_v22 = vshrl.u32 %v7723_v61, 16  ;;  %v468_v24 = vsel %vm10289_vm1, %v463_v9, %v467_v47  ;;  %v7795_v47 = vld [vmem:[%s7636_s17 + $0x20] sm:$0xff]   ;;  %v1141_v6 = vld [vmem:[%s7636_s17 + $0x10] sm:$0x8] }
  0x57   : > { %697 = vrot.lane.b32.xlu0 %v692_v51, %s7466_s18  ;;  %v7754_v27 = vrot.slane %v665_v11, 1  ;;  %v673_v28 = vshll.u32 %v7735_v10, 16  ;;  %v479_v32 = vor.u32 %v477_v14, %v475_v56  ;;  %v7763_v33 = vcombine.low %v322_v17, %v323_v19  ;;  %v7831_v17 = vld [vmem:[%s7636_s17 + $0x38] sm:$0xff]  }
  0x58   : > { %v492_v31 = vsel %vm10289_vm1, %v487_v12, %v491_v13  ;;  %v7766_v34 = vcombine.low %v324_v23, %v7654_v8  ;;  %v546_v38 = vsel %vm10288_vm0, %v543_v45, %v545_v60  ;;  %v493_v41 = vshrl.u32 %v7714_v53, 16  ;;  %v7784_v8 = vld [vmem:[%s7636_s17 + $0x18] sm:$0xff]   ;;  %6615 = vmatpush3.bf16.msra.mxu0 %v7213_v37 }
  0x59   : > { %v7781_v42 = vcombine.low %v1117_v26, %v7759_v30  ;;  %v552_v43 = vsel %vm10288_vm0, %v549_v15, %v7748_v21  ;;  %v671_v44 = vor.u32 %v669_v22, %v7754_v27  ;;  %v7792_v45 = vrot.slane %v673_v28, 1 }
  0x5a   : > { %565 = vrot.lane.b32.xlu1 %v544_v54, %s7466_s18  ;;  %v5907_v46 = vcombine.low %v346_v35, %v323_v19  ;;  %v484_v48 = vsel %vm10289_vm1, %v479_v32, %v483_v5  ;;  %v693_v49 = vrot.slane %v7723_v61, 1  ;;  %v412_v51 = vshll.u32 %v7763_v33, 16  ;;  %v7805_v54 = vld [vmem:[%s10275_s1] sm:$0xff]  }
  0x5b   : > { %512 = vrot.lane.b32.xlu0 %v452_v58, %s7467_s11  ;;  %v417_v52 = vshll.u32 %v7766_v34, 16  ;;  %v695_v55 = vrot.slane %v7735_v10, 1  ;;  %v677_v56 = vshrl.u32 %v7735_v10, 16  ;;  %v410_v57 = vshrl.u32 %v7763_v33, 16  ;;  %6640 = vmatprep.subr.bf16.mxu0 %v7805_v54 }
  0x5c   : > { %v497_v58 = vshll.u32 %v7777_v39, 16  ;;  %v7814_v60 = vor.u32 %v493_v41, %v491_v13  ;;  %v421_v63 = vshrl.u32 %v7766_v34, 16  ;;  %v1211_v5 = vshll.u32 %v7784_v8, 16  ;;  %v7862_v41 = vld [vmem:[%s7636_s17 + $0x48] sm:$0xff]  }
  0x5d   : > { %v676_v9 = vsel %vm10289_vm1, %v671_v44, %v7792_v45  ;;  %v7826_v11 = vrot.slane %v5907_v46, 1  ;;  %v533_v13 = vrot.slane %v7766_v34, 1  ;;  %v553_v14 = vrot.slane %v7777_v39, 1 }
  0x5e   : > { %518 = vrot.lane.b32.xlu1 %v476_v0, %s7467_s11  ;;  %v1206_v0 = vshll.u32 %v7781_v42, 16  ;;  %v414_v19 = vrot.slane %v412_v51, 1  ;;  %v501_v12 = vshrl.u32 %v7777_v39, 16  ;;  %v1219_v22 = vshll.u32 %v7795_v47, 16 }
  0x5f   : > { %563 = vrot.lane.b32.xlu0 %v542_v7, %s7466_s18  ;;  %v7821_v7 = vld [vmem:[%s7636_s17 + $0x30] sm:$0xff]   ;;  %v550_v23 = vsel %vm10288_vm0, %v547_v62, %v549_v15  ;;  %v1204_v26 = vshrl.u32 %v7781_v42, 16  ;;  %v1227_v28 = vshll.u32 %v7812_v59, 16  ;;  %v7847_v35 = vrot.slane %v1211_v5, 1 }
  0x60   : > { %v1208_v32 = vrot.slane %v1206_v0, 1  ;;  %v1223_v36 = vshrl.u32 %v7795_v47, 16  ;;  %v1235_v37 = vshll.u32 %v7821_v7, 16  ;;  %v668_v62 = vsel %vm10289_vm1, %v7814_v60, %v7754_v27 }
  0x61   : > { %v696_v15 = vsel %vm10288_vm0, %v693_v49, %v695_v55  ;;  %v1221_v44 = vrot.slane %v1219_v22, 1  ;;  %v1215_v46 = vshrl.u32 %v7784_v8, 16  ;;  %v7871_v51 = vrot.slane %v1227_v28, 1 }
  0x62   : > { %569 = vrot.lane.b32.xlu1 %v548_v3, %s7466_s18  ;;  %v419_v3 = vrot.slane %v417_v52, 1  ;;  %v7877_v5 = vrot.slane %v1235_v37, 1  ;;  %v694_v52 = vsel %vm10288_vm0, %v7748_v21, %v693_v49  ;;  %v679_v49 = vor.u32 %v677_v56, %v7792_v45 }
  0x63   : > { %516 = vrot.lane.b32.xlu0 %v468_v24, %s7467_s11  ;;  %v499_v24 = vrot.slane %v497_v58, 1  ;;  %v1243_v58 = vshll.u32 %v7831_v17, 16  ;;  %v1263_v28 = vshrl.u32 %v7862_v41, 16  ;;  %v534_v56 = vsel %vm10288_vm0, %v7826_v11, %v533_v13 }
  0x64   : > { %v423_v22 = vor.u32 %v421_v63, %v419_v3  ;;  %v415_v63 = vor.u32 %v414_v19, %v410_v57  ;;  %v7928_v57 = vld [vmem:[%s7636_s17 + $0x58] sm:$0xff]   ;;  %v554_v11 = vsel %vm10288_vm0, %v7748_v21, %v553_v14 }
  0x65   : > { %v503_v45 = vor.u32 %v501_v12, %v499_v24  ;;  %v500_v19 = vsel %vm10289_vm1, %v7814_v60, %v499_v24  ;;  %v1338_v12 = vrot.slane %v7862_v41, 1  ;;  %v1275_v60 = vshll.u32 %v7928_v57, 16 }
  0x66   : > { %522 = vrot.lane.b32.xlu1 %v492_v31, %s7467_s11  ;;  %v7845_v31 = vld [vmem:[%s7636_s17 + $0x40] sm:$0xff]   ;;  %v420_v10 = vsel %vm10289_vm1, %v415_v63, %v419_v3  ;;  %v1225_v24 = vor.u32 %v1223_v36, %v1221_v44 }
  0x67   : > { %567 = vrot.lane.b32.xlu0 %v546_v38, %s7466_s18  ;;  %v5962_v38 = vcombine.low %v1141_v6, %v7759_v30  ;;  %v1251_v30 = vshll.u32 %v7845_v31, 16  ;;  %v1330_v6 = vrot.slane %v7812_v59, 1 }
  0x69   : > { %v1325_v0 = vrot.slane %v5962_v38, 1  ;;  %v7890_v38 = vrot.slane %v1243_v58, 1  ;;  %v7892_v27 = vrot.slane %v1251_v30, 1  ;;  %v428_v58 = vsel %vm10289_vm1, %v423_v22, %v7671_v20 }
  0x6a   : > { %573 = vrot.lane.b32.xlu1 %v552_v43, %s7466_s18  ;;  %v7865_v43 = vld [vmem:[%s7636_s17 + $0x50] sm:$0xff]   ;;  %v1255_v30 = vshrl.u32 %v7845_v31, 16  ;;  %v536_v20 = vsel %vm10288_vm0, %v533_v13, %v7648_v4  ;;  %v1217_v4 = vor.u32 %v1215_v46, %v7847_v35  ;;  %v1209_v13 = vor.u32 %v1208_v32, %v1204_v26 }
  0x6b   : > { %520 = vrot.lane.b32.xlu0 %v484_v48, %s7467_s11  ;;  %v1326_v48 = vrot.slane %v7784_v8, 1  ;;  %v1267_v37 = vshll.u32 %v7865_v43, 16  ;;  %v10312_v26 = vrot.slane %v7795_v47, 1  ;;  %v1277_v46 = vrot.slane %v1275_v60, 1 }
  0x6c   : > { %v1222_v3 = vsel %vm10289_vm1, %v1217_v4, %v1221_v44  ;;  %v1214_v21 = vsel %vm10289_vm1, %v1209_v13, %v7847_v35  ;;  %v1340_v44 = vrot.slane %v7865_v43, 1  ;;  %v1271_v35 = vshrl.u32 %v7865_v43, 16 }
  0x6d   : > { %v1327_v39 = vsel %vm10288_vm0, %v1325_v0, %v1326_v48  ;;  %v1331_v32 = vsel %vm10288_vm0, %v10312_v26, %v1330_v6  ;;  %v7971_v0 = vld [vmem:[%s7636_s17 + $0x60] sm:$0xff]   ;;  %v10318_v13 = vrot.slane %v7845_v31, 1 }
  0x6e   : > { %684 = vrot.lane.b32.xlu1 %v676_v9, %s7467_s11 }
  0x6f   : > { %571 = vrot.lane.b32.xlu0 %v550_v23, %s7466_s18  ;;  %v1239_v23 = vshrl.u32 %v7821_v7, 16  ;;  %v1339_v60 = vsel %vm10288_vm0, %v10318_v13, %v1338_v12 }
  0x71   : > { %v1241_v36 = vor.u32 %v1239_v23, %v7877_v5 }
  0x72   : > { %701 = vrot.lane.b32.xlu1 %v696_v15, %s7466_s18  ;;  %v1259_v15 = vshll.u32 %v7862_v41, 16 }
  0x73   : > { %682 = vrot.lane.b32.xlu0 %v668_v62, %s7467_s11  ;;  %v1334_v62 = vrot.slane %v7831_v17, 1  ;;  %v1246_v22 = vsel %vm10289_vm1, %v1241_v36, %v7890_v38 }
  0x74   : > { %v7909_v9 = vrot.slane %v1259_v15, 1  ;;  %v10313_v15 = vmov %v10312_v26 }
  0x75   : > { %v1329_v23 = vsel %vm10288_vm0, %v1326_v48, %v10313_v15  ;;  %v1279_v15 = vshrl.u32 %v7928_v57, 16 }
  0x76   : > { %703 = vrot.lane.b32.xlu1 %v695_v55, %s7466_s18  ;;  %v7911_v55 = vrot.slane %v1267_v37, 1  ;;  %v10314_v37 = vshrl.u32 %v7812_v59, 16 }
  0x77   : > { %699 = vrot.lane.b32.xlu0 %v694_v52, %s7466_s18  ;;  %v1342_v52 = vrot.slane %v7928_v57, 1 }
  0x78   : > { %v1233_v63 = vor.u32 %v10314_v37, %v7871_v51  ;;  %v1344_v37 = vrot.slane %v7971_v0, 1 }
  0x7a   : > { %506 = vrot.lane.b32.xlu1 %v428_v58, %s7467_s11  ;;  %v1238_v48 = vsel %vm10289_vm1, %v1233_v63, %v7877_v5  ;;  %v10317_v5 = vshrl.u32 %v7831_v17, 16 }
  0x7b   : > { %686 = vrot.lane.b32.xlu0 %v679_v49, %s7467_s11  ;;  %v10315_v49 = vrot.slane %v7821_v7, 1 }
  0x7d   : > { %v1335_v58 = vsel %vm10288_vm0, %v10315_v49, %v1334_v62 }
  0x7e   : > { %557 = vrot.lane.b32.xlu1 %v536_v20, %s7466_s18  ;;  %v1257_v20 = vor.u32 %v1255_v30, %v7892_v27 }
  0x7f   : > { %504 = vrot.lane.b32.xlu0 %v420_v10, %s7467_s11  ;;  %v7993_v10 = vld [vmem:[%s7636_s17 + $0x68] sm:$0xf] }
  0x80   : > { %v1262_v4 = vsel %vm10289_vm1, %v1257_v20, %v7909_v9 }
  0x82   : > { %526 = vrot.lane.b32.xlu1 %v503_v45, %s7467_s11  ;;  %v1140_v45 = vld [vmem:[%s7636_s17 + $0x6c] sm:$0x1] }
  0x83   : > { %555 = vrot.lane.b32.xlu0 %v534_v56, %s7466_s18  ;;  %v1287_v56 = vshrl.u32 %v7971_v0, 16 }
  0x86   : > { %577 = vrot.lane.b32.xlu1 %v553_v14, %s7466_s18  ;;  %v1230_v14 = vsel %vm10289_vm1, %v1225_v24, %v7871_v51  ;;  %v1283_v51 = vshll.u32 %v7971_v0, 16  ;;  %v1273_v24 = vor.u32 %v1271_v35, %v7911_v55 }
  0x87   : > { %524 = vrot.lane.b32.xlu0 %v500_v19, %s7467_s11  ;;  %v10316_v19 = vmov %v10315_v49 }
  0x88   : > { %v1333_v30 = vsel %vm10288_vm0, %v1330_v6, %v10316_v19  ;;  %v1285_v6 = vrot.slane %v1283_v51, 1 }
  0x8a   : > { %1300 = vrot.lane.b32.xlu1 %v1222_v3, %s7467_s11  ;;  %v1249_v3 = vor.u32 %v10317_v5, %v7890_v38  ;;  %v1278_v38 = vsel %vm10289_vm1, %v1273_v24, %v1277_v46  ;;  %v1289_v36 = vor.u32 %v1287_v56, %v1285_v6 }
  0x8b   : > { %575 = vrot.lane.b32.xlu0 %v554_v11, %s7466_s18  ;;  %v5961_v11 = vcombine.low %v7993_v10, %v1140_v45 }
  0x8d   : > { %v1295_v49 = vshrl.u32 %v5961_v11, 16 }
  0x8e   : > { %1348 = vrot.lane.b32.xlu1 %v1327_v39, %s7466_s18  ;;  %v1254_v39 = vsel %vm10289_vm1, %v1249_v3, %v7892_v27  ;;  %v1343_v27 = vsel %vm10288_vm0, %v1340_v44, %v1342_v52 }
  0x8f   : > { %1298 = vrot.lane.b32.xlu0 %v1214_v21, %s7467_s11  ;;  %v1291_v21 = vshll.u32 %v5961_v11, 16 }
  0x91   : > { %v1293_v35 = vrot.slane %v1291_v21, 1 }
  0x92   : > { %1352 = vrot.lane.b32.xlu1 %v1331_v32, %s7466_s18  ;;  %v1265_v32 = vor.u32 %v1263_v28, %v7909_v9  ;;  %v1346_v9 = vrot.slane %v5961_v11, 1  ;;  %v1341_v28 = vsel %vm10288_vm0, %v1338_v12, %v1340_v44 }
  0x93   : > { %1302 = vrot.lane.b32.xlu0 %v1230_v14, %s7467_s11  ;;  %v10319_v14 = vmov %v10318_v13  ;;  %v1297_v12 = vor.u32 %v1295_v49, %v1293_v35 }
  0x94   : > { %v1337_v26 = vsel %vm10288_vm0, %v1334_v62, %v10319_v14  ;;  %v1294_v62 = vsel %vm10289_vm1, %v1289_v36, %v1293_v35 }
  0x96   : > { %1306 = vrot.lane.b32.xlu1 %v1246_v22, %s7467_s11  ;;  %v1270_v22 = vsel %vm10289_vm1, %v1265_v32, %v7911_v55  ;;  %v1347_v55 = vsel %vm10288_vm0, %v1344_v37, %v1346_v9  ;;  %v7220_v32 = vld [vmem:[%s10275_s1 + $0x10] sm:$0xff]  }
  0x97   : > { %1350 = vrot.lane.b32.xlu0 %v1329_v23, %s7466_s18  ;;  %v1281_v23 = vor.u32 %v1279_v15, %v1277_v46 }
  0x99   : > { %v1286_v63 = vsel %vm10289_vm1, %v1281_v23, %v1285_v6 }
  0x9a   : > { %1356 = vrot.lane.b32.xlu1 %v1335_v58, %s7466_s18  ;;  %v1345_v58 = vsel %vm10288_vm0, %v1342_v52, %v1344_v37 }
  0x9b   : > { %1304 = vrot.lane.b32.xlu0 %v1238_v48, %s7467_s11 }
  0x9e   : > { %1310 = vrot.lane.b32.xlu1 %v1262_v4, %s7467_s11 }
  0x9f   : > { %1354 = vrot.lane.b32.xlu0 %v1333_v30, %s7466_s18 }
  0xa2   : > { %1360 = vrot.lane.b32.xlu1 %v1339_v60, %s7466_s18 }
  0xa3   : > { %1308 = vrot.lane.b32.xlu0 %v1254_v39, %s7467_s11 }
  0xa6   : > { %1314 = vrot.lane.b32.xlu1 %v1278_v38, %s7467_s11 }
  0xa7   : > { %1358 = vrot.lane.b32.xlu0 %v1337_v26, %s7466_s18 }
  0xaa   : > { %1364 = vrot.lane.b32.xlu1 %v1343_v27, %s7466_s18 }
  0xab   : > { %1312 = vrot.lane.b32.xlu0 %v1270_v22, %s7467_s11 }
  0xae   : > { %1318 = vrot.lane.b32.xlu1 %v1294_v62, %s7467_s11 }
  0xaf   : > { %1362 = vrot.lane.b32.xlu0 %v1341_v28, %s7466_s18  ;;  %v8098_v28 = vld [vmem:[%s10275_s1 + $0x30] sm:$0xff]  }
  0xb2   : > { %1368 = vrot.lane.b32.xlu1 %v1347_v55, %s7466_s18 }
  0xb3   : > { %1316 = vrot.lane.b32.xlu0 %v1286_v63, %s7467_s11 }
  0xb6   : > { %1370 = vrot.lane.b32.xlu1 %v1346_v9, %s7466_s18 }
  0xb7   : > { %1366 = vrot.lane.b32.xlu0 %v1345_v58, %s7466_s18  ;;  %s8798_s18 = scalar_select %p313_p8, 1, 0 }
  0xbb   : > { %1320 = vrot.lane.b32.xlu0 %v1297_v12, %s7467_s11  ;;  %s10217_s11 = scalar_lea.hbm %s10281_s7, %s6186_s28 }
  0xbc   : > { %v560_v44 = vpop.permute.xlu1 %559 }
  0xc0   : > { %v511_v46 = vpop.permute.xlu1 %510 }
  0xc1   : > { %v509_v20 = vpop.permute.xlu0 %508  ;;  %v587_v45 = vsel %vm579_vm2, %v7642_v2, %v511_v46 }
  0xc2   : > { %v585_v51 = vsel %vm579_vm2, %v7639_v1, %v509_v20 }
  0xc3   : > { %v8061_v4 = vsel %vm605_vm3, %v585_v51, %v560_v44 }
  0xc4   : > { %v562_v48 = vpop.permute.xlu1 %561  ;;  %v742_v1 = vrot.slane %v8061_v4, 1 }
  0xc5   : > { %v681_v52 = vpop.permute.xlu0 %680  ;;  %v8058_v56 = vsel %vm605_vm3, %v587_v45, %v562_v48 }
  0xc6   : > { %v706_v30 = vsel %vm579_vm2, %v7664_v16, %v681_v52  ;;  %v744_v3 = vrot.slane %v8058_v56, 1  ;;  %v7218_v16 = vld [vmem:[%s10275_s1 + $0x8] sm:$0xff]  }
  0xc8   : > { %v515_v19 = vpop.permute.xlu1 %514  ;;  %v745_v6 = vsel %vm10288_vm0, %v742_v1, %v744_v3 }
  0xc9   : > { %v698_v5 = vpop.permute.xlu0 %697  ;;  %v591_v60 = vsel %vm579_vm2, %v7668_v18, %v515_v19  ;;  %v7333_v18 = vld [vmem:[%s7636_s17 + $0x20] sm:$0xff]  }
  0xca   : > { %v715_v2 = vsel %vm605_vm3, %v706_v30, %v698_v5 }
  0xcb   : > { %v741_v11 = vrot.slane %v715_v2, 1 }
  0xcc   : > { %v566_v13 = vpop.permute.xlu1 %565 }
  0xcd   : > { %v513_v24 = vpop.permute.xlu0 %512  ;;  %v743_v39 = vsel %vm10288_vm0, %v741_v11, %v742_v1  ;;  %v8078_v21 = vsel %vm605_vm3, %v591_v60, %v566_v13 }
  0xce   : > { %6616 = vmatprep.mubr.msk.bf16.mxu0 %vm782_vm4, %v743_v39  ;;  %v589_v14 = vsel %vm579_vm2, %v7333_v18, %v513_v24  ;;  %v748_v36 = vrot.slane %v8078_v21, 1  ;;  %v7219_v39 = vld [vmem:[%s7636_s17 + $0x60] ss:$0 sps:$4 sm:$0x77]  }
  0xcf   : > { %6617 = vmatmul.mubr.msk.bf16.vlgmr.msra.gmra.mrb[0].mxu0 %vm782_vm4, %v745_v6 }
  0xd0   : > { %6641 = vmatpush3.bf16.msra.mxu0 %v7805_v54  ;;  %v519_v38 = vpop.permute.xlu1 %518 }
  0xd1   : > { %v564_v26 = vpop.permute.xlu0 %563  ;;  %6642 = vmatprep.subr.bf16.mxu0 %v7218_v16  ;;  %v595_v54 = vsel %vm579_vm2, %v7683_v29, %v519_v38 }
  0xd2   : > { %v8087_v27 = vsel %vm605_vm3, %v589_v14, %v564_v26 }
  0xd3   : > { %v746_v35 = vrot.slane %v8087_v27, 1 }
  0xd4   : > { %v570_v22 = vpop.permute.xlu1 %569  ;;  %6643 = vmatpush3.bf16.msra.mxu0 %v7218_v16 }
  0xd5   : > { %v517_v15 = vpop.permute.xlu0 %516  ;;  %v747_v62 = vsel %vm10288_vm0, %v744_v3, %v746_v35  ;;  %v749_v9 = vsel %vm10288_vm0, %v746_v35, %v748_v36  ;;  %6644 = vmatprep.subr.bf16.mxu0 %v7220_v32  ;;  %v8103_v23 = vsel %vm605_vm3, %v595_v54, %v570_v22 }
  0xd6   : > { %6620 = vmatprep.mubr.msk.bf16.mxu0 %vm782_vm4, %v747_v62  ;;  %v593_v29 = vsel %vm579_vm2, %v7677_v25, %v517_v15  ;;  %v752_v49 = vrot.slane %v8103_v23, 1 }
  0xd7   : > { %6621 = vmatmul.mubr.msk.bf16.gmra.mrb[4].mxu0 %vm782_vm4, %v749_v9 }
  0xd8   : > { %v523_v37 = vpop.permute.xlu1 %522  ;;  %6645 = vmatpush3.bf16.msra.mxu0 %v7220_v32 }
  0xd9   : > { %v568_v55 = vpop.permute.xlu0 %567  ;;  %6670 = vmatprep.subr.bf16.mxu0 %v8098_v28  ;;  %v599_v44 = vsel %vm579_vm2, %v7708_v50, %v523_v37 }
  0xda   : > { %v8109_v63 = vsel %vm605_vm3, %v593_v29, %v568_v55 }
  0xdb   : > { %v750_v58 = vrot.slane %v8109_v63, 1 }
  0xdc   : > { %v574_v12 = vpop.permute.xlu1 %573 }
  0xdd   : > { %v521_v46 = vpop.permute.xlu0 %520  ;;  %v751_v20 = vsel %vm10288_vm0, %v748_v36, %v750_v58  ;;  %v753_v45 = vsel %vm10288_vm0, %v750_v58, %v752_v49  ;;  %v8120_v25 = vsel %vm605_vm3, %v599_v44, %v574_v12 }
  0xde   : > { %6624 = vmatprep.mubr.msk.bf16.mxu0 %vm782_vm4, %v751_v20  ;;  %v597_v51 = vsel %vm579_vm2, %v7694_v40, %v521_v46  ;;  %v756_v19 = vrot.slane %v8120_v25, 1 }
  0xdf   : > { %6625 = vmatmul.mubr.msk.bf16.gmra.mrb[8].mxu0 %vm782_vm4, %v753_v45 }
  0xe0   : > { %v685_v48 = vpop.permute.xlu1 %684 }
  0xe1   : > { %v572_v52 = vpop.permute.xlu0 %571  ;;  %v710_v5 = vsel %vm579_vm2, %v7723_v61, %v685_v48 }
  0xe2   : > { %v8125_v50 = vsel %vm605_vm3, %v597_v51, %v572_v52  ;;  %v7334_v52 = vld [vmem:[%s7636_s17 + $0x50] sm:$0xff]  }
  0xe3   : > { %v754_v30 = vrot.slane %v8125_v50, 1 }
  0xe4   : > { %v702_v11 = vpop.permute.xlu1 %701 }
  0xe5   : > { %v683_v3 = vpop.permute.xlu0 %682  ;;  %v755_v2 = vsel %vm10288_vm0, %v752_v49, %v754_v30  ;;  %v757_v1 = vsel %vm10288_vm0, %v754_v30, %v756_v19  ;;  %v719_v40 = vsel %vm605_vm3, %v710_v5, %v702_v11  ;;  %v7222_v49 = vld [vmem:[%s10275_s1 + $0x38] sm:$0xff]  }
  0xe6   : > { %6628 = vmatprep.mubr.msk.bf16.mxu0 %vm782_vm4, %v755_v2  ;;  %v708_v13 = vsel %vm579_vm2, %v7714_v53, %v683_v3  ;;  %v760_v61 = vrot.slane %v719_v40, 1  ;;  %v7223_v3 = vld [vmem:[%s7636_s17 + $0x58] ss:$0 sps:$4 sm:$0x33]   ;;  %s8365_s17 = scalar_select %p2167_p10, 1, 0 }
  0xe7   : > { %6629 = vmatmul.mubr.msk.bf16.gmra.mrb[12].mxu0 %vm782_vm4, %v757_v1 }
  0xe8   : > { %v704_v6 = vpop.permute.xlu1 %703 }
  0xe9   : > { %v700_v60 = vpop.permute.xlu0 %699 }
  0xea   : > { %v717_v24 = vsel %vm605_vm3, %v708_v13, %v700_v60 }
  0xeb   : > { %v758_v16 = vrot.slane %v717_v24, 1 }
  0xec   : > { %v507_v35 = vpop.permute.xlu1 %506 }
  0xed   : > { %v687_v38 = vpop.permute.xlu0 %686  ;;  %v759_v18 = vsel %vm10288_vm0, %v756_v19, %v758_v16  ;;  %v761_v14 = vsel %vm10288_vm0, %v758_v16, %v760_v61  ;;  %v583_v29 = vsel %vm579_vm2, %v7766_v34, %v507_v35  ;;  %v7224_v34 = vld [vmem:[%s10275_s1 + $0x40] sm:$0xff]  }
  0xee   : > { %v713_v26 = vsel %vm579_vm2, %v7219_v39, %v687_v38  ;;  %6632 = vmatprep.mubr.msk.bf16.mxu0 %vm782_vm4, %v759_v18 }
  0xef   : > { %v721_v32 = vsel %vm605_vm3, %v713_v26, %v704_v6  ;;  %6633 = vmatmul.mubr.msk.bf16.gmra.mrb[16].mxu0 %vm782_vm4, %v761_v14 }
  0xf0   : > { %v762_v53 = vrot.slane %v721_v32, 1  ;;  %v558_v9 = vpop.permute.xlu1 %557 }
  0xf1   : > { %v505_v36 = vpop.permute.xlu0 %504 }
  0xf2   : > { %v763_v22 = vsel %vm10288_vm0, %v760_v61, %v762_v53  ;;  %v581_v54 = vsel %vm579_vm2, %v7763_v33, %v505_v36  ;;  %v609_v33 = vsel %vm605_vm3, %v583_v29, %v558_v9 }
  0xf3   : > { %6636 = vmatprep.mubr.msk.bf16.mxu0 %vm782_vm4, %v763_v22 }
  0xf4   : > { %v527_v55 = vpop.permute.xlu1 %526 }
  0xf5   : > { %v556_v15 = vpop.permute.xlu0 %555 }
  0xf6   : > { %v607_v62 = vsel %vm605_vm3, %v581_v54, %v556_v15 }
  0xf7   : > { %6637 = vmatmul.mubr.msk.bf16.gmra.mrb[20].mxu0 %vm782_vm4, %v762_v53 }
  0xf8   : > { %6646 = vmatprep.mubr.msk.bf16.mxu0 %vm782_vm4, %v607_v62  ;;  %v578_v44 = vpop.permute.xlu1 %577 }
  0xf9   : > { %v525_v37 = vpop.permute.xlu0 %524 }
  0xfa   : > { %v601_v19 = vsel %vm579_vm2, %v7334_v52, %v525_v37 }
  0xfc   : > { %v1301_v20 = vpop.permute.xlu1 %1300 }
  0xfd   : > { %v576_v58 = vpop.permute.xlu0 %575 }
  0xff   : > { %6647 = vmatmul.mubr.msk.bf16.vlgmr.msra.gmra.mrb[0].mxu0 %vm782_vm4, %v609_v33 }
 0x100   : > { %6671 = vmatpush3.bf16.msra.mxu0 %v8098_v28  ;;  %6650 = vmatprep.mubr.msk.bf16.mxu0 %vm782_vm4, %v8061_v4  ;;  %v1349_v28 = vpop.permute.xlu1 %1348 }
 0x101   : > { %6672 = vmatprep.subr.bf16.mxu0 %v7222_v49  ;;  %v1299_v12 = vpop.permute.xlu0 %1298 }
 0x102   : > { %v1373_v51 = vsel %vm579_vm2, %v7781_v42, %v1299_v12 }
 0x103   : > { %v1398_v5 = vsel %vm605_vm3, %v1373_v51, %v1349_v28 }
 0x104   : > { %6673 = vmatpush3.bf16.msra.mxu0 %v7222_v49  ;;  %v1353_v48 = vpop.permute.xlu1 %1352  ;;  %v1441_v2 = vrot.slane %v1398_v5, 2  ;;  %v7227_v5 = vld [vmem:[#allocation3] sm:$0xff]  }
 0x105   : > { %6674 = vmatprep.subr.bf16.mxu0 %v7224_v34  ;;  %v1303_v46 = vpop.permute.xlu0 %1302 }
 0x106   : > { %v1377_v1 = vsel %vm579_vm2, %v7795_v47, %v1303_v46 }
 0x107   : > { %6651 = vmatmul.mubr.msk.bf16.gmra.mrb[4].mxu0 %vm782_vm4, %v8058_v56  ;;  %v1402_v24 = vsel %vm605_vm3, %v1377_v1, %v1353_v48  ;;  %v7233_v1 = vld [vmem:[#allocation3 + $0xc8] sm:$0xff]  }
 0x108   : > { %6654 = vmatprep.mubr.msk.bf16.mxu0 %vm782_vm4, %v8087_v27  ;;  %6675 = vmatpush3.bf16.msra.mxu0 %v7224_v34  ;;  %v1307_v56 = vpop.permute.xlu1 %1306  ;;  %v1444_v16 = vrot.slane %v1402_v24, 2  ;;  %v7239_v24 = vld [vmem:[#allocation3 + $0x18] sm:$0xff]  }
 0x109   : > { %v1351_v4 = vpop.permute.xlu0 %1350 }
 0x10d   : > { %v1305_v45 = vpop.permute.xlu0 %1304 }
 0x10e   : > { %v1379_v40 = vsel %vm579_vm2, %v7812_v59, %v1305_v45  ;;  %v1381_v59 = vsel %vm579_vm2, %v7821_v7, %v1307_v56 }
 0x10f   : > { %6655 = vmatmul.mubr.msk.bf16.gmra.mrb[8].mxu0 %vm782_vm4, %v8078_v21  ;;  %v1375_v21 = vsel %vm579_vm2, %v7784_v8, %v1301_v20  ;;  %v604_v8 = vsel %vm579_vm2, %v7223_v3, %v527_v55  ;;  %v7230_v3 = vld [vmem:[#allocation3 + $0x48] sm:$0xff]  }
 0x110   : > { %6658 = vmatprep.mubr.msk.bf16.mxu0 %vm782_vm4, %v8109_v63  ;;  %v1357_v63 = vpop.permute.xlu1 %1356  ;;  %v1400_v30 = vsel %vm605_vm3, %v1375_v21, %v1351_v4  ;;  %v5960_v4 = vcombine.low %v7993_v10, %v7993_v10 }
 0x111   : > { %v1355_v27 = vpop.permute.xlu0 %1354  ;;  %v1442_v42 = vrot.slane %v1400_v30, 2  ;;  %v1406_v26 = vsel %vm605_vm3, %v1381_v59, %v1357_v63  ;;  %v7226_v30 = vld [vmem:[#allocation3 + $0x40] sm:$0xff]   ;;  %v7246_v59 = vld [vmem:[#allocation3 + $0x68] sm:$0xff]  }
 0x112   : > { %v1404_v39 = vsel %vm605_vm3, %v1379_v40, %v1355_v27  ;;  %v1448_v35 = vrot.slane %v1406_v26, 2  ;;  %6436 = vmatprep.subr.bf16.mxu0 %v7226_v30  ;;  %v7235_v40 = vld [vmem:[#allocation3 + $0x10] sm:$0xff]  }
 0x113   : > { %v1443_v13 = vsel %vm1440_vm5, %v1441_v2, %v1442_v42  ;;  %v1446_v6 = vrot.slane %v1404_v39, 2  ;;  %v1445_v14 = vsel %vm1440_vm5, %v1442_v42, %v1444_v16  ;;  %v7231_v42 = vld [vmem:[#allocation3 + $0x8] sm:$0xff]   ;;  %v7468_v2 = vmov 0   ;;  %v7240_v39 = vld [vmem:[#allocation3 + $0x118] sm:$0xff]   ;;  %v7250_v26 = vld [vmem:[#allocation3 + $0x70] sm:$0xff]  }
 0x114   : > { %v1311_v11 = vpop.permute.xlu1 %1310  ;;  %2382 = vst [vmem:[#allocation2] sm:$0xf] %v7468_v2 }
 0x115   : > { %v1447_v32 = vsel %vm1440_vm5, %v1444_v16, %v1446_v6  ;;  %v1449_v62 = vsel %vm1440_vm5, %v1446_v6, %v1448_v35  ;;  %v7241_v16 = vld [vmem:[#allocation3 + $0xd8] sm:$0xff]   ;;  %v7243_v6 = vld [vmem:[#allocation3 + $0x20] sm:$0xff]  }
 0x117   : > { %6659 = vmatmul.mubr.msk.bf16.gmra.mrb[12].mxu0 %vm782_vm4, %v8103_v23  ;;  %v627_v23 = vsel %vm605_vm3, %v601_v19, %v576_v58 }
 0x118   : > { %6662 = vmatprep.mubr.msk.bf16.mxu0 %vm782_vm4, %v8125_v50  ;;  %v1309_v50 = vpop.permute.xlu0 %1308  ;;  %v1361_v61 = vpop.permute.xlu1 %1360 }
 0x119   : > { %v1383_v38 = vsel %vm579_vm2, %v7831_v17, %v1309_v50  ;;  %v1385_v17 = vsel %vm579_vm2, %v7845_v31, %v1311_v11  ;;  %v7229_v50 = vld [vmem:[#allocation3 + $0xc0] sm:$0xff]   ;;  %v7234_v11 = vld [vmem:[#allocation3 + $0x50] sm:$0xff]  }
 0x11a   : > { %v1410_v9 = vsel %vm605_vm3, %v1385_v17, %v1361_v61  ;;  %v7242_v61 = vld [vmem:[#allocation3 + $0x60] sm:$0xff]   ;;  %v7256_v17 = vld [vmem:[#allocation3 + $0x138] sm:$0xff]  }
 0x11b   : > { %v1452_v49 = vrot.slane %v1410_v9, 2  ;;  %v10294_v9 = vmov 0.0  }
 0x11c   : > { %v1359_v60 = vpop.permute.xlu0 %1358  ;;  %v1315_v18 = vpop.permute.xlu1 %1314 }
 0x11d   : > { %v1408_v53 = vsel %vm605_vm3, %v1383_v38, %v1359_v60  ;;  %v1389_v31 = vsel %vm579_vm2, %v7865_v43, %v1315_v18  ;;  %v7238_v60 = vld [vmem:[#allocation3 + $0x58] sm:$0xff]   ;;  %v7245_v38 = vld [vmem:[#allocation3 + $0xe0] sm:$0xff]   ;;  %v7247_v18 = vld [vmem:[#allocation3 + $0x28] sm:$0xff]  }
 0x11e   : > { %v1450_v22 = vrot.slane %v1408_v53, 2  ;;  %v7251_v53 = vld [vmem:[#allocation3 + $0x30] sm:$0xff]  }
 0x11f   : > { %6663 = vmatmul.mubr.msk.bf16.gmra.mrb[16].mxu0 %vm782_vm4, %v8120_v25  ;;  %v629_v25 = vsel %vm605_vm3, %v604_v8, %v578_v44  ;;  %v7232_v8 = vld [vmem:[#allocation3 + $0x108] sm:$0xff]  }
 0x120   : > { %6666 = vmatprep.mubr.msk.bf16.mxu0 %vm782_vm4, %v627_v23  ;;  %v1313_v47 = vpop.permute.xlu0 %1312  ;;  %v1365_v7 = vpop.permute.xlu1 %1364  ;;  %v1451_v37 = vsel %vm1440_vm5, %v1448_v35, %v1450_v22  ;;  %v1453_v44 = vsel %vm1440_vm5, %v1450_v22, %v1452_v49  ;;  %v7228_v23 = vld [vmem:[#allocation3 + $0x100] sm:$0xff]   ;;  %v7254_v35 = vld [vmem:[#allocation3 + $0x78] sm:$0xff]   ;;  %v7253_v22 = vld [vmem:[#allocation3 + $0xf0] sm:$0xff]  }
 0x121   : > { %v1387_v54 = vsel %vm579_vm2, %v7862_v41, %v1313_v47  ;;  %v1414_v12 = vsel %vm605_vm3, %v1389_v31, %v1365_v7  ;;  %6349 = vmatprep.subr.bf16.mxu1 %v7228_v23  ;;  %v7244_v47 = vld [vmem:[#allocation3 + $0x120] sm:$0xff]   ;;  %v7255_v7 = vld [vmem:[#allocation3 + $0x38] sm:$0xff]  }
 0x122   : > { %v1456_v43 = vrot.slane %v1414_v12, 2  ;;  %6350 = vmatpush3.bf16.msra.mxu1 %v7229_v50 }
 0x123   : > { %6351 = vmatprep.subr.bf16.mxu1 %v7232_v8 }
 0x124   : > { %v1363_v36 = vpop.permute.xlu0 %1362  ;;  %v1319_v55 = vpop.permute.xlu1 %1318 }
 0x125   : > { %v1412_v29 = vsel %vm605_vm3, %v1387_v54, %v1363_v36  ;;  %v1393_v45 = vsel %vm579_vm2, %v7971_v0, %v1319_v55  ;;  %v7252_v36 = vld [vmem:[#allocation3 + $0x130] sm:$0xff]   ;;  %v7259_v54 = vld [vmem:[#allocation3 + $0xf8] sm:$0xff]  }
 0x126   : > { %v1454_v58 = vrot.slane %v1412_v29, 2  ;;  %6352 = vmatpush3.bf16.msra.mxu1 %v7233_v1 }
 0x127   : > { %6667 = vmatmul.mubr.msk.bf16.gmra.mrb[20].mxu0 %vm782_vm4, %v629_v25  ;;  %v7237_v25 = vld [vmem:[#allocation3 + $0xd0] sm:$0xff]  }
 0x128   : > { %6676 = vmatprep.mubr.msk.bf16.mxu0 %vm782_vm4, %v1443_v13  ;;  %v1317_v15 = vpop.permute.xlu0 %1316  ;;  %v1455_v46 = vsel %vm1440_vm5, %v1452_v49, %v1454_v58  ;;  %v1369_v20 = vpop.permute.xlu1 %1368  ;;  %v1457_v27 = vsel %vm1440_vm5, %v1454_v58, %v1456_v43  ;;  %v7236_v13 = vld [vmem:[#allocation3 + $0x110] sm:$0xff]  }
 0x129   : > { %v1391_v41 = vsel %vm579_vm2, %v7928_v57, %v1317_v15  ;;  %v1418_v51 = vsel %vm605_vm3, %v1393_v45, %v1369_v20  ;;  %6353 = vmatprep.subr.bf16.mxu1 %v7236_v13  ;;  %v1752_v15 = vlaneseq }
 0x12a   : > { %v1460_v10 = vrot.slane %v1418_v51, 2  ;;  %6354 = vmatpush3.bf16.msra.mxu1 %v7237_v25 }
 0x12b   : > { %6355 = vmatprep.subr.bf16.mxu1 %v7240_v39 }
 0x12c   : > { %v1367_v33 = vpop.permute.xlu0 %1366  ;;  %v1371_v56 = vpop.permute.xlu1 %1370 }
 0x12d   : > { %v1416_v34 = vsel %vm605_vm3, %v1391_v41, %v1367_v33 }
 0x12e   : > { %v1458_v57 = vrot.slane %v1416_v34, 2  ;;  %6356 = vmatpush3.bf16.msra.mxu1 %v7241_v16 }
 0x12f   : > { %6677 = vmatmul.mubr.msk.bf16.vlgmr.msra.gmra.mrb[0].mxu0 %vm782_vm4, %v1445_v14  ;;  %6357 = vmatprep.subr.bf16.mxu1 %v7244_v47  ;;  %v7248_v14 = vld [vmem:[#allocation3 + $0x128] sm:$0xff]  }
 0x130   : > { %6680 = vmatprep.mubr.msk.bf16.mxu0 %vm782_vm4, %v1447_v32  ;;  %v1321_v28 = vpop.permute.xlu0 %1320  ;;  %v1459_v21 = vsel %vm1440_vm5, %v1456_v43, %v1458_v57  ;;  %v1461_v63 = vsel %vm1440_vm5, %v1458_v57, %v1460_v10  ;;  %6437 = vmatpush3.bf16.msra.mxu0 %v7227_v5  ;;  %v7249_v32 = vld [vmem:[#allocation3 + $0xe8] sm:$0xff]  }
 0x131   : > { %v1396_v48 = vsel %vm579_vm2, %v5960_v4, %v1321_v28  ;;  %6438 = vmatprep.subr.bf16.mxu0 %v7230_v3 }
 0x132   : > { %v1420_v52 = vsel %vm605_vm3, %v1396_v48, %v1371_v56  ;;  %6358 = vmatpush3.bf16.msra.mxu1 %v7245_v38 }
 0x133   : > { %v1462_v19 = vrot.slane %v1420_v52, 2  ;;  %6359 = vmatprep.subr.bf16.mxu1 %v7248_v14 }
 0x134   : > { %6439 = vmatpush3.bf16.msra.mxu0 %v7231_v42 }
 0x135   : > { %v1463_v0 = vsel %vm1440_vm5, %v1460_v10, %v1462_v19  ;;  %6440 = vmatprep.subr.bf16.mxu0 %v7234_v11 }
 0x136   : > { %6360 = vmatpush3.bf16.msra.mxu1 %v7249_v32 }
 0x137   : > { %6681 = vmatmul.mubr.msk.bf16.gmra.mrb[4].mxu0 %vm782_vm4, %v1449_v62  ;;  %6361 = vmatprep.subr.bf16.mxu1 %v7252_v36  ;;  %v8248_v62 = vshrl.u32 %v1752_v15, 7 }
 0x138   : > { %6684 = vmatprep.mubr.msk.bf16.mxu0 %vm782_vm4, %v1451_v37  ;;  %6441 = vmatpush3.bf16.msra.mxu0 %v7235_v40 }
 0x139   : > { %6442 = vmatprep.subr.bf16.mxu0 %v7238_v60  ;;  %10320 = vst [vmem:[#allocation11_spill] sm:$0xff] %v8248_v62  ;;  %v8252_v37 = vadd.s32 16, %v8248_v62  ;;  %v1756_v29 = vadd.s32 24, %v8248_v62  ;;  %v8260_v31 = vmul.u32.u64.low 3817748708, %v8248_v62  ;;  %v8261_v58 = vmul.u32.u64.high 3817748708, %v8248_v62, %v8260_v31 }
 0x13a   : > { %6362 = vmatpush3.bf16.msra.mxu1 %v7253_v22  ;;  %v1754_v12 = vadd.s32 8, %v8248_v62  ;;  %v1757_v4 = vadd.s32 32, %v8248_v62  ;;  %v8279_v56 = vadd.s32 56, %v8248_v62  ;;  %v8300_v3 = vadd.s32 80, %v8248_v62 }
 0x13b   : > { %6363 = vmatprep.subr.bf16.mxu1 %v7256_v17  ;;  %v8256_v55 = vmul.u32.u64.low 3817748708, %v8252_v37  ;;  %v8257_v49 = vmul.u32.u64.high 3817748708, %v8252_v37, %v8256_v55  ;;  %v8263_v41 = vmul.u32.u64.low 3817748708, %v1756_v29  ;;  %v8264_v33 = vmul.u32.u64.high 3817748708, %v1756_v29, %v8263_v41 }
 0x13c   : > { %6443 = vmatpush3.bf16.msra.mxu0 %v7239_v24  ;;  %v1782_v43 = vshrl.u32 %v8261_v58, 4  ;;  %v8310_v11 = vadd.s32 64, %v8248_v62  ;;  %v8315_v40 = vmul.u32.u64.low 3817748708, %v8300_v3  ;;  %v8316_v13 = vmul.u32.u64.high 3817748708, %v8300_v3, %v8315_v40 }
 0x13d   : > { %6444 = vmatprep.subr.bf16.mxu0 %v7242_v61  ;;  %v1804_v20 = vshrl.u32 %v8257_v49, 4  ;;  %v1815_v45 = vshrl.u32 %v8264_v33, 4  ;;  %v8323_v24 = vadd.s32 88, %v8248_v62  ;;  %v8353_v36 = vadd.s32 112, %v8248_v62 }
 0x13e   : > { %6364 = vmatpush3.bf16.msra.mxu1 %v7259_v54  ;;  %v1783_v52 = vmul.u32 18, %v1782_v43  ;;  %v8361_v22 = vadd.s32 120, %v8248_v62  ;;  %v1892_v58 = vshrl.u32 %v8316_v13, 4  ;;  %v8386_v41 = vadd.s32 104, %v8248_v62 }
 0x13f   : > { %6685 = vmatmul.mubr.msk.bf16.gmra.mrb[8].mxu0 %vm782_vm4, %v1453_v44  ;;  %6700 = vmatprep.subr.bf16.mxu1 %v10294_v9  ;;  %v1759_v44 = vadd.s32 48, %v8248_v62  ;;  %v1805_v48 = vmul.u32 18, %v1804_v20  ;;  %v1816_v10 = vmul.u32 18, %v1815_v45 }
 0x140   : > { %6688 = vmatprep.mubr.msk.bf16.mxu0 %vm782_vm4, %v1455_v46  ;;  %6445 = vmatpush3.bf16.msra.mxu0 %v7243_v6  ;;  %v8268_v34 = vmul.u32.u64.low 3817748708, %v1754_v12  ;;  %v8269_v46 = vmul.u32.u64.high 3817748708, %v1754_v12, %v8268_v34  ;;  %v8303_v50 = vsub.s32 %v8248_v62, %v1783_v52 }
 0x141   : > { %6446 = vmatprep.subr.bf16.mxu0 %v7246_v59  ;;  %v8274_v28 = vmul.u32.u64.low 3817748708, %v1759_v44  ;;  %v8275_v57 = vmul.u32.u64.high 3817748708, %v1759_v44, %v8274_v28  ;;  %v8306_v2 = vsub.s32 %v1756_v29, %v1816_v10  ;;  %v8339_v59 = vadd.s32 72, %v8248_v62 }
 0x142   : > { %vm2029_vm8 = vcmp.ne.s32.totalorder %v8303_v50, 0  ;;  %vm2052_vm9 = vcmp.lt.s32.totalorder %v8303_v50, 0  ;;  %v8327_v39 = vadd.s32 18, %v8303_v50  ;;  %v10325_v34 = vmov 0 }
 0x143   : > { %v1848_v42 = vshrl.u32 %v8275_v57, 4  ;;  %vm2032_vm10 = vcmp.ne.s32.totalorder %v8306_v2, 0  ;;  %v8335_v6 = vmul.u32.u64.low 3817748708, %v8310_v11  ;;  %v8336_v47 = vmul.u32.u64.high 3817748708, %v8310_v11, %v8335_v6  ;;  %vm8392_vm15 = vmand %vm2052_vm9, %vm2029_vm8 }
 0x144   : > { %6447 = vmatpush3.bf16.msra.mxu0 %v7247_v18  ;;  %vm2055_vm11 = vcmp.lt.s32.totalorder %v8306_v2, 0  ;;  %v8343_v38 = vadd.s32 18, %v8306_v2  ;;  %v8371_v15 = vmul.u32.u64.low 3817748708, %v8339_v59  ;;  %v8372_v29 = vmul.u32.u64.high 3817748708, %v8339_v59, %v8371_v15 }
 0x145   : > { %6448 = vmatprep.subr.bf16.mxu0 %v7250_v26  ;;  %v1849_v25 = vmul.u32 18, %v1848_v42  ;;  %v2192_v57 = vstv %s8365_s17  ;;  %s10120_s17 = scalar_lea.vmem [#allocation6], %s5892_s13  ;;  %s7367_s13 = sshll.u32 %s7472_s9, 4  ;;  %s7368_s13 = int_to_ptr.vmem [resolvable:$false] %s7367_s13 }
 0x146   : > { %s5788_s27 = sshll.u32 %s10120_s17, 4  ;;  %s7369_s22 = scalar_lea.vmem %s7368_s13, 512  ;;  %s10212_s27 = int_to_ptr.vmem [resolvable:$true] %s5788_s27 }
 0x147   : > { %6689 = vmatmul.mubr.msk.bf16.gmra.mrb[12].mxu0 %vm782_vm4, %v1457_v27  ;;  %v8281_v27 = vmul.u32.u64.low 3817748708, %v1757_v4  ;;  %v8282_v51 = vmul.u32.u64.high 3817748708, %v1757_v4, %v8281_v27  ;;  %v8346_v26 = vsub.s32 %v1759_v44, %v1849_v25  ;;  %v1881_v25 = vshrl.u32 %v8372_v29, 4  ;;  %s7363_s23 = scalar_lea.vmem %s10212_s27, 256  ;;  %p7370_p6 = scmp.lt.s32.totalorder %s10212_s27, %s7368_s13 }
 0x148   : > { %6692 = vmatprep.mubr.msk.bf16.mxu0 %vm782_vm4, %v1459_v21  ;;  %6449 = vmatpush3.bf16.msra.mxu0 %v7251_v53  ;;  %v8285_v21 = vadd.s32 40, %v8248_v62  ;;  %v8349_v32 = vmul.u32.u64.low 3817748708, %v8323_v24  ;;  %v8350_v53 = vmul.u32.u64.high 3817748708, %v8323_v24, %v8349_v32  ;;  %v1870_v27 = vshrl.u32 %v8336_v47, 4  ;;  %p7364_p12 = scmp.ne.s32.totalorder %s10212_s27, %s7363_s23  ;;  %p7371_p7 = scmp.lt.s32.totalorder %s7369_s22, %s7363_s23 }
 0x149   : > { %6450 = vmatprep.subr.bf16.mxu0 %v7254_v35  ;;  %v1826_v1 = vshrl.u32 %v8282_v51, 4  ;;  %v8358_v35 = vadd.s32 96, %v8248_v62  ;;  %vm2035_vm2 = vcmp.ne.s32.totalorder %v8346_v26, 0  ;;  %vm2058_vm3 = vcmp.lt.s32.totalorder %v8346_v26, 0 }
 0x14a   : > { %v8296_v5 = vmul.u32.u64.low 3817748708, %v8285_v21  ;;  %v8297_v23 = vmul.u32.u64.high 3817748708, %v8285_v21, %v8296_v5  ;;  %v2121_v51 = vsel %vm8392_vm15, %v8327_v39, %v8303_v50  ;;  %v8440_v52 = vadd.s32 18, %v8346_v26  ;;  %p7365_p2 = pnand %p7364_p12, %p10528_p0  ;;  %p7372_p9 = por %p7371_p7, %p7370_p6 }
 0x14b   : > { %v1827_v18 = vmul.u32 18, %v1826_v1  ;;  %v1893_v5 = vmul.u32 18, %v1892_v58 }
 0x14c   : > { %6451 = vmatpush3.bf16.msra.mxu0 %v7255_v7  ;;  %v1837_v14 = vshrl.u32 %v8297_v23, 4  ;;  %v7279_v7 = vld [vmem:[#allocation3 + $0x1c0] sm:$0xff]   ;;  %v1903_v23 = vshrl.u32 %v8350_v53, 4  ;;  %v1882_v29 = vmul.u32 18, %v1881_v25  ;;  %p7366_p5 = pneg %p7365_p2 }
 0x14d   : > { %v8382_v49 = vsub.s32 %v1757_v4, %v1827_v18  ;;  %6523 = vmatprep.subr.bf16.mxu0 %v7279_v7  ;;  %v8415_v4 = vmul.u32.u64.low 3817748708, %v8361_v22  ;;  %v8416_v43 = vmul.u32.u64.high 3817748708, %v8361_v22, %v8415_v4  ;;  %v8489_v6 = vsub.s32 %v8300_v3, %v1893_v5 }
 0x14e   : > { %v1838_v31 = vmul.u32 18, %v1837_v14  ;;  %v1904_v47 = vmul.u32 18, %v1903_v23  ;;  %v8506_v3 = vadd.s32 152, %v8248_v62  ;;  %v8537_v23 = vsub.s32 %v8339_v59, %v1882_v29  ;;  %v8777_v29 = vld [vmem:[%s10277_s3] ss:$0 sm:$0xff]  ;;  %p7373_p11 = pnand %p7372_p9, %p7366_p5 }
 0x14f   : > { %6693 = vmatmul.mubr.msk.bf16.gmra.mrb[16].mxu0 %vm782_vm4, %v1461_v63  ;;  %v8289_v63 = vsub.s32 %v8252_v37, %v1805_v48  ;;  %vm2056_vm8 = vcmp.lt.s32.totalorder %v8382_v49, 0  ;;  %v8472_v1 = vadd.s32 18, %v8382_v49  ;;  %v1947_v32 = vshrl.u32 %v8416_v43, 4 }
 0x150   : > { %6696 = vmatprep.mubr.msk.bf16.mxu0 %vm782_vm4, %v1463_v0  ;;  %v8292_v0 = vmul.u32.u64.low 3817748708, %v8279_v56  ;;  %v8293_v30 = vmul.u32.u64.high 3817748708, %v8279_v56, %v8292_v0 }
 0x151   : > { %vm2031_vm6 = vcmp.ne.s32.totalorder %v8289_v63, 0  ;;  %vm2054_vm7 = vcmp.lt.s32.totalorder %v8289_v63, 0  ;;  %v8319_v60 = vadd.s32 18, %v8289_v63  ;;  %v10329_v0 = vmov 0 }
 0x152   : > { %v1859_v16 = vshrl.u32 %v8293_v30, 4  ;;  %vm8378_vm14 = vmand %vm2054_vm7, %vm2031_vm6  ;;  %v8459_v30 = vsub.s32 %v8285_v21, %v1838_v31  ;;  %vm2033_vm7 = vcmp.ne.s32.totalorder %v8382_v49, 0  ;;  %v1871_v21 = vmul.u32 18, %v1870_v27 }
 0x153   : > { %v2123_v28 = vsel %vm8378_vm14, %v8319_v60, %v8289_v63  ;;  %vm8454_vm6 = vmand %vm2058_vm3, %vm2035_vm2  ;;  %vm2062_vm2 = vcmp.lt.s32.totalorder %v8489_v6, 0  ;;  %v1948_v43 = vmul.u32 18, %v1947_v32  ;;  %v10362_v63 = vmov 0 }
 0x154   : > { %v1860_v54 = vmul.u32 18, %v1859_v16  ;;  %v10330_v0 = vsel %vm8454_vm6, 4294967295, %v10329_v0  ;;  %v8485_v16 = vadd.s32 128, %v8248_v62  ;;  %v8503_v15 = vsub.s32 %v8310_v11, %v1871_v21  ;;  %vm8543_vm1 = vmand %vm2056_vm8, %vm2033_vm7 }
 0x155   : > { %v8519_v11 = vadd.s32 18, %v8489_v6  ;;  %v8570_v32 = vsub.s32 %v8361_v22, %v1948_v43  ;;  %v8587_v22 = vadd.s32 168, %v8248_v62  ;;  %vm8676_vm15 = vcmp.lt.s32.totalorder %v2123_v28, 16 }
 0x156   : > { %v8432_v48 = vsub.s32 %v8279_v56, %v1860_v54  ;;  %v8500_v54 = vadd.s32 18, %v8459_v30  ;;  %vm2037_vm3 = vcmp.ne.s32.totalorder %v8503_v15, 0  ;;  %v8534_v5 = vadd.s32 18, %v8503_v15 }
 0x157   : > { %6697 = vmatmul.mubr.msk.bf16.gmra.mrb[20].mxu0 %vm782_vm4, %v1462_v19  ;;  %v1793_v19 = vshrl.u32 %v8269_v46, 4  ;;  %vm8406_vm4 = vmand %vm2055_vm11, %vm2032_vm10  ;;  %v8411_v46 = vmul.u32.u64.low 3817748708, %v8358_v35  ;;  %v8412_v20 = vmul.u32.u64.high 3817748708, %v8358_v35, %v8411_v46  ;;  %vm2034_vm11 = vcmp.ne.s32.totalorder %v8459_v30, 0 }
 0x158   : > { %v10326_v34 = vsel %vm8406_vm4, 4294967295, %v10325_v34  ;;  %vm2036_vm9 = vcmp.ne.s32.totalorder %v8432_v48, 0  ;;  %vm2059_vm10 = vcmp.lt.s32.totalorder %v8432_v48, 0  ;;  %v8481_v13 = vadd.s32 18, %v8432_v48 }
 0x159   : > { %v1794_v8 = vmul.u32 18, %v1793_v19  ;;  %v8443_v10 = vmul.u32.u64.low 3817748708, %v8386_v41  ;;  %v8444_v19 = vmul.u32.u64.high 3817748708, %v8386_v41, %v8443_v10  ;;  %v1914_v14 = vshrl.u32 %v8412_v20, 4  ;;  %vm8561_vm0 = vmand %vm2059_vm10, %vm2036_vm9 }
 0x15a   : > { %v8516_v46 = vadd.s32 136, %v8248_v62  ;;  %v8522_v20 = vsub.s32 %v8323_v24, %v1904_v47  ;;  %v8526_v27 = vmul.u32.u64.low 3817748708, %v8506_v3  ;;  %v8527_v10 = vmul.u32.u64.high 3817748708, %v8506_v3, %v8526_v27 }
 0x15b   : > { %v8330_v61 = vsub.s32 %v1754_v12, %v1794_v8  ;;  %v8399_v12 = vmul.u32.u64.low 3817748708, %v8353_v36  ;;  %v8400_v44 = vmul.u32.u64.high 3817748708, %v8353_v36, %v8399_v12  ;;  %v8469_v8 = vadd.s32 144, %v8248_v62 }
 0x15c   : > { %v1925_v31 = vshrl.u32 %v8444_v19, 4  ;;  %v8510_v58 = vmul.u32.u64.low 3817748708, %v8485_v16  ;;  %v8511_v12 = vmul.u32.u64.high 3817748708, %v8485_v16, %v8510_v58  ;;  %v1915_v4 = vmul.u32 18, %v1914_v14 }
 0x15d   : > { %vm2030_vm12 = vcmp.ne.s32.totalorder %v8330_v61, 0  ;;  %vm2053_vm13 = vcmp.lt.s32.totalorder %v8330_v61, 0  ;;  %v8368_v17 = vadd.s32 18, %v8330_v61  ;;  %v1936_v18 = vshrl.u32 %v8400_v44, 4 }
 0x15e   : > { %vm8427_vm5 = vmand %vm2053_vm13, %vm2030_vm12  ;;  %v8495_v53 = vmul.u32.u64.low 3817748708, %v8469_v8  ;;  %v8496_v7 = vmul.u32.u64.high 3817748708, %v8469_v8, %v8495_v53  ;;  %vm2057_vm12 = vcmp.lt.s32.totalorder %v8459_v30, 0  ;;  %vm2039_vm13 = vcmp.ne.s32.totalorder %v8489_v6, 0 }
 0x15f   : > { %v2122_v42 = vsel %vm8427_vm5, %v8368_v17, %v8330_v61  ;;  %v1937_v44 = vmul.u32 18, %v1936_v18  ;;  %v8530_v19 = vadd.s32 176, %v8248_v62  ;;  %v1926_v24 = vmul.u32 18, %v1925_v31  ;;  %vm8577_vm8 = vmand %vm2057_vm12, %vm2034_vm11 }
 0x160   : > { %v8551_v47 = vmul.u32.u64.low 3817748708, %v8516_v46  ;;  %v8552_v18 = vmul.u32.u64.high 3817748708, %v8516_v46, %v8551_v47  ;;  %v8555_v14 = vadd.s32 160, %v8248_v62  ;;  %v1980_v53 = vshrl.u32 %v8496_v7, 4  ;;  %vm8593_vm10 = vmand %vm2062_vm2, %vm2039_vm13 }
 0x161   : > { %v8548_v25 = vsub.s32 %v8353_v36, %v1937_v44  ;;  %v8567_v36 = vsub.s32 %v8358_v35, %v1915_v4  ;;  %v8583_v31 = vmul.u32.u64.low 3817748708, %v8530_v19  ;;  %v8584_v35 = vmul.u32.u64.high 3817748708, %v8530_v19, %v8583_v31 }
 0x162   : > { %v8600_v58 = vsub.s32 %v8386_v41, %v1926_v24  ;;  %v1958_v44 = vshrl.u32 %v8511_v12, 4  ;;  %vm10340_vm9 = vcmp.lt.s32.totalorder %v8503_v15, 0  ;;  %v10341_v4 = vmov 0 }
 0x163   : > { %vm8607_vm7 = vmand %vm10340_vm9, %vm2037_vm3  ;;  %v8614_v43 = vmul.u32.u64.low 3817748708, %v8555_v14  ;;  %v8615_v27 = vmul.u32.u64.high 3817748708, %v8555_v14, %v8614_v43  ;;  %vm8620_vm11 = vcmp.eq.s32.totalorder %v2192_v57, 1  ;;  %v10343_v41 = vmov 0 }
 0x164   : > { %10339 = vst [vmem:[#allocation12_spill] sm:$0xff] %v8600_v58  ;;  %v10342_v4 = vsel %vm8607_vm7, 4294967295, %v10341_v4  ;;  %v10344_v41 = vsel %vm8620_vm11, 4294967295, %v10343_v41  ;;  %vm10345_vm3 = vcmp.ne.s32.totalorder %v8522_v20, 0  ;;  %vm10346_vm9 = vcmp.lt.s32.totalorder %v8522_v20, 0 }
 0x165   : > { %vm8628_vm6 = vmand %vm10346_vm9, %vm10345_vm3  ;;  %vm2041_vm2 = vcmp.ne.s32.totalorder %v8567_v36, 0  ;;  %v1981_v24 = vmul.u32 18, %v1980_v53  ;;  %vm10349_vm12 = vcmp.ne.s32.totalorder %v8537_v23, 0  ;;  %vm10350_vm7 = vcmp.lt.s32.totalorder %v8537_v23, 0 }
 0x166   : > { %vm8639_vm11 = vmand %vm10350_vm7, %vm10349_vm12  ;;  %v1991_v47 = vshrl.u32 %v8527_v10, 4  ;;  %v8646_v31 = vmul.u32.u64.low 3817748708, %v8587_v22  ;;  %v8647_v43 = vmul.u32.u64.high 3817748708, %v8587_v22, %v8646_v31  ;;  %vm8654_vm9 = vcmp.lt.s32.totalorder %v2121_v51, 16 }
 0x167   : > { %v8659_v9 = vadd.s32 18, %v8522_v20  ;;  %vm10355_vm7 = vcmp.ne.s32.totalorder %v8548_v25, 0  ;;  %vm10356_vm12 = vcmp.lt.s32.totalorder %v8548_v25, 0  ;;  %v10357_v10 = vmov 0 }
 0x168   : > { %vm8665_vm3 = vmand %vm10356_vm12, %vm10355_vm7  ;;  %vm2042_vm4 = vcmp.ne.s32.totalorder %v8600_v58, 0  ;;  %vm2065_vm13 = vcmp.lt.s32.totalorder %v8600_v58, 0  ;;  %v1959_v50 = vmul.u32 18, %v1958_v44  ;;  %v2125_v33 = vsel %vm8543_vm1, %v8472_v1, %v8382_v49  ;;  %v8748_v44 = vld [vmem:[%s10276_s2] ss:$0 sm:$0xff] }
 0x169   : > { %v10358_v10 = vsel %vm8665_vm3, 4294967295, %v10357_v10  ;;  %v8685_v51 = vadd.s32 18, %v8537_v23  ;;  %v8688_v31 = vadd.s32 18, %v8548_v25  ;;  %vm10361_vm7 = vcmp.lt.s32.totalorder %v8567_v36, 0  ;;  %vm8740_vm5 = vmand %vm2065_vm13, %vm2042_vm4 }
 0x16a   : > { %vm8694_vm14 = vmand %vm10361_vm7, %vm2041_vm2  ;;  %v1969_v60 = vshrl.u32 %v8552_v18, 4  ;;  %vm8704_vm1 = vcmp.lt.s32.totalorder %v2122_v42, 16  ;;  %v8709_v49 = vadd.s32 18, %v8567_v36  ;;  %vm10366_vm12 = vcmp.ne.s32.totalorder %v8570_v32, 0 }
 0x16b   : > { %v10363_v63 = vsel %vm8694_vm14, 4294967295, %v10362_v63  ;;  %vm10367_vm2 = vcmp.lt.s32.totalorder %v8570_v32, 0  ;;  %v10368_v28 = vmov 0  ;;  %v8720_v45 = vadd.s32 18, %v8570_v32 }
 0x16c   : > { %vm8715_vm7 = vmand %vm10367_vm2, %vm10366_vm12  ;;  %v8723_v61 = vadd.s32 18, %v8600_v58  ;;  %v8726_v17 = vsub.s32 %v8469_v8, %v1981_v24  ;;  %v2126_v1 = vsel %vm8577_vm8, %v8500_v54, %v8459_v30  ;;  %v10370_v21 = vmov 0 }
 0x16d   : > { %v10369_v28 = vsel %vm8715_vm7, 4294967295, %v10368_v28  ;;  %v10371_v21 = vsel %vm8740_vm5, 4294967295, %v10370_v21  ;;  %v1992_v8 = vmul.u32 18, %v1991_v47  ;;  %v2024_v18 = vshrl.u32 %v8584_v35, 4 }
 0x16e   : > { %vm10372_vm4 = vnez %v10342_v4  ;;  %v8763_v35 = vsub.s32 %v8485_v16, %v1959_v50  ;;  %v1970_v54 = vmul.u32 18, %v1969_v60  ;;  %v2002_v30 = vshrl.u32 %v8615_v27, 4 }
 0x16f   : > { %v8794_v24 = vsub.s32 %v8506_v3, %v1992_v8  ;;  %v2025_v40 = vmul.u32 18, %v2024_v18  ;;  %v2013_v16 = vshrl.u32 %v8647_v43, 4  ;;  %v8804_v27 = vadd.s32 18, %v8726_v17 }
 0x170   : > { %vm10373_vm2 = vcmp.ge.s32.totalorder %v8252_v37, 18  ;;  %vm10374_vm8 = vnez %v10344_v41  ;;  %v8818_v8 = vsub.s32 %v8516_v46, %v1970_v54  ;;  %v2003_v18 = vmul.u32 18, %v2002_v30 }
 0x171   : > { %vm8812_vm5 = vmor %vm10374_vm8, %vm10373_vm2  ;;  %v8824_v37 = vadd.s32 18, %v8763_v35  ;;  %vm10377_vm7 = vnez %v10326_v34  ;;  %vm8839_vm13 = vcmp.lt.s32.totalorder %v2125_v33, 16  ;;  %v8845_v54 = vsub.s32 %v8530_v19, %v2025_v40 }
 0x172   : > { %v10378_v46 = vsel %vm10377_vm7, %v8343_v38, %v8306_v2  ;;  %vm10383_vm3 = vnez %v10330_v0  ;;  %vm8867_vm7 = vcmp.lt.s32.totalorder %v2126_v1, 16  ;;  %v8872_v33 = vadd.s32 18, %v8794_v24 }
 0x173   : > { %vm8835_vm12 = vcmp.lt.s32.totalorder %v10378_v46, 16  ;;  %v10384_v34 = vsel %vm10383_vm3, %v8440_v52, %v8346_v26  ;;  %v8877_v0 = vsub.s32 %v8555_v14, %v2003_v18  ;;  %vm10389_vm3 = vmand %vm8654_vm9, %vm10374_vm8  ;;  %v10390_v53 = vsel %vm8561_vm0, %v8481_v13, %v8432_v48 }
 0x174   : > { %vm8894_vm14 = vcmp.lt.s32.totalorder %v10390_v53, 16  ;;  %v10391_v18 = vmov 0  ;;  %vm10394_vm0 = vmand %vm8704_vm1, %vm10374_vm8  ;;  %vm10395_vm9 = vcmp.ne.s32.totalorder %v8726_v17, 0  ;;  %vm10396_vm2 = vcmp.lt.s32.totalorder %v8726_v17, 0 }
 0x175   : > { %v10392_v18 = vsel %vm8894_vm14, 4294967295, %v10391_v18  ;;  %vm8917_vm14 = vmand %vm10396_vm2, %vm10395_vm9  ;;  %vm10399_vm1 = vcmp.ne.s32.totalorder %v8763_v35, 0  ;;  %vm10413_vm2 = vcmp.ne.s32.totalorder %v8818_v8, 0  ;;  %v8975_v4 = vadd.s32 18, %v8877_v0 }
 0x176   : > { %v10423_v12 = vsel %vm8639_vm11, %v8685_v51, %v8537_v23  ;;  %vm10426_vm11 = vcmp.ne.s32.totalorder %v8877_v0, 0 }
 0x202   : > { %v6678_v42 = vpop.f32.mrb[0].mxu0 }
 0x203   : > { %v1678_v60 = vmul.f32 %v6678_v42, %v8748_v44  ;;  %v1552_v47 = vpop.f32.mrb[1].mxu0  ;;  %v7290_v42 = vld [vmem:[#allocation3 + $0x198] sm:$0xff]  }
 0x204   : > { %v1676_v50 = vmul.f32 %v8748_v44, %v1552_v47  ;;  %v6679_v56 = vpop.f32.mrb[2].mxu0 }
 0x205   : > { %v1708_v3 = vadd.f32 %v8777_v29, %v1678_v60  ;;  %v1555_v43 = vpop.f32.mrb[3].mxu0  ;;  %v1679_v62 = vmul.f32 %v6679_v56, %v8748_v44  ;;  %v10381_v56 = vmov 0 }
 0x206   : > { %v1706_v47 = vadd.f32 %v8777_v29, %v1676_v50  ;;  %v1677_v60 = vmul.f32 %v8748_v44, %v1555_v43  ;;  %v10382_v56 = vsel %vm8839_vm13, 4294967295, %v10381_v56  ;;  %v2265_v50 = vstv %s8798_s18 }
 0x207   : > { %v2014_v43 = vmul.u32 18, %v2013_v16  ;;  %v1731_v58 = vmax.f32 %v1708_v3, 0.0  ;;  %vm8863_vm13 = vcmp.lt.s32.totalorder %v10384_v34, 16  ;;  %v1709_v52 = vadd.f32 %v8777_v29, %v1679_v62 }
 0x208   : > { %v1729_v2 = vmax.f32 %v1706_v47, 0.0  ;;  %v1707_v38 = vadd.f32 %v8777_v29, %v1677_v60  ;;  %v8886_v3 = vadd.s32 18, %v8818_v8 }
 0x209   : > { %v8900_v62 = vsub.s32 %v8587_v22, %v2014_v43  ;;  %v1732_v43 = vmax.f32 %v1709_v52, 0.0  ;;  %v7280_v22 = vld [vmem:[#allocation3 + $0x180] sm:$0xff]  }
 0x20a   : > { %v2359_v26 = vsel %vm10389_vm3, %v1729_v2, 0.0  ;;  %v1730_v1 = vmax.f32 %v1707_v38, 0.0  ;;  %v6682_v16 = vpop.f32.mrb[4].mxu0  ;;  %vm10393_vm3 = vmand %vm8676_vm15, %vm8812_vm5  ;;  %vm2074_vm15 = vcmp.lt.s32.totalorder %v8845_v54, 0  ;;  %vm10400_vm5 = vcmp.lt.s32.totalorder %v8763_v35, 0 }
 0x20b   : > { %v6189_v47 = vpack.c.bf16 %v2359_v26, %v2359_v26  ;;  %v1682_v60 = vmul.f32 %v6682_v16, %v8748_v44  ;;  %v1568_v46 = vpop.f32.mrb[5].mxu0  ;;  %v2361_v2 = vsel %vm10393_vm3, %v1731_v58, 0.0  ;;  %vm8928_vm8 = vmand %vm10400_vm5, %vm10399_vm1  ;;  %v10403_v26 = vsel %vm8593_vm10, %v8519_v11, %v8489_v6 }
 0x20c   : > { %v2360_v48 = vsel %vm10394_vm0, %v1730_v1, 0.0  ;;  %v1680_v13 = vmul.f32 %v8748_v44, %v1568_v46  ;;  %v6683_v59 = vpop.f32.mrb[6].mxu0  ;;  %vm8940_vm9 = vcmp.lt.s32.totalorder %v10403_v26, 16  ;;  %vm10406_vm3 = vcmp.ne.s32.totalorder %v8794_v24, 0 }
 0x20d   : > { %2476 = vst [vmem:[#allocation2 + $0x4] sm:$0xf] %v6189_v47  ;;  %v6247_v58 = vpack.c.bf16 %v2361_v2, %v2360_v48  ;;  %v1712_v39 = vadd.f32 %v8777_v29, %v1682_v60  ;;  %v1683_v41 = vmul.f32 %v6683_v59, %v8748_v44  ;;  %v1571_v55 = vpop.f32.mrb[7].mxu0  ;;  %vm10407_vm0 = vcmp.lt.s32.totalorder %v8794_v24, 0 }
 0x20e   : > { %v1710_v38 = vadd.f32 %v8777_v29, %v1680_v13  ;;  %v1681_v34 = vmul.f32 %v8748_v44, %v1571_v55  ;;  %vm8948_vm1 = vmand %vm10407_vm0, %vm10406_vm3  ;;  %v10410_v6 = vsel %vm10372_vm4, %v8534_v5, %v8503_v15  ;;  %vm10414_vm3 = vcmp.lt.s32.totalorder %v8818_v8, 0  ;;  %v2505_v13 = vld [vmem:[#allocation2] sm:$0x8] }
 0x20f   : > { %6294 = vst [vmem:[#allocation2 + $0x8] sm:$0xff] %v6247_v58   ;;  %v1713_v7 = vadd.f32 %v8777_v29, %v1683_v41  ;;  %vm8959_vm10 = vcmp.lt.s32.totalorder %v10410_v6, 16  ;;  %vm8967_vm0 = vmand %vm10414_vm3, %vm10413_vm2  ;;  %v8972_v47 = vadd.s32 18, %v8845_v54  ;;  %v1735_v15 = vmax.f32 %v1712_v39, 0.0 }
 0x210   : > { %v1733_v5 = vmax.f32 %v1710_v38, 0.0  ;;  %v1711_v60 = vadd.f32 %v8777_v29, %v1681_v34  ;;  %v10417_v46 = vsel %vm8628_vm6, %v8659_v9, %v8522_v20  ;;  %vm10420_vm3 = vcmp.ne.s32.totalorder %v8845_v54, 0 }
 0x211   : > { %vm8984_vm2 = vcmp.lt.s32.totalorder %v10417_v46, 16  ;;  %vm8992_vm5 = vmand %vm2074_vm15, %vm10420_vm3  ;;  %vm9002_vm6 = vcmp.lt.s32.totalorder %v10423_v12, 16  ;;  %v2139_v20 = vsel %vm8917_vm14, %v8804_v27, %v8726_v17  ;;  %v2137_v48 = vsel %vm8928_vm8, %v8824_v37, %v8763_v35 }
 0x212   : > { %v2140_v57 = vsel %vm8948_vm1, %v8872_v33, %v8794_v24  ;;  %vm10427_vm15 = vcmp.lt.s32.totalorder %v8877_v0, 0  ;;  %v9027_v51 = vadd.s32 18, %v8900_v62  ;;  %v2362_v59 = vsel %vm8835_vm12, %v1732_v43, 0.0  ;;  %v6686_v55 = vpop.f32.mrb[8].mxu0 }
 0x213   : > { %vm9022_vm3 = vmand %vm10427_vm15, %vm10426_vm11  ;;  %vm10430_vm4 = vnez %v10382_v56  ;;  %v1736_v39 = vmax.f32 %v1713_v7, 0.0  ;;  %v1734_v41 = vmax.f32 %v1711_v60, 0.0  ;;  %v1686_v34 = vmul.f32 %v6686_v55, %v8748_v44  ;;  %v1584_v26 = vpop.f32.mrb[9].mxu0 }
 0x214   : > { %v2363_v58 = vsel %vm10430_vm4, %v1733_v5, 0.0  ;;  %v2138_v6 = vsel %vm8967_vm0, %v8886_v3, %v8818_v8  ;;  %v2143_v30 = vsel %vm8992_vm5, %v8972_v47, %v8845_v54  ;;  %vm10431_vm12 = vcmp.ne.s32.totalorder %v8900_v62, 0  ;;  %v6687_v60 = vpop.f32.mrb[10].mxu0  ;;  %v2506_v12 = vld [vmem:[#allocation2 + $0x4] sm:$0xf] }
 0x215   : > { %v6252_v38 = vpack.c.bf16 %v2363_v58, %v2362_v59  ;;  %vm10432_vm4 = vcmp.lt.s32.totalorder %v8900_v62, 0  ;;  %v2365_v43 = vsel %vm8863_vm13, %v1735_v15, 0.0  ;;  %v2364_v7 = vsel %vm8867_vm7, %v1734_v41, 0.0  ;;  %v1587_v40 = vpop.f32.mrb[11].mxu0 }
 0x216   : > { %vm9046_vm11 = vmand %vm10432_vm4, %vm10431_vm12  ;;  %v1684_v5 = vmul.f32 %v8748_v44, %v1584_v26  ;;  %v6257_v59 = vpack.c.bf16 %v2365_v43, %v2364_v7  ;;  %v1716_v58 = vadd.f32 %v8777_v29, %v1686_v34  ;;  %v1687_v55 = vmul.f32 %v6687_v60, %v8748_v44 }
 0x217   : > { %6295 = vst [vmem:[#allocation2 + $0x10] sm:$0xff] %v6252_v38   ;;  %v6009_v15 = vcombine.low %v2505_v13, %v2506_v12  ;;  %vm10435_vm13 = vnez %v10392_v18  ;;  %v1685_v26 = vmul.f32 %v8748_v44, %v1587_v40  ;;  %vm10436_vm7 = vnez %v10358_v10  ;;  %v2507_v18 = vld [vmem:[#allocation2 + $0x8] sm:$0xf] }
 0x218   : > { %v2366_v19 = vsel %vm10435_vm13, %v1736_v39, 0.0  ;;  %v1714_v41 = vadd.f32 %v8777_v29, %v1684_v5  ;;  %v10437_v46 = vsel %vm10436_vm7, %v8688_v31, %v8548_v25  ;;  %v2142_v13 = vsel %vm9046_vm11, %v9027_v51, %v8900_v62  ;;  %v2508_v39 = vld [vmem:[#allocation2 + $0xc] sm:$0xf]  ;;  %6296 = vst [vmem:[#allocation2 + $0x18] sm:$0xff] %v6257_v59  }
 0x219   : > { %vm9070_vm15 = vcmp.lt.s32.totalorder %v10437_v46, 16  ;;  %v1739_v34 = vmax.f32 %v1716_v58, 0.0  ;;  %v1717_v43 = vadd.f32 %v8777_v29, %v1687_v55  ;;  %vm10440_vm12 = vnez %v10363_v63  ;;  %v10449_v58 = vld [vmem:[#allocation12_spill] sm:$0xff] }
 0x21a   : > { %v10441_v25 = vsel %vm10440_vm12, %v8709_v49, %v8567_v36  ;;  %v9088_v31 = vcombine.low %v2506_v12, %v2507_v18  ;;  %v9090_v7 = vcombine.low %v2507_v18, %v2508_v39  ;;  %v1737_v5 = vmax.f32 %v1714_v41, 0.0  ;;  %v6690_v1 = vpop.f32.mrb[12].mxu0 }
 0x21b   : > { %vm9084_vm4 = vcmp.lt.s32.totalorder %v10441_v25, 16  ;;  %v1715_v60 = vadd.f32 %v8777_v29, %v1685_v26  ;;  %vm10444_vm13 = vnez %v10369_v28  ;;  %v3402_v36 = vshrl.u32 %v6009_v15, 16 }
 0x21c   : > { %v10445_v46 = vsel %vm10444_vm13, %v8720_v45, %v8570_v32  ;;  %v3405_v49 = vshll.u32 %v6009_v15, 16  ;;  %v2369_v12 = vsel %vm8940_vm9, %v1739_v34, 0.0  ;;  %v1740_v59 = vmax.f32 %v1717_v43, 0.0  ;;  %v1600_v34 = vpop.f32.mrb[13].mxu0 }
 0x21d   : > { %vm9098_vm7 = vcmp.lt.s32.totalorder %v10445_v46, 16  ;;  %vm10448_vm12 = vnez %v10371_v21  ;;  %v2584_v32 = vshrl.u32 %v9088_v31, 16  ;;  %v2587_v45 = vshll.u32 %v9088_v31, 16 }
 0x21e   : > { %v10450_v55 = vsel %vm10448_vm12, %v8723_v61, %v10449_v58  ;;  %v2367_v40 = vsel %vm8959_vm10, %v1737_v5, 0.0  ;;  %v1738_v15 = vmax.f32 %v1715_v60, 0.0  ;;  %vm2582_vm9 = vsmask.f32 3328  ;;  %v6691_v5 = vpop.f32.mrb[14].mxu0 }
 0x21f   : > { %vm9109_vm11 = vcmp.lt.s32.totalorder %v10450_v55, 16  ;;  %v9117_v41 = vrot.slane %v3402_v36, 3  ;;  %v9119_v21 = vrot.slane %v3405_v49, 4  ;;  %v6262_v26 = vpack.c.bf16 %v2367_v40, %v2366_v19  ;;  %v9127_v60 = vld [vmem:[#allocation2 + $0x10] sm:$0xf] }
 0x220   : > { %v2370_v61 = vsel %vm8984_vm2, %v1740_v59, 0.0  ;;  %v1690_v18 = vmul.f32 %v6690_v1, %v8748_v44  ;;  %v2586_v43 = vrot.slane %v2584_v32, 4  ;;  %v2368_v25 = vsel %vm9002_vm6, %v1738_v15, 0.0  ;;  %v1603_v59 = vpop.f32.mrb[15].mxu0 }
 0x221   : > { %v1688_v11 = vmul.f32 %v8748_v44, %v1600_v34  ;;  %v2589_v46 = vrot.slane %v2587_v45, 5  ;;  %v3408_v36 = vor.u32 %v9119_v21, %v9117_v41  ;;  %6297 = vst [vmem:[#allocation2 + $0x20] sm:$0xff] %v6262_v26   ;;  %v6267_v19 = vpack.c.bf16 %v2369_v12, %v2368_v25 }
 0x222   : > { %v1720_v53 = vadd.f32 %v8777_v29, %v1690_v18  ;;  %v1691_v49 = vmul.f32 %v6691_v5, %v8748_v44  ;;  %v9134_v58 = vcombine.low %v2508_v39, %v9127_v60  ;;  %v1689_v55 = vmul.f32 %v8748_v44, %v1603_v59 }
 0x223   : > { %v1718_v9 = vadd.f32 %v8777_v29, %v1688_v11  ;;  %vm9143_vm10 = vcmp.lt.s32.totalorder %v2139_v20, 16  ;;  %v2590_v12 = vor.u32 %v2589_v46, %v2586_v43  ;;  %v3410_v45 = vshrl.u32 %v9090_v7, 16  ;;  %6298 = vst [vmem:[#allocation2 + $0x28] sm:$0xff] %v6267_v19  }
 0x224   : > { %v1743_v39 = vmax.f32 %v1720_v53, 0.0  ;;  %v1721_v40 = vadd.f32 %v8777_v29, %v1691_v49  ;;  %vm9154_vm2 = vcmp.lt.s32.totalorder %v2137_v48, 16  ;;  %v2592_v17 = vshrl.u32 %v9134_v58, 16 }
 0x225   : > { %v2595_v27 = vshll.u32 %v9134_v58, 16  ;;  %v1741_v20 = vmax.f32 %v1718_v9, 0.0  ;;  %v1719_v15 = vadd.f32 %v8777_v29, %v1689_v55  ;;  %vm9166_vm14 = vcmp.lt.s32.totalorder %v2140_v57, 16  ;;  %v6694_v57 = vpop.f32.mrb[16].mxu0  ;;  %v9237_v9 = vld [vmem:[#allocation2 + $0x14] sm:$0xf] }
 0x226   : > { %v3419_v35 = vshrl.u32 %v2590_v12, 16  ;;  %v3422_v37 = vshll.u32 %v2590_v12, 16  ;;  %v2373_v48 = vsel %vm9070_vm15, %v1743_v39, 0.0  ;;  %v1744_v1 = vmax.f32 %v1721_v40, 0.0  ;;  %v1616_v34 = vpop.f32.mrb[17].mxu0 }
 0x227   : > { %vm9177_vm8 = vcmp.lt.s32.totalorder %v2138_v6, 16  ;;  %vm9183_vm1 = vcmp.eq.s32.totalorder %v2265_v50, 1  ;;  %vm2261_vm6 = vcmp.lt.s32.totalorder %v8555_v14, 162  ;;  %v2594_v33 = vrot.slane %v2592_v17, 4  ;;  %v6695_v25 = vpop.f32.mrb[18].mxu0 }
 0x228   : > { %v2597_v52 = vrot.slane %v2595_v27, 5  ;;  %v2371_v8 = vsel %vm9084_vm4, %v1741_v20, 0.0  ;;  %v1742_v3 = vmax.f32 %v1719_v15, 0.0  ;;  %vm3400_vm0 = vsmask.f32 4352  ;;  %v1619_v19 = vpop.f32.mrb[19].mxu0 }
 0x229   : > { %v3421_v6 = vrot.slane %v3419_v35, 3  ;;  %v3424_v38 = vrot.slane %v3422_v37, 4  ;;  %v6272_v50 = vpack.c.bf16 %v2371_v8, %v2370_v61  ;;  %v2374_v26 = vsel %vm9098_vm7, %v1744_v1, 0.0 }
 0x22a   : > { %v1694_v18 = vmul.f32 %v6694_v57, %v8748_v44  ;;  %vm9202_vm15 = vcmp.lt.s32.totalorder %v2143_v30, 16  ;;  %v9206_v43 = vor.u32 %v2597_v52, %v2594_v33  ;;  %v2372_v61 = vsel %vm9109_vm11, %v1742_v3, 0.0  ;;  %v9220_v30 = vld [vmem:[#allocation2 + $0x18] sm:$0xf]  ;;  %vm9270_vm11 = vmor %vm9183_vm1, %vm2261_vm6 }
 0x22b   : > { %v1692_v63 = vmul.f32 %v8748_v44, %v1616_v34  ;;  %v10465_v2 = vsel %vm9022_vm3, %v8975_v4, %v8877_v0  ;;  %v3425_v54 = vor.u32 %v3424_v38, %v3421_v6  ;;  %v3412_v47 = vrot.slane %v3410_v45, 3  ;;  %6299 = vst [vmem:[#allocation2 + $0x30] sm:$0xff] %v6272_v50   ;;  %v9261_v6 = vld [vmem:[#allocation2 + $0x20] sm:$0xf]  ;;  %vm2312_vm13 = vmand %vm9202_vm15, %vm9183_vm1 }
 0x22c   : > { %vm9216_vm4 = vcmp.lt.s32.totalorder %v10465_v2, 16  ;;  %v6277_v5 = vpack.c.bf16 %v2373_v48, %v2372_v61  ;;  %v1724_v28 = vadd.f32 %v8777_v29, %v1694_v18  ;;  %v1695_v46 = vmul.f32 %v6695_v25, %v8748_v44  ;;  %v6698_v48 = vpop.f32.mrb[20].mxu0  ;;  %v2737_v61 = vld [vmem:[#allocation2 + $0xc] sm:$0xe] }
 0x22d   : > { %v2599_v23 = vsel %vm2582_vm9, %v2590_v12, %v9206_v43  ;;  %v1722_v0 = vadd.f32 %v8777_v29, %v1692_v63  ;;  %v1693_v4 = vmul.f32 %v8748_v44, %v1619_v19  ;;  %vm9233_vm3 = vcmp.lt.s32.totalorder %v2142_v13, 16  ;;  %v1632_v3 = vpop.f32.mrb[21].mxu0  ;;  %v7281_v63 = vld [vmem:[#allocation3 + $0x1c8] sm:$0xff]   ;;  %vm2310_vm7 = vmand %vm9216_vm4, %vm9270_vm11 }
 0x22e   : > { %v3427_v49 = vshrl.u32 %v2599_v23, 16  ;;  %v3430_v59 = vshll.u32 %v2599_v23, 16  ;;  %6300 = vst [vmem:[#allocation2 + $0x38] sm:$0xff] %v6277_v5   ;;  %v1747_v55 = vmax.f32 %v1724_v28, 0.0  ;;  %v1725_v12 = vadd.f32 %v8777_v29, %v1695_v46  ;;  %v9282_v5 = vld [vmem:[#allocation2 + $0x1c] sm:$0xf]  ;;  %vm2311_vm12 = vmand %vm9233_vm3, %vm9183_vm1 }
 0x22f   : > { %v3413_v45 = vshll.u32 %v9090_v7, 16  ;;  %v9243_v56 = vcombine.low %v9237_v9, %v9220_v30  ;;  %v1745_v39 = vmax.f32 %v1722_v0, 0.0  ;;  %v1723_v62 = vadd.f32 %v8777_v29, %v1693_v4  ;;  %v7283_v23 = vld [vmem:[#allocation3 + $0x188] sm:$0xff]  }
 0x230   : > { %v3429_v51 = vrot.slane %v3427_v49, 3  ;;  %v3432_v13 = vrot.slane %v3430_v59, 4  ;;  %v2377_v40 = vsel %vm9143_vm10, %v1747_v55, 0.0  ;;  %v1748_v20 = vmax.f32 %v1725_v12, 0.0  ;;  %v7285_v55 = vld [vmem:[#allocation3 + $0x1d0] sm:$0xff]  }
 0x231   : > { %v3415_v15 = vrot.slane %v3413_v45, 4  ;;  %v2601_v35 = vshrl.u32 %v9243_v56, 16  ;;  %v2375_v37 = vsel %vm9154_vm2, %v1745_v39, 0.0  ;;  %v1746_v7 = vmax.f32 %v1723_v62, 0.0 }
 0x232   : > { %v9251_v1 = vor.u32 %v3432_v13, %v3429_v51  ;;  %v2604_v33 = vshll.u32 %v9243_v56, 16  ;;  %v6282_v52 = vpack.c.bf16 %v2375_v37, %v2374_v26  ;;  %v9256_v8 = vsel %vm9166_vm14, %v1748_v20, 0.0  ;;  %v6699_v26 = vpop.f32.mrb[22].mxu0  ;;  %v9326_v13 = vld [vmem:[#allocation2 + $0x28] sm:$0xf] }
 0x233   : > { %v1698_v32 = vmul.f32 %v6698_v48, %v8748_v44  ;;  %v9259_v57 = vor.u32 %v3415_v15, %v3412_v47  ;;  %v2376_v38 = vsel %vm9177_vm8, %v1746_v7, 0.0  ;;  %v1696_v50 = vmul.f32 %v8748_v44, %v1632_v3  ;;  %v1635_v2 = vpop.f32.mrb[23].mxu0 }
 0x234   : > { %v3434_v18 = vsel %vm3400_vm0, %v3425_v54, %v9251_v1  ;;  %v2603_v34 = vrot.slane %v2601_v35, 4  ;;  %6301 = vst [vmem:[#allocation2 + $0x40] sm:$0xff] %v6282_v52   ;;  %v6287_v16 = vpack.c.bf16 %v2377_v40, %v2376_v38  ;;  %v2606_v47 = vrot.slane %v2604_v33, 5  ;;  %v7288_v52 = vld [vmem:[#allocation3 + $0x1d8] sm:$0xff]  }
 0x235   : > { %v1728_v25 = vadd.f32 %v8777_v29, %v1698_v32  ;;  %3871 = vmatprep.mubr.bf16.mxu0 %v3434_v18  ;;  %v3417_v14 = vsel %vm3400_vm0, %v3408_v36, %v9259_v57  ;;  %v1726_v54 = vadd.f32 %v8777_v29, %v1696_v50  ;;  %v1697_v28 = vmul.f32 %v8748_v44, %v1635_v2  ;;  %v9349_v50 = vld [vmem:[#allocation2 + $0x30] sm:$0xf] }
 0x236   : > { %3872 = vmatmul.mubr.bf16.vlgmr.msra.gmra.mrb[24].mxu0 %v3417_v14  ;;  %v9292_v46 = vcombine.low %v9282_v5, %v9261_v6  ;;  %v9295_v41 = vcombine.low %v2737_v61, %v9127_v60  ;;  %6302 = vst [vmem:[#allocation2 + $0x48] sm:$0xff] %v6287_v16   ;;  %v9301_v36 = vor.u32 %v2606_v47, %v2603_v34  ;;  %v2757_v19 = vrot.slane %v2604_v33, 1  ;;  %v9336_v33 = vld [vmem:[#allocation2 + $0x24] sm:$0xf] }
 0x237   : > { %v1751_v21 = vmax.f32 %v1728_v25, 0.0  ;;  %v2864_v44 = vrot.slane %v2595_v27, 1  ;;  %6524 = vmatpush3.bf16.msra.mxu0 %v7280_v22  ;;  %v1749_v0 = vmax.f32 %v1726_v54, 0.0  ;;  %v1727_v4 = vadd.f32 %v8777_v29, %v1697_v28 }
 0x238   : > { %v2613_v49 = vshll.u32 %v9292_v46, 16  ;;  %v2751_v59 = vshrl.u32 %v9295_v41, 16  ;;  %6525 = vmatprep.subr.bf16.mxu0 %v7281_v63  ;;  %v2608_v29 = vsel %vm2582_vm9, %v9206_v43, %v9301_v36  ;;  %v2753_v27 = vshll.u32 %v9295_v41, 16  ;;  %v7287_v43 = vld [vmem:[#allocation3 + $0x190] sm:$0xff]   ;;  %v9356_v63 = vld [vmem:[#allocation2 + $0x2c] sm:$0xf] }
 0x239   : > { %v2381_v12 = vsel %vm2312_vm13, %v1751_v21, 0.0  ;;  %v2759_v45 = vor.u32 %v2757_v19, %v2601_v35  ;;  %v2379_v10 = vsel %vm2310_vm7, %v1749_v0, 0.0  ;;  %v1750_v62 = vmax.f32 %v1727_v4, 0.0 }
 0x23a   : > { %v6211_v39 = vpack.c.bf16 %v2381_v12, %v2381_v12  ;;  %v3462_v51 = vshrl.u32 %v2608_v29, 16  ;;  %v6292_v40 = vpack.c.bf16 %v2379_v10, %v9256_v8  ;;  %v3465_v20 = vshll.u32 %v2608_v29, 16  ;;  %v7264_v12 = vld [vmem:[#allocation3 + $0x140] sm:$0xff]  }
 0x23b   : > { %v2615_v15 = vrot.slane %v2613_v49, 5  ;;  %v2755_v37 = vrot.slane %v2753_v27, 1  ;;  %6526 = vmatpush3.bf16.msra.mxu0 %v7283_v23  ;;  %v2380_v11 = vsel %vm2311_vm12, %v1750_v62, 0.0  ;;  %v2760_v7 = vrot.slane %v2613_v49, 1 }
 0x23c   : > { %2498 = vst [vmem:[#allocation2 + $0x5c] sm:$0x3] %v6211_v39  ;;  %v3464_v35 = vrot.slane %v3462_v51, 3  ;;  %v2865_v48 = vor.u32 %v2864_v44, %v2592_v17  ;;  %6527 = vmatprep.subr.bf16.mxu0 %v7285_v55  ;;  %6303 = vst [vmem:[#allocation2 + $0x50] sm:$0xff] %v6292_v40   ;;  %v6210_v8 = vpack.c.bf16 %v2380_v11, %v2380_v11  ;;  %v3467_v32 = vrot.slane %v3465_v20, 4  ;;  %v7295_v39 = vld [vmem:[#allocation3 + $0x1e8] sm:$0xff]  }
 0x23d   : > { %v2756_v3 = vor.u32 %v2755_v37, %v2751_v59  ;;  %v9340_v53 = vcombine.low %v9336_v33, %v9326_v13  ;;  %vm10473_vm10 = vsmask.f32 7424  ;;  %v2610_v38 = vshrl.u32 %v9292_v46, 16  ;;  %v7293_v59 = vld [vmem:[#allocation3 + $0x1a0] sm:$0xff]  }
 0x23e   : > { %v9343_v24 = vsel %vm10473_vm10, %v2759_v45, %v2760_v7  ;;  %vm10474_vm2 = vmmov %vm10473_vm10  ;;  %v6011_v17 = vcombine.low %v9127_v60, %v9237_v9  ;;  %2497 = vst [vmem:[#allocation2 + $0x58] sm:$0xf] %v6210_v8  ;;  %v9351_v26 = vor.u32 %v3467_v32, %v3464_v35  ;;  %v7292_v9 = vld [vmem:[#allocation3 + $0x1e0] sm:$0xff]   ;;  %v9366_v23 = vcombine.low %v9356_v63, %v9349_v50 }
 0x23f   : > { %v2866_v22 = vsel %vm10474_vm2, %v2865_v48, %v2757_v19  ;;  %vm10475_vm14 = vmmov %vm10474_vm2  ;;  %v2875_v34 = vshll.u32 %v9343_v24, 16  ;;  %v2622_v61 = vshll.u32 %v9340_v53, 16  ;;  %6528 = vmatpush3.bf16.msra.mxu0 %v7287_v43  ;;  %v2762_v2 = vor.u32 %v2760_v7, %v2610_v38 }
 0x240   : > { %v2758_v18 = vsel %vm10475_vm14, %v2756_v3, %v2757_v19  ;;  %v2891_v60 = vshrl.u32 %v9343_v24, 16  ;;  %6529 = vmatprep.subr.bf16.mxu0 %v7288_v52  ;;  %v3469_v14 = vsel %vm3400_vm0, %v9251_v1, %v9351_v26  ;;  %v3453_v28 = vshrl.u32 %v6011_v17, 16  ;;  %vm10476_vm8 = vmmov %vm10474_vm2  ;;  %v9388_v3 = vld [vmem:[#allocation2 + $0x38] sm:$0xf] }
 0x241   : > { %v2868_v16 = vshrl.u32 %v2758_v18, 16  ;;  %v2870_v25 = vshll.u32 %v2758_v18, 16  ;;  %v2877_v47 = vrot.slane %v2875_v34, 1  ;;  %v2763_v54 = vrot.slane %v2622_v61, 1  ;;  %3879 = vmatprep.mubr.bf16.mxu0 %v3469_v14  ;;  %vm10477_vm1 = vmmov %vm10474_vm2  ;;  %v7268_v18 = vld [vmem:[#allocation3 + $0x148] sm:$0xff]  }
 0x242   : > { %v3456_v19 = vshll.u32 %v6011_v17, 16  ;;  %v2612_v44 = vrot.slane %v2610_v38, 4  ;;  %v3455_v49 = vrot.slane %v3453_v28, 3  ;;  %v2619_v1 = vshrl.u32 %v9340_v53, 16  ;;  %vm10478_vm6 = vmmov %vm10477_vm1  ;;  %v7299_v28 = vld [vmem:[#allocation3 + $0x1b0] sm:$0xff]  }
 0x243   : > { %v2872_v21 = vrot.slane %v2870_v25, 1  ;;  %v9369_v0 = vsel %vm10476_vm8, %v2762_v2, %v2763_v54  ;;  %v2893_v4 = vor.u32 %v2891_v60, %v2877_v47  ;;  %6530 = vmatpush3.bf16.msra.mxu0 %v7290_v42  ;;  %v2631_v10 = vshll.u32 %v9366_v23, 16  ;;  %vm10479_vm15 = vmmov %vm10477_vm1  ;;  %v9397_v60 = vld [vmem:[#allocation2 + $0x34] sm:$0xf] }
 0x244   : > { %v2895_v29 = vshll.u32 %v9369_v0, 16  ;;  %v3458_v27 = vrot.slane %v3456_v19, 4  ;;  %v9373_v45 = vor.u32 %v2615_v15, %v2612_v44  ;;  %6531 = vmatprep.subr.bf16.mxu0 %v7292_v9  ;;  %v2765_v62 = vor.u32 %v2763_v54, %v2619_v1  ;;  %v7296_v15 = vld [vmem:[#allocation3 + $0x1a8] sm:$0xff]   ;;  %vm10481_vm4 = vmmov %vm10477_vm1 }
 0x245   : > { %v2873_v55 = vor.u32 %v2872_v21, %v2868_v16  ;;  %v2907_v51 = vshrl.u32 %v9369_v0, 16  ;;  %v6012_v40 = vcombine.low %v9220_v30, %v9282_v5  ;;  %v2766_v48 = vrot.slane %v2631_v10, 1  ;;  %vm10482_vm5 = vmmov %vm10477_vm1 }
 0x246   : > { %v2897_v37 = vrot.slane %v2895_v29, 1  ;;  %v3459_v43 = vor.u32 %v3458_v27, %v3455_v49  ;;  %v2617_v11 = vsel %vm2582_vm9, %v9301_v36, %v9373_v45  ;;  %v7298_v36 = vld [vmem:[#allocation3 + $0x1f0] sm:$0xff]   ;;  %v10480_v34 = vmov 0.0   ;;  %v9412_v29 = vld [vmem:[#allocation2 + $0x40] sm:$0xf]  ;;  %vm10483_vm3 = vmmov %vm10477_vm1 }
 0x247   : > { %v2878_v20 = vsel %vm10477_vm1, %v2873_v55, %v2877_v47  ;;  %v3489_v35 = vshrl.u32 %v2617_v11, 16  ;;  %v3492_v7 = vshll.u32 %v2617_v11, 16  ;;  %v3480_v52 = vshrl.u32 %v6012_v40, 16  ;;  %6532 = vmatpush3.bf16.msra.mxu0 %v7293_v59  ;;  %v7271_v55 = vld [vmem:[#allocation3 + $0x150] sm:$0xff]   ;;  %vm10484_vm11 = vmmov %vm10477_vm1 }
 0x248   : > { %3222 = vmatprep.mubr.bf16.mxu1 %v2878_v20  ;;  %v2898_v30 = vsel %vm10478_vm6, %v2893_v4, %v2897_v37  ;;  %v3460_v5 = vsel %vm3400_vm0, %v9259_v57, %v3459_v43  ;;  %v2909_v8 = vor.u32 %v2907_v51, %v2897_v37  ;;  %v3483_v32 = vshll.u32 %v6012_v40, 16  ;;  %6533 = vmatprep.subr.bf16.mxu0 %v7295_v39  ;;  %v7304_v4 = vld [vmem:[#allocation3 + $0x1f8] sm:$0xff]   ;;  %vm10485_vm13 = vmmov %vm10477_vm1 }
 0x249   : > { %3223 = vmatmul.mubr.bf16.vlgmr.msra.gmra.mrb[0].mxu1 %v2866_v22  ;;  %v3491_v38 = vrot.slane %v3489_v35, 3  ;;  %v3494_v17 = vrot.slane %v3492_v7, 4  ;;  %v9391_v42 = vsel %vm10479_vm15, %v2765_v62, %v2766_v48  ;;  %v3482_v22 = vrot.slane %v3480_v52, 3  ;;  %3880 = vmatmul.mubr.bf16.gmra.mrb[28].mxu0 %v3460_v5  ;;  %v7305_v62 = vld [vmem:[#allocation3 + $0x1b8] sm:$0xff]   ;;  %vm10486_vm7 = vmmov %vm10477_vm1 }
 0x24a   : > { %6701 = vmatpush3.bf16.msra.mxu1 %v7264_v12  ;;  %3230 = vmatprep.mubr.bf16.mxu1 %v2898_v30  ;;  %v2911_v57 = vshll.u32 %v9391_v42, 16  ;;  %v3485_v16 = vrot.slane %v3483_v32, 4  ;;  %v2621_v25 = vrot.slane %v2619_v1, 4  ;;  %v2624_v2 = vrot.slane %v2622_v61, 5  ;;  %v9422_v37 = vld [vmem:[#allocation2 + $0x3c] sm:$0xf]  ;;  %vm10487_vm12 = vmmov %vm10477_vm1 }
 0x24b   : > { %6702 = vmatprep.subr.bf16.mxu1 %v10480_v34  ;;  %v3495_v9 = vor.u32 %v3494_v17, %v3491_v38  ;;  %v9401_v14 = vcombine.low %v9397_v60, %v9388_v3  ;;  %v2628_v47 = vshrl.u32 %v9366_v23, 16  ;;  %v2923_v54 = vshrl.u32 %v9391_v42, 16  ;;  %6534 = vmatpush3.bf16.msra.mxu0 %v7296_v15  ;;  %vm10488_vm10 = vmmov %vm10477_vm1 }
 0x24c   : > { %v2913_v21 = vrot.slane %v2911_v57, 1  ;;  %v9405_v19 = vor.u32 %v3485_v16, %v3482_v22  ;;  %v2625_v44 = vor.u32 %v2624_v2, %v2621_v25  ;;  %v6013_v61 = vcombine.low %v9261_v6, %v9336_v33  ;;  %6535 = vmatprep.subr.bf16.mxu0 %v7298_v36  ;;  %vm10489_vm2 = vmmov %vm10477_vm1 }
 0x24d   : > { %v3496_v49 = vsel %vm3400_vm0, %v9351_v26, %v3495_v9  ;;  %v2640_v1 = vshll.u32 %v9401_v14, 16  ;;  %v2768_v59 = vor.u32 %v2766_v48, %v2628_v47  ;;  %v2630_v12 = vrot.slane %v2628_v47, 4  ;;  %vm10491_vm14 = vmmov %vm10477_vm1 }
 0x24e   : > { %6703 = vmatpush3.bf16.msra.mxu1 %v7268_v18  ;;  %3887 = vmatprep.mubr.bf16.mxu0 %v3496_v49  ;;  %v2914_v27 = vsel %vm10481_vm4, %v2909_v8, %v2913_v21  ;;  %v3487_v39 = vsel %vm3400_vm0, %v3459_v43, %v9405_v19  ;;  %v2626_v6 = vsel %vm2582_vm9, %v9373_v45, %v2625_v44  ;;  %v3507_v20 = vshrl.u32 %v6013_v61, 16  ;;  %v9455_v49 = vld [vmem:[#allocation2 + $0x44] sm:$0xf]  ;;  %vm10492_vm8 = vmmov %vm10477_vm1 }
 0x24f   : > { %v2925_v33 = vor.u32 %v2923_v54, %v2913_v21  ;;  %v3516_v26 = vshrl.u32 %v2626_v6, 16  ;;  %v3519_v51 = vshll.u32 %v2626_v6, 16  ;;  %v2769_v40 = vrot.slane %v2640_v1, 1  ;;  %6704 = vmatprep.subr.bf16.mxu1 %v10480_v34  ;;  %6536 = vmatpush3.bf16.msra.mxu0 %v7299_v28  ;;  %v9447_v54 = vld [vmem:[#allocation2 + $0x48] sm:$0xf]  ;;  %vm10493_vm6 = vmmov %vm10477_vm1 }
 0x250   : > { %v3510_v11 = vshll.u32 %v6013_v61, 16  ;;  %v2633_v43 = vrot.slane %v2631_v10, 5  ;;  %v9429_v45 = vcombine.low %v9422_v37, %v9412_v29  ;;  %v2637_v15 = vshrl.u32 %v9401_v14, 16  ;;  %6537 = vmatprep.subr.bf16.mxu0 %v7304_v4  ;;  %vm10494_vm4 = vmmov %vm10477_vm1 }
 0x251   : > { %3231 = vmatmul.mubr.bf16.gmra.mrb[4].mxu1 %v9343_v24  ;;  %v3518_v35 = vrot.slane %v3516_v26, 3  ;;  %v3521_v7 = vrot.slane %v3519_v51, 4  ;;  %v9433_v48 = vsel %vm10482_vm5, %v2768_v59, %v2769_v40  ;;  %v3509_v52 = vrot.slane %v3507_v20, 3  ;;  %v7274_v24 = vld [vmem:[#allocation3 + $0x158] sm:$0xff]   ;;  %3888 = vmatmul.mubr.bf16.gmra.mrb[32].mxu0 %v3487_v39 }
 0x252   : > { %3238 = vmatprep.mubr.bf16.mxu1 %v2914_v27  ;;  %6705 = vmatpush3.bf16.msra.mxu1 %v7271_v55  ;;  %v2927_v30 = vshll.u32 %v9433_v48, 16  ;;  %v3512_v10 = vrot.slane %v3510_v11, 4  ;;  %v2634_v5 = vor.u32 %v2633_v43, %v2630_v12  ;;  %v2649_v8 = vshll.u32 %v9429_v45, 16 }
 0x253   : > { %6706 = vmatprep.subr.bf16.mxu1 %v10480_v34  ;;  %v3522_v32 = vor.u32 %v3521_v7, %v3518_v35  ;;  %v2771_v36 = vor.u32 %v2769_v40, %v2637_v15  ;;  %v6014_v38 = vcombine.low %v9326_v13, %v9356_v63  ;;  %6538 = vmatpush3.bf16.msra.mxu0 %v7305_v62  ;;  %v7277_v13 = vld [vmem:[#allocation3 + $0x160] sm:$0xff]   ;;  %v2939_v21 = vshrl.u32 %v9433_v48, 16 }
 0x254   : > { %v2929_v17 = vrot.slane %v2927_v30, 1  ;;  %v9440_v18 = vor.u32 %v3512_v10, %v3509_v52  ;;  %v2635_v22 = vsel %vm2582_vm9, %v2625_v44, %v2634_v5  ;;  %v2772_v57 = vrot.slane %v2649_v8, 1  ;;  %6804 = vmatprep.subr.bf16.mxu0 %v10480_v34  ;;  %v9477_v52 = vld [vmem:[#allocation2 + $0x4c] sm:$0xff]  }
 0x255   : > { %v3523_v16 = vsel %vm3400_vm0, %v3495_v9, %v3522_v32  ;;  %v3543_v25 = vshrl.u32 %v2635_v22, 16  ;;  %v3546_v2 = vshll.u32 %v2635_v22, 16  ;;  %v3534_v47 = vshrl.u32 %v6014_v38, 16 }
 0x256   : > { %6707 = vmatpush3.bf16.msra.mxu1 %v7274_v24  ;;  %3895 = vmatprep.mubr.bf16.mxu0 %v3523_v16  ;;  %v2930_v63 = vsel %vm10483_vm3, %v2925_v33, %v2929_v17  ;;  %v9451_v28 = vsel %vm10484_vm11, %v2771_v36, %v2772_v57  ;;  %v3537_v59 = vshll.u32 %v6014_v38, 16  ;;  %v2639_v55 = vrot.slane %v2637_v15, 4  ;;  %vm10497_vm11 = vmmov %vm10477_vm1 }
 0x257   : > { %v3545_v44 = vrot.slane %v3543_v25, 3  ;;  %v3548_v61 = vrot.slane %v3546_v2, 4  ;;  %v2943_v4 = vshll.u32 %v9451_v28, 16  ;;  %v3536_v9 = vrot.slane %v3534_v47, 3  ;;  %6708 = vmatprep.subr.bf16.mxu1 %v10480_v34 }
 0x258   : > { %v2642_v12 = vrot.slane %v2640_v1, 5  ;;  %v9463_v27 = vcombine.low %v9455_v49, %v9447_v54  ;;  %v3514_v39 = vsel %vm3400_vm0, %v9405_v19, %v9440_v18  ;;  %v2646_v62 = vshrl.u32 %v9429_v45, 16 }
 0x259   : > { %3239 = vmatmul.mubr.bf16.gmra.mrb[8].mxu1 %v9369_v0  ;;  %v3549_v6 = vor.u32 %v3548_v61, %v3545_v44  ;;  %v2945_v33 = vrot.slane %v2943_v4, 1  ;;  %v7286_v0 = vld [vmem:[#allocation3 + $0x168] sm:$0xff]   ;;  %3896 = vmatmul.mubr.bf16.gmra.mrb[36].mxu0 %v3514_v39  ;;  %v3539_v26 = vrot.slane %v3537_v59, 4  ;;  %v6015_v40 = vcombine.low %v9349_v50, %v9397_v60  ;;  %v7294_v50 = vld [vmem:[#allocation3 + $0x170] sm:$0xff]   ;;  %v7303_v44 = vld [vmem:[#allocation3 + $0x178] sm:$0xff]  }
 0x25a   : > { %3246 = vmatprep.mubr.bf16.mxu1 %v2930_v63  ;;  %6709 = vmatpush3.bf16.msra.mxu1 %v7277_v13  ;;  %v2643_v51 = vor.u32 %v2642_v12, %v2639_v55  ;;  %v2658_v1 = vshll.u32 %v9463_v27, 16  ;;  %v2941_v11 = vor.u32 %v2939_v21, %v2929_v17  ;;  %v2774_v19 = vor.u32 %v2772_v57, %v2646_v62  ;;  %v9497_v59 = vld [vmem:[#allocation2 + $0x54] ss:$0 sps:$4 sm:$0x11]  }
 0x25b   : > { %6710 = vmatprep.subr.bf16.mxu1 %v10480_v34  ;;  %v3550_v20 = vsel %vm3400_vm0, %v3522_v32, %v3549_v6  ;;  %v9474_v43 = vor.u32 %v3539_v26, %v3536_v9  ;;  %v3561_v7 = vshrl.u32 %v6015_v40, 16  ;;  %v3564_v10 = vshll.u32 %v6015_v40, 16 }
 0x25c   : > { %3903 = vmatprep.mubr.bf16.mxu0 %v3550_v20  ;;  %v2644_v15 = vsel %vm2582_vm9, %v2634_v5, %v2643_v51  ;;  %v2775_v35 = vrot.slane %v2658_v1, 1  ;;  %v2648_v36 = vrot.slane %v2646_v62, 4  ;;  %v2946_v60 = vsel %vm10485_vm13, %v2941_v11, %v2945_v33 }
 0x25d   : > { %v3570_v24 = vshrl.u32 %v2644_v15, 16  ;;  %v3573_v30 = vshll.u32 %v2644_v15, 16  ;;  %v2955_v38 = vshrl.u32 %v9451_v28, 16  ;;  %v2651_v5 = vrot.slane %v2649_v8, 5 }
 0x25e   : > { %6711 = vmatpush3.bf16.msra.mxu1 %v7286_v0  ;;  %v9481_v32 = vsel %vm10486_vm7, %v2774_v19, %v2775_v35  ;;  %v3563_v16 = vrot.slane %v3561_v7, 3  ;;  %v3566_v25 = vrot.slane %v3564_v10, 4  ;;  %v2655_v47 = vshrl.u32 %v9463_v27, 16  ;;  %vm10498_vm7 = vmmov %vm10477_vm1 }
 0x25f   : > { %6712 = vmatprep.subr.bf16.mxu1 %v10480_v34  ;;  %v3572_v17 = vrot.slane %v3570_v24, 3  ;;  %v3575_v22 = vrot.slane %v3573_v30, 4  ;;  %v2959_v57 = vshll.u32 %v9481_v32, 16  ;;  %v2652_v2 = vor.u32 %v2651_v5, %v2648_v36 }
 0x260   : > { %v2779_v13 = vshll.u32 %v9477_v52, 16  ;;  %v3541_v8 = vsel %vm3400_vm0, %v9440_v18, %v9474_v43  ;;  %v6016_v21 = vcombine.low %v9388_v3, %v9422_v37  ;;  %v2957_v61 = vor.u32 %v2955_v38, %v2945_v33 }
 0x261   : > { %3247 = vmatmul.mubr.bf16.gmra.mrb[12].mxu1 %v9391_v42  ;;  %v3576_v63 = vor.u32 %v3575_v22, %v3572_v17  ;;  %3904 = vmatmul.mubr.bf16.gmra.mrb[40].mxu0 %v3541_v8  ;;  %v2653_v42 = vsel %vm2582_vm9, %v2643_v51, %v2652_v2  ;;  %v2777_v4 = vor.u32 %v2775_v35, %v2655_v47  ;;  %v2961_v12 = vrot.slane %v2959_v57, 1 }
 0x262   : > { %3254 = vmatprep.mubr.bf16.mxu1 %v2946_v60  ;;  %6713 = vmatpush3.bf16.msra.mxu1 %v7294_v50  ;;  %v2781_v9 = vrot.slane %v2779_v13, 1  ;;  %v3597_v18 = vshrl.u32 %v2653_v42, 16  ;;  %v2657_v39 = vrot.slane %v2655_v47, 4  ;;  %v3567_v62 = vor.u32 %v3566_v25, %v3563_v16  ;;  %v4050_v47 = vld [vmem:[#allocation2 + $0x18] sm:$0xf] }
 0x263   : > { %6714 = vmatprep.subr.bf16.mxu1 %v10480_v34  ;;  %v3577_v55 = vsel %vm3400_vm0, %v3549_v6, %v3576_v63  ;;  %v3600_v3 = vshll.u32 %v2653_v42, 16  ;;  %v3588_v0 = vshrl.u32 %v6016_v21, 16  ;;  %v3591_v26 = vshll.u32 %v6016_v21, 16 }
 0x264   : > { %3911 = vmatprep.mubr.bf16.mxu0 %v3577_v55  ;;  %v9502_v37 = vsel %vm10487_vm12, %v2777_v4, %v2781_v9  ;;  %v3599_v33 = vrot.slane %v3597_v18, 3  ;;  %v2660_v51 = vrot.slane %v2658_v1, 5  ;;  %v2783_v20 = vshrl.u32 %v9477_v52, 16 }
 0x265   : > { %v3602_v40 = vrot.slane %v3600_v3, 4  ;;  %v2787_v11 = vshll.u32 %v9497_v59, 16  ;;  %v2962_v6 = vsel %vm10488_vm10, %v2957_v61, %v2961_v12  ;;  %v2975_v19 = vshll.u32 %v9502_v37, 16  ;;  %vm10500_vm10 = vmmov %vm10477_vm1 }
 0x266   : > { %6715 = vmatpush3.bf16.msra.mxu1 %v7303_v44  ;;  %v2661_v15 = vor.u32 %v2660_v51, %v2657_v39  ;;  %v2785_v7 = vor.u32 %v2783_v20, %v2781_v9  ;;  %v6017_v1 = vcombine.low %v9412_v29, %v9455_v49  ;;  %v3568_v30 = vsel %vm3400_vm0, %v9474_v43, %v3567_v62  ;;  %v9522_v44 = vld [vmem:[#allocation2 + $0x1c] sm:$0xff]   ;;  %v4068_v9 = vld [vmem:[#allocation2 + $0x14] sm:$0xc]  ;;  %v9528_v39 = vld [vmem:[#allocation2 + $0x24] sm:$0xff]  }
 0x267   : > { %6752 = vmatprep.subr.bf16.mxu1 %v10480_v34  ;;  %v3603_v35 = vor.u32 %v3602_v40, %v3599_v33  ;;  %v2789_v24 = vrot.slane %v2787_v11, 1  ;;  %v3590_v10 = vrot.slane %v3588_v0, 3  ;;  %v3593_v36 = vrot.slane %v3591_v26, 4 }
 0x268   : > { %v2662_v50 = vsel %vm2582_vm9, %v2652_v2, %v2661_v15  ;;  %v3615_v17 = vshrl.u32 %v6017_v1, 16  ;;  %v3618_v22 = vshll.u32 %v6017_v1, 16  ;;  %v2971_v29 = vshrl.u32 %v9481_v32, 16  ;;  %vm10490_vm9 = vmmov %vm10477_vm1 }
 0x269   : > { %3255 = vmatmul.mubr.bf16.gmra.mrb[16].mxu1 %v9433_v48  ;;  %3912 = vmatmul.mubr.bf16.gmra.mrb[44].mxu0 %v3568_v30  ;;  %v3604_v60 = vsel %vm3400_vm0, %v3576_v63, %v3603_v35  ;;  %v3624_v38 = vshrl.u32 %v2662_v50, 16  ;;  %v3627_v5 = vshll.u32 %v2662_v50, 16  ;;  %v9517_v48 = vsel %vm10489_vm2, %v2785_v7, %v2789_v24 }
 0x26a   : > { %3262 = vmatprep.mubr.bf16.mxu1 %v2962_v6  ;;  %3919 = vmatprep.mubr.bf16.mxu0 %v3604_v60  ;;  %v2977_v49 = vrot.slane %v2975_v19, 1  ;;  %v3594_v16 = vor.u32 %v3593_v36, %v3590_v10  ;;  %v2991_v25 = vshll.u32 %v9517_v48, 16  ;;  %v3651_v2 = vshrl.u32 %v2661_v15, 16 }
 0x26b   : > { %v3626_v57 = vrot.slane %v3624_v38, 3  ;;  %v3629_v43 = vrot.slane %v3627_v5, 4  ;;  %v2973_v13 = vor.u32 %v2971_v29, %v2961_v12  ;;  %v2987_v63 = vshrl.u32 %v9502_v37, 16 }
 0x26c   : > { %v3654_v21 = vshll.u32 %v2661_v15, 16  ;;  %v3617_v61 = vrot.slane %v3615_v17, 3  ;;  %v3620_v42 = vrot.slane %v3618_v22, 4  ;;  %v6018_v4 = vcombine.low %v9447_v54, %v9447_v54  ;;  %v9538_v15 = vld [vmem:[#allocation2 + $0x2c] sm:$0xff]   ;;  %v4049_v22 = vld [vmem:[#allocation2 + $0x14] sm:$0xe] }
 0x26d   : > { %v3630_v8 = vor.u32 %v3629_v43, %v3626_v57  ;;  %v2978_v55 = vsel %vm10490_vm9, %v2973_v13, %v2977_v49  ;;  %v2989_v18 = vor.u32 %v2987_v63, %v2977_v49  ;;  %v9530_v12 = vcombine.low %v4068_v9, %v4050_v47  ;;  %vm10502_vm9 = vmmov %vm10477_vm1 }
 0x26e   : > { %v3595_v3 = vsel %vm3400_vm0, %v3567_v62, %v3594_v16  ;;  %v2993_v33 = vrot.slane %v2991_v25, 1  ;;  %v3653_v0 = vrot.slane %v3651_v2, 3  ;;  %v2791_v26 = vshrl.u32 %v9497_v59, 16 }
 0x26f   : > { %v3631_v54 = vsel %vm3400_vm0, %v3603_v35, %v3630_v8  ;;  %v3656_v51 = vrot.slane %v3654_v21, 4  ;;  %v4129_v40 = vshll.u32 %v9522_v44, 16  ;;  %v3621_v20 = vor.u32 %v3620_v42, %v3617_v61 }
 0x270   : > { %v3642_v11 = vshrl.u32 %v6018_v4, 16  ;;  %v3645_v6 = vshll.u32 %v6018_v4, 16  ;;  %v4122_v19 = vshrl.u32 %v9530_v12, 16  ;;  %v4133_v59 = vshrl.u32 %v9522_v44, 16 }
 0x271   : > { %3263 = vmatmul.mubr.bf16.gmra.mrb[20].mxu1 %v9451_v28  ;;  %3920 = vmatmul.mubr.bf16.gmra.mrb[48].mxu0 %v3595_v3  ;;  %v4124_v28 = vshll.u32 %v9530_v12, 16  ;;  %v4131_v7 = vrot.slane %v4129_v40, 1  ;;  %v4137_v24 = vshll.u32 %v9528_v39, 16  ;;  %v2994_v35 = vsel %vm10491_vm14, %v2989_v18, %v2993_v33  ;;  %vm10503_vm14 = vmmov %vm10477_vm1 }
 0x272   : > { %3270 = vmatprep.mubr.bf16.mxu1 %v2978_v55  ;;  %3927 = vmatprep.mubr.bf16.mxu0 %v3631_v54  ;;  %v3003_v1 = vshrl.u32 %v9517_v48, 16  ;;  %v3007_v30 = vshll.u32 %v2791_v26, 16  ;;  %v3657_v10 = vor.u32 %v3656_v51, %v3653_v0  ;;  %v3622_v38 = vsel %vm3400_vm0, %v3594_v16, %v3621_v20  ;;  %v9559_v51 = vld [vmem:[#allocation2 + $0x34] sm:$0xff]  }
 0x273   : > { %v4126_v62 = vrot.slane %v4124_v28, 1  ;;  %v4135_v50 = vor.u32 %v4133_v59, %v4131_v7  ;;  %v4139_v60 = vrot.slane %v4137_v24, 1  ;;  %v3644_v5 = vrot.slane %v3642_v11, 3 }
 0x274   : > { %v3647_v17 = vrot.slane %v3645_v6, 4  ;;  %v4145_v29 = vshll.u32 %v9538_v15, 16  ;;  %v6081_v43 = vcombine.low %v4049_v22, %v4050_v47  ;;  %v4141_v25 = vshrl.u32 %v9528_v39, 16 }
 0x275   : > { %v4127_v36 = vor.u32 %v4126_v62, %v4122_v19  ;;  %v4140_v57 = vsel %vm10477_vm1, %v4135_v50, %v4139_v60  ;;  %v3658_v16 = vsel %vm3400_vm0, %v3630_v8, %v3657_v10  ;;  %v3005_v42 = vor.u32 %v3003_v1, %v2993_v33 }
 0x276   : > { %v4293_v63 = vshrl.u32 %v4140_v57, 16  ;;  %v4296_v21 = vshll.u32 %v4140_v57, 16  ;;  %v4143_v61 = vor.u32 %v4141_v25, %v4139_v60  ;;  %v3648_v9 = vor.u32 %v3647_v17, %v3644_v5 }
 0x277   : > { %v4132_v49 = vsel %vm10492_vm8, %v4127_v36, %v4131_v7  ;;  %v3009_v0 = vrot.slane %v3007_v30, 1  ;;  %v4273_v26 = vshrl.u32 %v6081_v43, 16  ;;  %v4276_v54 = vshll.u32 %v6081_v43, 16 }
 0x278   : > { %v4285_v2 = vshrl.u32 %v4132_v49, 16  ;;  %v4288_v13 = vshll.u32 %v4132_v49, 16  ;;  %v4295_v4 = vrot.slane %v4293_v63, 1  ;;  %v4298_v47 = vrot.slane %v4296_v21, 2 }
 0x279   : > { %3271 = vmatmul.mubr.bf16.gmra.mrb[24].mxu1 %v9481_v32  ;;  %3928 = vmatmul.mubr.bf16.gmra.mrb[52].mxu0 %v3622_v38  ;;  %v4147_v32 = vrot.slane %v4145_v29, 1  ;;  %v2797_v8 = vrot.slane %v9243_v56, 1  ;;  %vm4271_vm15 = vsmask.f32 6400  ;;  %v3010_v33 = vsel %vm10494_vm4, %v3005_v42, %v3009_v0  ;;  %v9585_v42 = vld [vmem:[#allocation2 + $0x44] sm:$0xff]   ;;  %vm10506_vm4 = vmmov %vm10477_vm1 }
 0x27a   : > { %3278 = vmatprep.mubr.bf16.mxu1 %v2994_v35  ;;  %3935 = vmatprep.mubr.bf16.mxu0 %v3658_v16  ;;  %v4287_v55 = vrot.slane %v4285_v2, 1  ;;  %v4290_v18 = vrot.slane %v4288_v13, 2  ;;  %v4299_v28 = vor.u32 %v4298_v47, %v4295_v4  ;;  %v4280_v19 = vrot.slane %v4133_v59, 1  ;;  %v9569_v59 = vld [vmem:[#allocation2 + $0x3c] sm:$0xff]  }
 0x27b   : > { %v4148_v3 = vsel %vm10493_vm6, %v4143_v61, %v4147_v32  ;;  %v4281_v62 = vrot.slane %v4129_v40, 2  ;;  %v2796_v7 = vrot.slane %v9295_v41, 1  ;;  %v3649_v35 = vsel %vm3400_vm0, %v3621_v20, %v3648_v9  ;;  %v9587_v4 = vld [vmem:[#allocation3 + $0x200] sm:$0xff]   ;;  %vm10505_vm6 = vmmov %vm10477_vm1 }
 0x27c   : > { %v4323_v11 = vshrl.u32 %v4148_v3, 16  ;;  %v4326_v6 = vshll.u32 %v4148_v3, 16  ;;  %v4291_v1 = vor.u32 %v4290_v18, %v4287_v55  ;;  %v2799_v30 = vrot.slane %v9292_v46, 1 }
 0x27d   : > { %v4149_v10 = vshrl.u32 %v9538_v15, 16  ;;  %v4275_v36 = vrot.slane %v4273_v26, 1  ;;  %v4278_v50 = vrot.slane %v4276_v54, 2  ;;  %vm10495_vm5 = vcmask 1046528  }
 0x27e   : > { %v2798_v60 = vsel %vm10495_vm5, %v2796_v7, %v2797_v8  ;;  %v4153_v38 = vshll.u32 %v9559_v51, 16  ;;  %v4300_v41 = vsel %vm4271_vm15, %v4291_v1, %v4299_v28  ;;  %v4328_v40 = vrot.slane %v4326_v6, 2  ;;  %vm10496_vm3 = vmmov %vm10495_vm5 }
 0x27f   : > { %v4151_v20 = vor.u32 %v4149_v10, %v4147_v32  ;;  %v4282_v17 = vor.u32 %v4281_v62, %v4280_v19  ;;  %v9577_v22 = vsel %vm10496_vm3, %v2797_v8, %v2799_v30  ;;  %v2882_v49 = vshll.u32 %v2798_v60, 16  ;;  %vm10499_vm12 = vmmov %vm10496_vm3 }
 0x280   : > { %v4155_v5 = vrot.slane %v4153_v38, 1  ;;  %v4161_v43 = vshll.u32 %v9569_v59, 16  ;;  %v4279_v2 = vor.u32 %v4278_v50, %v4275_v36  ;;  %v2887_v16 = vshll.u32 %v9577_v22, 16  ;;  %vm10501_vm2 = vmmov %vm10496_vm3 }
 0x281   : > { %3279 = vmatmul.mubr.bf16.gmra.mrb[28].mxu1 %v9502_v37  ;;  %3936 = vmatmul.mubr.bf16.gmra.mrb[56].mxu0 %v3649_v35  ;;  %v4325_v37 = vrot.slane %v4323_v11, 1  ;;  %v4157_v61 = vshrl.u32 %v9559_v51, 16  ;;  %v2884_v9 = vrot.slane %v2882_v49, 1  ;;  %v4318_v55 = vrot.slane %v4141_v25, 1  ;;  %vm10504_vm8 = vmmov %vm10501_vm2 }
 0x282   : > { %3286 = vmatprep.mubr.bf16.mxu1 %v3010_v33  ;;  %4697 = vmatprep.mubr.bf16.mxu0 %v4300_v41  ;;  %v4156_v57 = vsel %vm10497_vm11, %v4151_v20, %v4155_v5  ;;  %v4163_v32 = vrot.slane %v4161_v43, 1  ;;  %v4283_v47 = vsel %vm4271_vm15, %v4279_v2, %v4282_v17  ;;  %v2801_v18 = vrot.slane %v9340_v53, 1  ;;  %v9604_v33 = vld [vmem:[#allocation3 + $0x208] sm:$0xff]   ;;  %v9623_v20 = vld [vmem:[#allocation3 + $0x210] sm:$0xff]   ;;  %vm10507_vm5 = vmmov %vm10501_vm2 }
 0x283   : > { %v4329_v13 = vor.u32 %v4328_v40, %v4325_v37  ;;  %v4345_v63 = vshrl.u32 %v4156_v57, 16  ;;  %v4348_v21 = vshll.u32 %v4156_v57, 16  ;;  %vm7470_vm13 = vmmov 0   ;;  %v9620_v40 = vld [vmem:[#allocation2 + $0x4c] sm:$0xff]   ;;  %vm10508_vm3 = vmmov %vm10477_vm1 }
 0x284   : > { %v4319_v3 = vrot.slane %v4137_v24, 2  ;;  %v2880_v8 = vshrl.u32 %v2798_v60, 16  ;;  %v2889_v25 = vrot.slane %v2887_v16, 1  ;;  %v4169_v6 = vshll.u32 %v9585_v42, 16  ;;  %vm10509_vm11 = vmmov %vm10501_vm2 }
 0x285   : > { %v4347_v0 = vrot.slane %v4345_v63, 1  ;;  %v4350_v26 = vrot.slane %v4348_v21, 2  ;;  %v4330_v54 = vsel %vm4271_vm15, %v4299_v28, %v4329_v13  ;;  %v9607_v24 = vsel %vm10499_vm12, %v2799_v30, %v2801_v18  ;;  %v7308_v28 = vld [vmem:[#allocation3 + $0x80] sm:$0xff]   ;;  %v7310_v63 = vld [vmem:[#allocation3 + $0x88] sm:$0xff]   ;;  %vm10511_vm12 = vmmov %vm10477_vm1 }
 0x286   : > { %v4165_v19 = vshrl.u32 %v9569_v59, 16  ;;  %v2885_v62 = vor.u32 %v2884_v9, %v2880_v8  ;;  %v4320_v7 = vor.u32 %v4319_v3, %v4318_v55  ;;  %v2803_v1 = vrot.slane %v9366_v23, 1  ;;  %v9645_v9 = vld [vmem:[#allocation3 + $0x218] sm:$0xff]  }
 0x287   : > { %v9611_v35 = vor.u32 %v4350_v26, %v4347_v0  ;;  %v4171_v30 = vrot.slane %v4169_v6, 1  ;;  %v2903_v37 = vshll.u32 %v9607_v24, 16  ;;  %v4341_v49 = vrot.slane %v4145_v29, 2 }
 0x288   : > { %v4167_v60 = vor.u32 %v4165_v19, %v4163_v32  ;;  %v2890_v41 = vsel %vm10500_vm10, %v2885_v62, %v2889_v25  ;;  %v4321_v57 = vsel %vm4271_vm15, %v4282_v17, %v4320_v7  ;;  %v2899_v2 = vshrl.u32 %v9577_v22, 16  ;;  %v9658_v62 = vld [vmem:[#allocation3 + $0x220] sm:$0xff]   ;;  %vm10512_vm10 = vmmov %vm10501_vm2 }
 0x289   : > { %3287 = vmatmul.mubr.bf16.gmra.mrb[32].mxu1 %v9517_v48  ;;  %v4159_v48 = vor.u32 %v4157_v61, %v4155_v5  ;;  %4698 = vmatmul.mubr.bf16.vlgmr.msra.gmra.mrb[60].mxu0 %v4283_v47  ;;  %v4340_v5 = vrot.slane %v4149_v10, 1  ;;  %v9637_v21 = vsel %vm10501_vm2, %v2801_v18, %v2803_v1  ;;  %v4352_v29 = vsel %vm4271_vm15, %v4329_v13, %v9611_v35  ;;  %v7312_v13 = vld [vmem:[#allocation3 + $0x90] sm:$0xff]  }
 0x28a   : > { %6716 = vmatprep.mubr.msk.bf16.mxu1 %vm7470_vm13, %v10480_v34  ;;  %4705 = vmatprep.mubr.bf16.mxu0 %v4330_v54  ;;  %v4172_v17 = vsel %vm10502_vm9, %v4167_v60, %v4171_v30  ;;  %v2905_v47 = vrot.slane %v2903_v37, 1  ;;  %v4177_v22 = vshll.u32 %v9620_v40, 16  ;;  %v2919_v18 = vshll.u32 %v9637_v21, 16  ;;  %v9651_v54 = vld [vmem:[#allocation2 + $0x54] sm:$0xff]   ;;  %vm10514_vm9 = vmmov %vm10507_vm5 }
 0x28b   : > { %v4164_v11 = vsel %vm10498_vm7, %v4159_v48, %v4163_v32  ;;  %6805 = vmatpush3.bf16.msra.mxu0 %v9587_v4  ;;  %v2901_v32 = vor.u32 %v2899_v2, %v2889_v25  ;;  %v4342_v55 = vor.u32 %v4341_v49, %v4340_v5  ;;  %v4389_v3 = vshrl.u32 %v4172_v17, 16  ;;  %v7314_v49 = vld [vmem:[#allocation3 + $0x98] sm:$0xff]   ;;  %vm10510_vm7 = vmmov %vm10501_vm2 }
 0x28c   : > { %6806 = vmatprep.subr.bf16.mxu0 %v10480_v34  ;;  %v4367_v36 = vshrl.u32 %v4164_v11, 16  ;;  %v4370_v50 = vshll.u32 %v4164_v11, 16  ;;  %v4392_v0 = vshll.u32 %v4172_v17, 16  ;;  %v2805_v48 = vrot.slane %v9401_v14, 1  ;;  %vm10513_vm2 = vmmov %vm10477_vm1 }
 0x28d   : > { %v2906_v8 = vsel %vm10503_vm14, %v2901_v32, %v2905_v47  ;;  %v4173_v25 = vshrl.u32 %v9585_v42, 16  ;;  %v4179_v11 = vrot.slane %v4177_v22, 1  ;;  %v4362_v60 = vrot.slane %v4157_v61, 1  ;;  %vm10515_vm14 = vmmov %vm10507_vm5 }
 0x28e   : > { %v4369_v10 = vrot.slane %v4367_v36, 1  ;;  %v4372_v16 = vrot.slane %v4370_v50, 2  ;;  %v2915_v36 = vshrl.u32 %v9607_v24, 16  ;;  %v2921_v50 = vrot.slane %v2919_v18, 1 }
 0x28f   : > { %6807 = vmatpush3.bf16.msra.mxu0 %v9604_v33  ;;  %v4391_v37 = vrot.slane %v4389_v3, 1  ;;  %v4394_v5 = vrot.slane %v4392_v0, 2  ;;  %v9678_v61 = vsel %vm10504_vm8, %v2803_v1, %v2805_v48  ;;  %v4384_v3 = vrot.slane %v4165_v19, 1  ;;  %v7320_v19 = vld [vmem:[#allocation3 + $0xa8] sm:$0xff]   ;;  %vm10516_vm8 = vmmov %vm10477_vm1 }
 0x290   : > { %6808 = vmatprep.subr.bf16.mxu0 %v10480_v34  ;;  %v4373_v26 = vor.u32 %v4372_v16, %v4369_v10  ;;  %v2935_v10 = vshll.u32 %v9678_v61, 16  ;;  %v7316_v16 = vld [vmem:[#allocation3 + $0xa0] sm:$0xff]   ;;  %v4385_v0 = vrot.slane %v4161_v43, 2 }
 0x291   : > { %6717 = vmatmul.mubr.bf16.vlgmr.msra.gmra.mrb[36].mxu1 %v2890_v41  ;;  %4706 = vmatmul.mubr.bf16.gmra.mrb[64].mxu0 %v4321_v57  ;;  %v4363_v41 = vrot.slane %v4153_v38, 2  ;;  %v4185_v38 = vshll.u32 %v9651_v54, 16  ;;  %v2917_v57 = vor.u32 %v2915_v36, %v2905_v47 }
 0x292   : > { %6753 = vmatpush3.bf16.msra.mxu1 %v7308_v28  ;;  %6720 = vmatprep.mubr.msk.bf16.mxu1 %vm7470_vm13, %v10480_v34  ;;  %v4343_v28 = vsel %vm4271_vm15, %v4320_v7, %v4342_v55  ;;  %v4175_v7 = vor.u32 %v4173_v25, %v4171_v30  ;;  %v4374_v24 = vsel %vm4271_vm15, %v9611_v35, %v4373_v26  ;;  %v9684_v30 = vld [vmem:[#allocation3 + $0x228] sm:$0xff]   ;;  %v4181_v35 = vshrl.u32 %v9620_v40, 16 }
 0x293   : > { %6754 = vmatprep.subr.bf16.mxu1 %v10480_v34  ;;  %4713 = vmatprep.mubr.bf16.mxu0 %v4352_v29  ;;  %v4364_v1 = vor.u32 %v4363_v41, %v4362_v60  ;;  %v9689_v29 = vor.u32 %v4394_v5, %v4391_v37  ;;  %v4187_v18 = vrot.slane %v4185_v38, 1  ;;  %v2937_v36 = vrot.slane %v2935_v10, 1  ;;  %v9710_v60 = vld [vmem:[#allocation2 + $0x5c] ss:$0 sps:$4 sm:$0x33]  }
 0x294   : > { %6809 = vmatpush3.bf16.msra.mxu0 %v9623_v20  ;;  %v4180_v2 = vsel %vm10477_vm1, %v4175_v7, %v4179_v11  ;;  %v4183_v47 = vor.u32 %v4181_v35, %v4179_v11  ;;  %vm2666_vm1 = vcmask 1042432  }
 0x295   : > { %6810 = vmatprep.subr.bf16.mxu0 %v10480_v34  ;;  %v4411_v17 = vshrl.u32 %v4180_v2, 16  ;;  %v4414_v32 = vshll.u32 %v4180_v2, 16  ;;  %v4365_v11 = vsel %vm4271_vm15, %v4342_v55, %v4364_v1  ;;  %v4396_v43 = vsel %vm4271_vm15, %v4373_v26, %v9689_v29  ;;  %v7325_v2 = vld [vmem:[#allocation3 + $0xb0] sm:$0xff]  }
 0x296   : > { %6755 = vmatpush3.bf16.msra.mxu1 %v7310_v63  ;;  %v2922_v63 = vsel %vm10505_vm6, %v2917_v57, %v2921_v50  ;;  %v4188_v5 = vsel %vm10506_vm4, %v4183_v47, %v4187_v18  ;;  %v9716_v55 = vor.u32 %v4385_v0, %v4384_v3  ;;  %v4193_v57 = vshll.u32 %v9710_v60, 16  ;;  %vm10517_vm6 = vmmov %vm10513_vm2 }
 0x297   : > { %6756 = vmatprep.subr.bf16.mxu1 %v10480_v34  ;;  %v4413_v41 = vrot.slane %v4411_v17, 1  ;;  %v4416_v37 = vrot.slane %v4414_v32, 2  ;;  %v4433_v26 = vshrl.u32 %v4188_v5, 16  ;;  %v4436_v7 = vshll.u32 %v4188_v5, 16  ;;  %vm10518_vm4 = vmmov %vm10507_vm5 }
 0x298   : > { %6811 = vmatpush3.bf16.msra.mxu0 %v9645_v9  ;;  %v4387_v17 = vsel %vm4271_vm15, %v4364_v1, %v9716_v55  ;;  %v4406_v32 = vrot.slane %v4173_v25, 1  ;;  %v4407_v47 = vrot.slane %v4169_v6, 2  ;;  %v4203_v3 = vrot.slane %v9530_v12, 1 }
 0x299   : > { %6721 = vmatmul.mubr.bf16.gmra.mrb[40].mxu1 %v2906_v8  ;;  %6812 = vmatprep.subr.bf16.mxu0 %v10480_v34  ;;  %v2807_v8 = vrot.slane %v9429_v45, 1  ;;  %v4417_v10 = vor.u32 %v4416_v37, %v4413_v41  ;;  %v4204_v0 = vrot.slane %v9522_v44, 1  ;;  %v4206_v1 = vrot.slane %v9528_v39, 1 }
 0x29a   : > { %6724 = vmatprep.mubr.msk.bf16.mxu1 %vm7470_vm13, %v10480_v34  ;;  %6757 = vmatpush3.bf16.msra.mxu1 %v7312_v13  ;;  %v2931_v13 = vshrl.u32 %v9637_v21, 16  ;;  %v4438_v6 = vrot.slane %v4436_v7, 2  ;;  %v2811_v7 = vrot.slane %v9477_v52, 1 }
 0x29b   : > { %4714 = vmatmul.mubr.bf16.gmra.mrb[68].mxu0 %v4343_v28  ;;  %6758 = vmatprep.subr.bf16.mxu1 %v10480_v34  ;;  %v9704_v28 = vld [vmem:[#allocation3 + $0x230] sm:$0xff]   ;;  %v4205_v44 = vsel %vm10509_vm11, %v4203_v3, %v4204_v0 }
 0x29c   : > { %4721 = vmatprep.mubr.bf16.mxu0 %v4374_v24  ;;  %6813 = vmatpush3.bf16.msra.mxu0 %v9658_v62  ;;  %v2933_v21 = vor.u32 %v2931_v13, %v2921_v50  ;;  %v9723_v50 = vsel %vm10507_vm5, %v2805_v48, %v2807_v8  ;;  %v4189_v24 = vshrl.u32 %v9651_v54, 16  ;;  %v2947_v48 = vshrl.u32 %v9678_v61, 16  ;;  %vm10519_vm5 = vmmov %vm10513_vm2 }
 0x29d   : > { %6814 = vmatprep.subr.bf16.mxu0 %v10480_v34  ;;  %v2809_v61 = vrot.slane %v9463_v27, 1  ;;  %v4302_v41 = vshrl.u32 %v4205_v44, 16  ;;  %v4305_v37 = vshll.u32 %v4205_v44, 16 }
 0x29e   : > { %6759 = vmatpush3.bf16.msra.mxu1 %v7314_v49  ;;  %v9726_v49 = vld [vmem:[#allocation3 + $0x238] sm:$0xff]   ;;  %v4191_v13 = vor.u32 %v4189_v24, %v4187_v18  ;;  %v2949_v25 = vor.u32 %v2947_v48, %v2937_v36  ;;  %v4195_v18 = vrot.slane %v4193_v57, 1 }
 0x29f   : > { %6760 = vmatprep.subr.bf16.mxu1 %v10480_v34  ;;  %v4304_v48 = vrot.slane %v4302_v41, 1 }
 0x2a0   : > { %6815 = vmatpush3.bf16.msra.mxu0 %v9684_v30 }
 0x2a1   : > { %6725 = vmatmul.mubr.bf16.gmra.mrb[44].mxu1 %v2922_v63  ;;  %6816 = vmatprep.subr.bf16.mxu0 %v10480_v34  ;;  %v2938_v63 = vsel %vm10508_vm3, %v2933_v21, %v2937_v36  ;;  %v7329_v21 = vld [vmem:[#allocation3 + $0xb8] sm:$0xff]   ;;  %v4207_v36 = vsel %vm10510_vm7, %v4204_v0, %v4206_v1  ;;  %vm10520_vm3 = vmmov %vm10518_vm4 }
 0x2a2   : > { %6728 = vmatprep.mubr.msk.bf16.mxu1 %vm7470_vm13, %v10480_v34  ;;  %6761 = vmatpush3.bf16.msra.mxu1 %v7316_v16  ;;  %v2951_v16 = vshll.u32 %v9723_v50, 16  ;;  %v4310_v5 = vshrl.u32 %v4207_v36, 16  ;;  %vm10521_vm11 = vmmov %vm10520_vm3 }
 0x2a3   : > { %4722 = vmatmul.mubr.bf16.gmra.mrb[72].mxu0 %v4365_v11  ;;  %6762 = vmatprep.subr.bf16.mxu1 %v10480_v34  ;;  %v4435_v11 = vrot.slane %v4433_v26, 1  ;;  %v4408_v26 = vor.u32 %v4407_v47, %v4406_v32  ;;  %v2963_v47 = vshrl.u32 %v9723_v50, 16  ;;  %v2812_v50 = vsel %vm10514_vm9, %v2809_v61, %v2811_v7  ;;  %vm10522_vm7 = vmmov %vm10520_vm3 }
 0x2a4   : > { %4729 = vmatprep.mubr.bf16.mxu0 %v4396_v43  ;;  %6817 = vmatpush3.bf16.msra.mxu0 %v9704_v28  ;;  %v2953_v12 = vrot.slane %v2951_v16, 1  ;;  %v4196_v43 = vsel %vm10511_vm12, %v4191_v13, %v4195_v18  ;;  %v4307_v16 = vrot.slane %v4305_v37, 2  ;;  %vm10523_vm12 = vmmov %vm10520_vm3  ;;  %vm2500_vm9 = vsmask.f32 2304 }
 0x2a5   : > { %6818 = vmatprep.subr.bf16.mxu0 %v10480_v34  ;;  %v4455_v3 = vshrl.u32 %v4196_v43, 16  ;;  %v4458_v0 = vshll.u32 %v4196_v43, 16  ;;  %v4409_v52 = vsel %vm4271_vm15, %v9716_v55, %v4408_v26 }
 0x2a6   : > { %6763 = vmatpush3.bf16.msra.mxu1 %v7320_v19  ;;  %v4418_v19 = vsel %vm4271_vm15, %v9689_v29, %v4417_v10  ;;  %v2810_v29 = vsel %vm10512_vm10, %v2807_v8, %v2809_v61  ;;  %v2954_v32 = vsel %vm10513_vm2, %v2949_v25, %v2953_v12  ;;  %v4428_v8 = vrot.slane %v4181_v35, 1  ;;  %vm10524_vm2 = vmmov %vm10520_vm3 }
 0x2a7   : > { %6764 = vmatprep.subr.bf16.mxu1 %v10480_v34  ;;  %v2967_v44 = vshll.u32 %v2810_v29, 16  ;;  %v4429_v25 = vrot.slane %v4177_v22, 2  ;;  %v4457_v55 = vrot.slane %v4455_v3, 1  ;;  %v4460_v43 = vrot.slane %v4458_v0, 2 }
 0x2a8   : > { %6819 = vmatpush3.bf16.msra.mxu0 %v9726_v49  ;;  %v4450_v22 = vrot.slane %v4189_v24, 1  ;;  %v4451_v61 = vrot.slane %v4185_v38, 2  ;;  %v2995_v38 = vshrl.u32 %v2812_v50, 16  ;;  %vm2499_vm10 = vcmask 1042434  }
 0x2a9   : > { %6729 = vmatmul.mubr.bf16.gmra.mrb[48].mxu1 %v2938_v63  ;;  %v4439_v63 = vor.u32 %v4438_v6, %v4435_v11  ;;  %v4308_v11 = vor.u32 %v4307_v16, %v4304_v48  ;;  %v2969_v37 = vrot.slane %v2967_v44, 1  ;;  %v2983_v48 = vshll.u32 %v2812_v50, 16 }
 0x2aa   : > { %6732 = vmatprep.mubr.msk.bf16.mxu1 %vm7470_vm13, %v10480_v34  ;;  %6765 = vmatpush3.bf16.msra.mxu1 %v7325_v2  ;;  %v4313_v2 = vshll.u32 %v4207_v36, 16  ;;  %v4197_v36 = vshrl.u32 %v9710_v60, 16  ;;  %v4461_v16 = vor.u32 %v4460_v43, %v4457_v55  ;;  %v4208_v55 = vrot.slane %v9538_v15, 1 }
 0x2ab   : > { %4730 = vmatmul.mubr.bf16.gmra.mrb[76].mxu0 %v4387_v17  ;;  %6766 = vmatprep.subr.bf16.mxu1 %v10480_v34  ;;  %v4312_v17 = vrot.slane %v4310_v5, 1  ;;  %v9803_v43 = vrot.slane %v9088_v31, 5  ;;  %v4210_v31 = vrot.slane %v9559_v51, 1 }
 0x2ac   : > { %4737 = vmatprep.mubr.bf16.mxu0 %v4418_v19  ;;  %v7326_v19 = vld [vmem:[#allocation2 + $0x54] ss:$0 sps:$4 sm:$0x33]   ;;  %v4315_v13 = vrot.slane %v4313_v2, 2  ;;  %v4199_v5 = vor.u32 %v4197_v36, %v4195_v18  ;;  %v4430_v2 = vor.u32 %v4429_v25, %v4428_v8  ;;  %v2979_v18 = vshrl.u32 %v2810_v29, 16 }
 0x2ad   : > { %v2813_v41 = vrot.slane %v7326_v19, 1  ;;  %v4462_v24 = vsel %vm4271_vm15, %v4439_v63, %v4461_v16  ;;  %v4472_v44 = vrot.slane %v4197_v36, 1  ;;  %v4473_v8 = vrot.slane %v4193_v57, 2 }
 0x2ae   : > { %6767 = vmatpush3.bf16.msra.mxu1 %v7329_v21  ;;  %v9771_v6 = vor.u32 %v4315_v13, %v4312_v17  ;;  %v4440_v21 = vsel %vm4271_vm15, %v4417_v10, %v4439_v63  ;;  %v2965_v10 = vor.u32 %v2963_v47, %v2953_v12  ;;  %v4477_v0 = vshrl.u32 %v4199_v5, 16 }
 0x2af   : > { %6856 = vmatprep.subr.bf16.mxu1 %v10480_v34  ;;  %v2814_v17 = vsel %vm10515_vm14, %v2811_v7, %v2813_v41  ;;  %v4480_v19 = vshll.u32 %v4199_v5, 16  ;;  %v4431_v12 = vsel %vm4271_vm15, %v4408_v26, %v4430_v2  ;;  %v2985_v13 = vrot.slane %v2983_v48, 1  ;;  %vm2501_vm14 = vmand %vm2499_vm10, %vm2500_vm9 }
 0x2b0   : > { %v9782_v35 = vsel %vm4271_vm15, %v4308_v11, %v9771_v6  ;;  %v2970_v3 = vsel %vm10516_vm8, %v2965_v10, %v2969_v37  ;;  %v4452_v47 = vor.u32 %v4451_v61, %v4450_v22  ;;  %v4479_v7 = vrot.slane %v4477_v0, 1  ;;  %vm10525_vm8 = vmmov %vm10519_vm5 }
 0x2b1   : > { %6733 = vmatmul.mubr.bf16.gmra.mrb[52].mxu1 %v2954_v32  ;;  %v2999_v32 = vshll.u32 %v2814_v17, 16  ;;  %v9796_v11 = vshll.u32 %v2813_v41, 16  ;;  %v2981_v26 = vor.u32 %v2979_v18, %v2969_v37  ;;  %v2997_v29 = vor.u32 %v2995_v38, %v2985_v13 }
 0x2b2   : > { %6736 = vmatprep.mubr.msk.bf16.mxu1 %vm7470_vm13, %v10480_v34  ;;  %v4453_v50 = vsel %vm4271_vm15, %v4430_v2, %v4452_v47  ;;  %v3011_v36 = vshrl.u32 %v2814_v17, 16  ;;  %v4474_v57 = vor.u32 %v4473_v8, %v4472_v44  ;;  %v4209_v10 = vsel %vm10518_vm4, %v4206_v1, %v4208_v55 }
 0x2b3   : > { %4738 = vmatmul.mubr.bf16.gmra.mrb[80].mxu0 %v4409_v52  ;;  %v4482_v52 = vrot.slane %v4480_v19, 2  ;;  %v3001_v25 = vrot.slane %v2999_v32, 1  ;;  %v2986_v63 = vsel %vm10517_vm6, %v2981_v26, %v2985_v13  ;;  %v3017_v41 = vrot.slane %v9796_v11, 1  ;;  %vm10526_vm6 = vmmov %vm10524_vm2 }
 0x2b4   : > { %4745 = vmatprep.mubr.bf16.mxu0 %v4440_v21  ;;  %v2668_v21 = vrot.slane %v9134_v58, 5  ;;  %v4332_v37 = vshrl.u32 %v4209_v10, 16  ;;  %v4335_v5 = vshll.u32 %v4209_v10, 16  ;;  %v4475_v39 = vsel %vm4271_vm15, %v4452_v47, %v4474_v57 }
 0x2b5   : > { %v4483_v60 = vor.u32 %v4482_v52, %v4479_v7  ;;  %v3002_v2 = vsel %vm10519_vm5, %v2997_v29, %v3001_v25  ;;  %v3013_v48 = vor.u32 %v3011_v36, %v3001_v25  ;;  %v4212_v1 = vrot.slane %v9569_v59, 1 }
 0x2b6   : > { %v9813_v15 = vsel %vm2666_vm1, %v9803_v43, %v2668_v21  ;;  %v4334_v61 = vrot.slane %v4332_v37, 1  ;;  %v4337_v17 = vrot.slane %v4335_v5, 2  ;;  %v4216_v38 = vrot.slane %v9620_v40, 1  ;;  %v2502_v5 = vld [vmem:[#allocation2 + $0x5c] sm:$0x4] }
 0x2b7   : > { %v4484_v22 = vsel %vm4271_vm15, %v4461_v16, %v4483_v60  ;;  %v3444_v51 = vshrl.u32 %v9813_v15, 16  ;;  %v3447_v59 = vshll.u32 %v9813_v15, 16  ;;  %v4218_v36 = vrot.slane %v9651_v54, 1 }
 0x2b8   : > { %v4338_v18 = vor.u32 %v4337_v17, %v4334_v61  ;;  %vm5713_vm4 = vcmask 1046534   ;;  %vm5716_vm5 = vcmask 1047559  }
 0x2b9   : > { %6737 = vmatmul.mubr.bf16.gmra.mrb[56].mxu1 %v2970_v3  ;;  %v4211_v3 = vsel %vm10520_vm3, %v4208_v55, %v4210_v31  ;;  %v4219_v37 = vsel %vm10524_vm2, %v4216_v38, %v4218_v36 }
 0x2ba   : > { %6740 = vmatprep.mubr.msk.bf16.mxu1 %vm7470_vm13, %v10480_v34  ;;  %v4354_v0 = vshrl.u32 %v4211_v3, 16  ;;  %v4357_v19 = vshll.u32 %v4211_v3, 16  ;;  %v9830_v44 = vsel %vm4271_vm15, %v9771_v6, %v4338_v18 }
 0x2bb   : > { %4746 = vmatmul.mubr.bf16.gmra.mrb[84].mxu0 %v4431_v12  ;;  %v4213_v12 = vsel %vm10521_vm11, %v4210_v31, %v4212_v1  ;;  %v4442_v31 = vshrl.u32 %v4219_v37, 16 }
 0x2bc   : > { %4753 = vmatprep.mubr.bf16.mxu0 %v4462_v24  ;;  %v4376_v13 = vshrl.u32 %v4213_v12, 16  ;;  %v4379_v32 = vshll.u32 %v4213_v12, 16  ;;  %v4214_v24 = vrot.slane %v9585_v42, 1  ;;  %v4356_v47 = vrot.slane %v4354_v0, 1 }
 0x2bd   : > { %v4359_v16 = vrot.slane %v4357_v19, 2  ;;  %v4444_v3 = vrot.slane %v4442_v31, 1  ;;  %v2503_v19 = vsel %vm2501_vm14, 0, %v2502_v5  ;;  %v2676_v5 = vrot.slane %v9366_v23, 5 }
 0x2be   : > { %v4378_v7 = vrot.slane %v4376_v13, 1  ;;  %v4381_v52 = vrot.slane %v4379_v32, 2  ;;  %v4215_v8 = vsel %vm10522_vm7, %v4212_v1, %v4214_v24  ;;  %v4217_v55 = vsel %vm10523_vm12, %v4214_v24, %v4216_v38  ;;  %2504 = vst [vmem:[#allocation2 + $0x5c] sm:$0x4] %v2503_v19 }
 0x2bf   : > { %v4360_v26 = vor.u32 %v4359_v16, %v4356_v47  ;;  %v4398_v29 = vshrl.u32 %v4215_v8, 16  ;;  %v4401_v25 = vshll.u32 %v4215_v8, 16  ;;  %v3436_v1 = vshrl.u32 %v9803_v43, 16  ;;  %v7332_v38 = vld [vmem:[#allocation2 + $0x5c] ss:$0 sps:$4 sm:$0x77]  }
 0x2c0   : > { %v4382_v42 = vor.u32 %v4381_v52, %v4378_v7  ;;  %v3449_v13 = vrot.slane %v3447_v59, 4  ;;  %v9870_v52 = vrot.slane %v7332_v38, 1 }
 0x2c1   : > { %6741 = vmatmul.mubr.bf16.gmra.mrb[60].mxu1 %v2986_v63  ;;  %v4420_v63 = vshrl.u32 %v4217_v55, 16  ;;  %v9838_v40 = vsel %vm4271_vm15, %v4338_v18, %v4360_v26  ;;  %v4400_v6 = vrot.slane %v4398_v29, 1  ;;  %v4403_v60 = vrot.slane %v4401_v25, 2 }
 0x2c2   : > { %6744 = vmatprep.mubr.msk.bf16.mxu1 %vm7470_vm13, %v10480_v34  ;;  %v9841_v57 = vsel %vm4271_vm15, %v4360_v26, %v4382_v42  ;;  %v3018_v18 = vsel %vm10525_vm8, %v3013_v48, %v3017_v41  ;;  %v3438_v24 = vrot.slane %v3436_v1, 3 }
 0x2c3   : > { %4754 = vmatmul.mubr.bf16.gmra.mrb[88].mxu0 %v4453_v50  ;;  %v4423_v50 = vshll.u32 %v4217_v55, 16  ;;  %v4422_v10 = vrot.slane %v4420_v63, 1  ;;  %v4404_v54 = vor.u32 %v4403_v60, %v4400_v6 }
 0x2c4   : > { %4761 = vmatprep.mubr.bf16.mxu0 %v4484_v22  ;;  %v3439_v22 = vshll.u32 %v9803_v43, 16  ;;  %v3446_v43 = vrot.slane %v3444_v51, 3  ;;  %v2672_v51 = vrot.slane %v9292_v46, 5 }
 0x2c5   : > { %v4425_v15 = vrot.slane %v4423_v50, 2  ;;  %v9851_v17 = vsel %vm4271_vm15, %v4382_v42, %v4404_v54  ;;  %v2674_v42 = vrot.slane %v9340_v53, 5 }
 0x2c6   : > { %v3441_v47 = vrot.slane %v3439_v22, 4  ;;  %v3450_v11 = vor.u32 %v3449_v13, %v3446_v43 }
 0x2c7   : > { %v4426_v61 = vor.u32 %v4425_v15, %v4422_v10  ;;  %v2675_v10 = vsel %vm2666_vm1, %v2672_v51, %v2674_v42  ;;  %v2677_v1 = vsel %vm2666_vm1, %v2674_v42, %v2676_v5 }
 0x2c8   : > { %v3442_v59 = vor.u32 %v3441_v47, %v3438_v24  ;;  %v3552_v23 = vshrl.u32 %v2677_v1, 16  ;;  %v3555_v22 = vshll.u32 %v2677_v1, 16  ;;  %v2682_v47 = vrot.slane %v9463_v27, 5 }
 0x2c9   : > { %6745 = vmatmul.mubr.bf16.gmra.mrb[64].mxu1 %v3002_v2  ;;  %v4445_v2 = vshll.u32 %v4219_v37, 16  ;;  %v9854_v12 = vsel %vm4271_vm15, %v4404_v54, %v4426_v61  ;;  %v3528_v37 = vshll.u32 %v2675_v10, 16 }
 0x2ca   : > { %6748 = vmatprep.mubr.msk.bf16.mxu1 %vm7470_vm13, %v10480_v34  ;;  %v3451_v58 = vsel %vm3400_vm0, %v3442_v59, %v3450_v11 }
 0x2cb   : > { %4762 = vmatmul.mubr.bf16.gmra.mrb[92].mxu0 %v4475_v39  ;;  %v2670_v39 = vrot.slane %v9243_v56, 5  ;;  %v4447_v0 = vrot.slane %v4445_v2, 2  ;;  %v3530_v2 = vrot.slane %v3528_v37, 4 }
 0x2cc   : > { %6820 = vmatprep.mubr.msk.bf16.mxu0 %vm7470_vm13, %v10480_v34 }
 0x2cd   : > { %v4448_v56 = vor.u32 %v4447_v0, %v4444_v3  ;;  %v2671_v32 = vsel %vm2666_vm1, %v2668_v21, %v2670_v39  ;;  %v2673_v8 = vsel %vm2666_vm1, %v2670_v39, %v2672_v51  ;;  %v3557_v3 = vrot.slane %v3555_v22, 4 }
 0x2ce   : > { %v3471_v41 = vshrl.u32 %v2671_v32, 16  ;;  %v3474_v48 = vshll.u32 %v2671_v32, 16  ;;  %v3498_v25 = vshrl.u32 %v2673_v8, 16  ;;  %v3501_v55 = vshll.u32 %v2673_v8, 16 }
 0x2cf   : > { %v9865_v16 = vsel %vm4271_vm15, %v4426_v61, %v4448_v56  ;;  %v3554_v61 = vrot.slane %v3552_v23, 3 }
 0x2d0   : > { %v3473_v21 = vrot.slane %v3471_v41, 3  ;;  %v3476_v7 = vrot.slane %v3474_v48, 4  ;;  %v3503_v60 = vrot.slane %v3501_v55, 4  ;;  %v7331_v48 = vld [vmem:[#allocation2 + $0x4c] ss:$0 sps:$4 sm:$0x11]  }
 0x2d1   : > { %6749 = vmatmul.mubr.bf16.gmra.mrb[68].mxu1 %v3018_v18 }
 0x2d2   : > { %6768 = vmatprep.mubr.msk.bf16.mxu1 %vm7470_vm13, %v10480_v34  ;;  %v3477_v29 = vor.u32 %v3476_v7, %v3473_v21 }
 0x2d3   : > { %6821 = vmatmul.mubr.bf16.vlgmr.msra.gmra.mrb[96].mxu0 %v9782_v35  ;;  %v4221_v35 = vsel %vm10526_vm6, %v4218_v36, %v9870_v52  ;;  %v3500_v36 = vrot.slane %v3498_v25, 3 }
 0x2d4   : > { %v4464_v46 = vshrl.u32 %v4221_v35, 16  ;;  %v4467_v26 = vshll.u32 %v4221_v35, 16  ;;  %v3478_v6 = vsel %vm3400_vm0, %v3450_v11, %v3477_v29 }
 0x2d5   : > { %v3504_v53 = vor.u32 %v3503_v60, %v3500_v36 }
 0x2d6   : > { %v4466_v63 = vrot.slane %v4464_v46, 1  ;;  %v4469_v50 = vrot.slane %v4467_v26, 2 }
 0x2d7   : > { %v3505_v54 = vsel %vm3400_vm0, %v3477_v29, %v3504_v53 }
 0x2d9   : > { %6769 = vmatmul.mubr.bf16.vlgmr.msra.gmra.mrb[36].mxu1 %v3451_v58  ;;  %v2684_v58 = vrot.slane %v7331_v48, 5 }
 0x2da   : > { %6864 = vmatpush3.bf16.msra.mxu1 %v9587_v4  ;;  %6772 = vmatprep.mubr.msk.bf16.mxu1 %vm7470_vm13, %v10480_v34  ;;  %v9882_v4 = vor.u32 %v4469_v50, %v4466_v63 }
 0x2db   : > { %6857 = vmatprep.subr.bf16.mxu1 %v10480_v34  ;;  %v2685_v27 = vsel %vm2666_vm1, %v2682_v47, %v2684_v58 }
 0x2dc   : > { %v9888_v15 = vsel %vm4271_vm15, %v4448_v56, %v9882_v4  ;;  %v3660_v25 = vshrl.u32 %v2685_v27, 16  ;;  %v3663_v55 = vshll.u32 %v2685_v27, 16 }
 0x2de   : > { %6865 = vmatpush3.bf16.msra.mxu1 %v9604_v33  ;;  %v3525_v33 = vshrl.u32 %v2675_v10, 16  ;;  %v3662_v36 = vrot.slane %v3660_v25, 3  ;;  %v3665_v60 = vrot.slane %v3663_v55, 4 }
 0x2df   : > { %6858 = vmatprep.subr.bf16.mxu1 %v10480_v34 }
 0x2e0   : > { %v3527_v31 = vrot.slane %v3525_v33, 3  ;;  %v3666_v10 = vor.u32 %v3665_v60, %v3662_v36 }
 0x2e1   : > { %6773 = vmatmul.mubr.bf16.gmra.mrb[40].mxu1 %v3478_v6 }
 0x2e2   : > { %6776 = vmatprep.mubr.msk.bf16.mxu1 %vm7470_vm13, %v10480_v34  ;;  %6866 = vmatpush3.bf16.msra.mxu1 %v9623_v20  ;;  %v3531_v20 = vor.u32 %v3530_v2, %v3527_v31 }
 0x2e3   : > { %6859 = vmatprep.subr.bf16.mxu1 %v10480_v34 }
 0x2e4   : > { %v3532_v39 = vsel %vm3400_vm0, %v3504_v53, %v3531_v20 }
 0x2e6   : > { %6867 = vmatpush3.bf16.msra.mxu1 %v9645_v9  ;;  %v2678_v9 = vrot.slane %v9401_v14, 5 }
 0x2e7   : > { %6860 = vmatprep.subr.bf16.mxu1 %v10480_v34 }
 0x2e8   : > { %v2679_v0 = vsel %vm2666_vm1, %v2676_v5, %v2678_v9 }
 0x2e9   : > { %6777 = vmatmul.mubr.bf16.gmra.mrb[44].mxu1 %v3505_v54  ;;  %v3579_v14 = vshrl.u32 %v2679_v0, 16  ;;  %v3582_v19 = vshll.u32 %v2679_v0, 16 }
 0x2ea   : > { %6780 = vmatprep.mubr.msk.bf16.mxu1 %vm7470_vm13, %v10480_v34  ;;  %6868 = vmatpush3.bf16.msra.mxu1 %v9658_v62  ;;  %v3558_v62 = vor.u32 %v3557_v3, %v3554_v61 }
 0x2eb   : > { %6861 = vmatprep.subr.bf16.mxu1 %v10480_v34  ;;  %v3581_v43 = vrot.slane %v3579_v14, 3  ;;  %v3584_v13 = vrot.slane %v3582_v19, 4 }
 0x2ec   : > { %v3559_v18 = vsel %vm3400_vm0, %v3531_v20, %v3558_v62 }
 0x2ee   : > { %6869 = vmatpush3.bf16.msra.mxu1 %v9684_v30  ;;  %v2680_v30 = vrot.slane %v9429_v45, 5 }
 0x2ef   : > { %6862 = vmatprep.subr.bf16.mxu1 %v10480_v34 }
 0x2f0   : > { %v2681_v56 = vsel %vm2666_vm1, %v2678_v9, %v2680_v30 }
 0x2f1   : > { %6781 = vmatmul.mubr.bf16.gmra.mrb[48].mxu1 %v3532_v39  ;;  %v3606_v32 = vshrl.u32 %v2681_v56, 16  ;;  %v3609_v24 = vshll.u32 %v2681_v56, 16 }
 0x2f2   : > { %6784 = vmatprep.mubr.msk.bf16.mxu1 %vm7470_vm13, %v10480_v34  ;;  %6870 = vmatpush3.bf16.msra.mxu1 %v9704_v28  ;;  %v3585_v28 = vor.u32 %v3584_v13, %v3581_v43 }
 0x2f3   : > { %6863 = vmatprep.subr.bf16.mxu1 %v10480_v34  ;;  %v3608_v45 = vrot.slane %v3606_v32, 3  ;;  %v3611_v41 = vrot.slane %v3609_v24, 4 }
 0x2f4   : > { %v3586_v11 = vsel %vm3400_vm0, %v3558_v62, %v3585_v28 }
 0x2f5   : > { %v3612_v51 = vor.u32 %v3611_v41, %v3608_v45 }
 0x2f6   : > { %6871 = vmatpush3.bf16.msra.mxu1 %v9726_v49  ;;  %v2683_v49 = vsel %vm2666_vm1, %v2680_v30, %v2682_v47  ;;  %vm5710_vm1 = vcmask 1045509  }
 0x2f7   : > { %v3633_v59 = vshrl.u32 %v2683_v49, 16  ;;  %v3636_v38 = vshll.u32 %v2683_v49, 16  ;;  %v3613_v21 = vsel %vm3400_vm0, %v3585_v28, %v3612_v51 }
 0x2f9   : > { %6785 = vmatmul.mubr.bf16.gmra.mrb[52].mxu1 %v3559_v18  ;;  %v3635_v7 = vrot.slane %v3633_v59, 3  ;;  %v3638_v8 = vrot.slane %v3636_v38, 4 }
 0x2fa   : > { %6788 = vmatprep.mubr.msk.bf16.mxu1 %vm7470_vm13, %v10480_v34 }
 0x2fb   : > { %v3639_v26 = vor.u32 %v3638_v8, %v3635_v7 }
 0x2fd   : > { %v3640_v6 = vsel %vm3400_vm0, %v3612_v51, %v3639_v26  ;;  %v3667_v53 = vsel %vm3400_vm0, %v3639_v26, %v3666_v10  ;;  %vm5698_vm0 = vcmask 1041409  }
 0x301   : > { %6789 = vmatmul.mubr.bf16.gmra.mrb[56].mxu1 %v3586_v11 }
 0x302   : > { %6792 = vmatprep.mubr.msk.bf16.mxu1 %vm7470_vm13, %v10480_v34 }
 0x309   : > { %6793 = vmatmul.mubr.bf16.gmra.mrb[60].mxu1 %v3613_v21  ;;  %v6452_v35 = vpop.f32.mrb[24].mxu0 }
 0x30a   : > { %6796 = vmatprep.mubr.msk.bf16.mxu1 %vm7470_vm13, %v10480_v34  ;;  %v6453_v46 = vpop.f32.mrb[25].mxu0 }
 0x30b   : > { %v6454_v29 = vadd.f32 %v6453_v46, %v6452_v35  ;;  %v6455_v42 = vpop.f32.mrb[26].mxu0 }
 0x30c   : > { %v6456_v63 = vpop.f32.mrb[27].mxu0 }
 0x30d   : > { %v6457_v50 = vadd.f32 %v6456_v63, %v6455_v42 }
 0x311   : > { %6797 = vmatmul.mubr.bf16.gmra.mrb[64].mxu1 %v3640_v6 }
 0x312   : > { %6800 = vmatprep.mubr.msk.bf16.mxu1 %vm7470_vm13, %v10480_v34 }
 0x319   : > { %6801 = vmatmul.mubr.bf16.gmra.mrb[68].mxu1 %v3667_v53 }
 0x31a   : > { %6824 = vmatprep.mubr.msk.bf16.mxu1 %vm7470_vm13, %v10480_v34 }
 0x31c   : > { %v6365_v33 = vpop.f32.mrb[0].mxu1  ;;  %v6458_v31 = vpop.f32.mrb[28].mxu0 }
 0x31d   : > { %v6366_v37 = vpop.f32.mrb[1].mxu1  ;;  %v6459_v1 = vpop.f32.mrb[29].mxu0 }
 0x31e   : > { %v6367_v5 = vadd.f32 %v6366_v37, %v6365_v33  ;;  %v6368_v54 = vpop.f32.mrb[2].mxu1  ;;  %v6460_v23 = vadd.f32 %v6459_v1, %v6458_v31  ;;  %v6461_v22 = vpop.f32.mrb[30].mxu0 }
 0x31f   : > { %v6369_v2 = vpop.f32.mrb[3].mxu1  ;;  %v6462_v9 = vpop.f32.mrb[31].mxu0 }
 0x320   : > { %v6370_v20 = vadd.f32 %v6369_v2, %v6368_v54  ;;  %v6463_v39 = vadd.f32 %v6462_v9, %v6461_v22  ;;  %v9936_v3 = vadd.f32 %v6454_v29, %v6367_v5 }
 0x321   : > { %6825 = vmatmul.mubr.bf16.vlgmr.msra.gmra.mrb[40].mxu1 %v9830_v44 }
 0x322   : > { %6828 = vmatprep.mubr.msk.bf16.mxu1 %vm7470_vm13, %v10480_v34  ;;  %v9938_v30 = vadd.f32 %v6457_v50, %v6370_v20 }
 0x324   : > { %v6371_v61 = vpop.f32.mrb[4].mxu1  ;;  %v6464_v19 = vpop.f32.mrb[32].mxu0 }
 0x325   : > { %v6372_v0 = vpop.f32.mrb[5].mxu1  ;;  %v6465_v43 = vpop.f32.mrb[33].mxu0 }
 0x326   : > { %v6373_v62 = vadd.f32 %v6372_v0, %v6371_v61  ;;  %v6374_v14 = vpop.f32.mrb[6].mxu1  ;;  %v6466_v44 = vadd.f32 %v6465_v43, %v6464_v19  ;;  %v6467_v28 = vpop.f32.mrb[34].mxu0 }
 0x327   : > { %v6375_v18 = vpop.f32.mrb[7].mxu1  ;;  %v6468_v32 = vpop.f32.mrb[35].mxu0 }
 0x328   : > { %v9940_v13 = vadd.f32 %v6460_v23, %v6373_v62  ;;  %v6376_v56 = vadd.f32 %v6375_v18, %v6374_v14  ;;  %v6469_v47 = vadd.f32 %v6468_v32, %v6467_v28 }
 0x329   : > { %6829 = vmatmul.mubr.bf16.gmra.mrb[44].mxu1 %v9838_v40 }
 0x32a   : > { %v9943_v24 = vadd.f32 %v6463_v39, %v6376_v56  ;;  %6832 = vmatprep.mubr.msk.bf16.mxu1 %vm7470_vm13, %v10480_v34 }
 0x32c   : > { %v6377_v11 = vpop.f32.mrb[8].mxu1  ;;  %v6470_v48 = vpop.f32.mrb[36].mxu0 }
 0x32d   : > { %v6378_v45 = vpop.f32.mrb[9].mxu1  ;;  %v6471_v59 = vpop.f32.mrb[37].mxu0 }
 0x32e   : > { %v6379_v41 = vadd.f32 %v6378_v45, %v6377_v11  ;;  %v6380_v49 = vpop.f32.mrb[10].mxu1  ;;  %v6472_v21 = vadd.f32 %v6471_v59, %v6470_v48  ;;  %v6473_v7 = vpop.f32.mrb[38].mxu0  ;;  %v4486_v59 = vshrl.u32 %v9870_v52, 16 }
 0x32f   : > { %v6381_v51 = vpop.f32.mrb[11].mxu1  ;;  %v6474_v40 = vpop.f32.mrb[39].mxu0 }
 0x330   : > { %v9947_v38 = vadd.f32 %v6466_v44, %v6379_v41  ;;  %v6382_v58 = vadd.f32 %v6381_v51, %v6380_v49  ;;  %v6475_v27 = vadd.f32 %v6474_v40, %v6473_v7 }
 0x331   : > { %6833 = vmatmul.mubr.bf16.gmra.mrb[48].mxu1 %v9841_v57 }
 0x332   : > { %v9950_v8 = vadd.f32 %v6469_v47, %v6382_v58  ;;  %6836 = vmatprep.mubr.msk.bf16.mxu1 %vm7470_vm13, %v10480_v34  ;;  %v4489_v58 = vshll.u32 %v9870_v52, 16 }
 0x334   : > { %v6383_v35 = vpop.f32.mrb[12].mxu1  ;;  %v6476_v25 = vpop.f32.mrb[40].mxu0 }
 0x335   : > { %v6384_v46 = vpop.f32.mrb[13].mxu1  ;;  %v6477_v42 = vpop.f32.mrb[41].mxu0 }
 0x336   : > { %v6385_v26 = vadd.f32 %v6384_v46, %v6383_v35  ;;  %v6386_v29 = vpop.f32.mrb[14].mxu1  ;;  %v6478_v6 = vadd.f32 %v6477_v42, %v6476_v25  ;;  %v6479_v36 = vpop.f32.mrb[42].mxu0  ;;  %v4488_v25 = vrot.slane %v4486_v59, 1 }
 0x337   : > { %v6387_v55 = vpop.f32.mrb[15].mxu1  ;;  %v6480_v57 = vpop.f32.mrb[43].mxu0 }
 0x338   : > { %v9954_v63 = vadd.f32 %v6472_v21, %v6385_v26  ;;  %v6388_v50 = vadd.f32 %v6387_v55, %v6386_v29  ;;  %v6481_v10 = vadd.f32 %v6480_v57, %v6479_v36  ;;  %v4491_v55 = vrot.slane %v4489_v58, 2 }
 0x339   : > { %6837 = vmatmul.mubr.bf16.gmra.mrb[52].mxu1 %v9851_v17 }
 0x33a   : > { %v9957_v60 = vadd.f32 %v6475_v27, %v6388_v50  ;;  %6840 = vmatprep.mubr.msk.bf16.mxu1 %vm7470_vm13, %v10480_v34  ;;  %v4492_v57 = vor.u32 %v4491_v55, %v4488_v25 }
 0x33c   : > { %v6389_v53 = vpop.f32.mrb[16].mxu1  ;;  %v6482_v54 = vpop.f32.mrb[44].mxu0 }
 0x33d   : > { %v6390_v33 = vpop.f32.mrb[17].mxu1  ;;  %v6483_v2 = vpop.f32.mrb[45].mxu0 }
 0x33e   : > { %v6391_v37 = vadd.f32 %v6390_v33, %v6389_v53  ;;  %v6392_v5 = vpop.f32.mrb[18].mxu1  ;;  %v6484_v23 = vadd.f32 %v6483_v2, %v6482_v54  ;;  %v6485_v22 = vpop.f32.mrb[46].mxu0 }
 0x33f   : > { %v6393_v31 = vpop.f32.mrb[19].mxu1  ;;  %v6486_v17 = vpop.f32.mrb[47].mxu0 }
 0x340   : > { %v9961_v1 = vadd.f32 %v6478_v6, %v6391_v37  ;;  %v6394_v20 = vadd.f32 %v6393_v31, %v6392_v5  ;;  %v6487_v39 = vadd.f32 %v6486_v17, %v6485_v22  ;;  %v4493_v5 = vsel %vm4271_vm15, %v9882_v4, %v4492_v57 }
 0x341   : > { %6841 = vmatmul.mubr.bf16.gmra.mrb[56].mxu1 %v9854_v12  ;;  %vm5704_vm15 = vcmask 1043459  }
 0x342   : > { %v9964_v9 = vadd.f32 %v6481_v10, %v6394_v20  ;;  %6844 = vmatprep.mubr.msk.bf16.mxu1 %vm7470_vm13, %v10480_v34 }
 0x344   : > { %v6395_v61 = vpop.f32.mrb[20].mxu1  ;;  %v6488_v19 = vpop.f32.mrb[48].mxu0 }
 0x345   : > { %v6396_v0 = vpop.f32.mrb[21].mxu1  ;;  %v6489_v43 = vpop.f32.mrb[49].mxu0 }
 0x346   : > { %v6397_v62 = vadd.f32 %v6396_v0, %v6395_v61  ;;  %v6398_v14 = vpop.f32.mrb[22].mxu1  ;;  %v6490_v28 = vadd.f32 %v6489_v43, %v6488_v19  ;;  %v6491_v32 = vpop.f32.mrb[50].mxu0 }
 0x347   : > { %v6399_v18 = vpop.f32.mrb[23].mxu1  ;;  %v6492_v12 = vpop.f32.mrb[51].mxu0 }
 0x348   : > { %v9968_v56 = vadd.f32 %v6484_v23, %v6397_v62  ;;  %v6400_v44 = vadd.f32 %v6399_v18, %v6398_v14  ;;  %v6493_v11 = vadd.f32 %v6492_v12, %v6491_v32 }
 0x349   : > { %6845 = vmatmul.mubr.bf16.gmra.mrb[60].mxu1 %v9865_v16 }
 0x34a   : > { %v9971_v47 = vadd.f32 %v6487_v39, %v6400_v44  ;;  %6848 = vmatprep.mubr.msk.bf16.mxu1 %vm7470_vm13, %v10480_v34 }
 0x34c   : > { %v6401_v45 = vpop.f32.mrb[24].mxu1  ;;  %v6494_v51 = vpop.f32.mrb[52].mxu0 }
 0x34d   : > { %v6402_v41 = vpop.f32.mrb[25].mxu1  ;;  %v6495_v7 = vpop.f32.mrb[53].mxu0 }
 0x34e   : > { %v6403_v49 = vadd.f32 %v6402_v41, %v6401_v45  ;;  %v6404_v48 = vpop.f32.mrb[26].mxu1  ;;  %v6496_v27 = vadd.f32 %v6495_v7, %v6494_v51  ;;  %v6497_v35 = vpop.f32.mrb[54].mxu0 }
 0x34f   : > { %v6405_v21 = vpop.f32.mrb[27].mxu1  ;;  %v6498_v46 = vpop.f32.mrb[55].mxu0 }
 0x350   : > { %v9977_v40 = vadd.f32 %v6490_v28, %v6403_v49  ;;  %v6406_v16 = vadd.f32 %v6405_v21, %v6404_v48  ;;  %v6499_v29 = vadd.f32 %v6498_v46, %v6497_v35 }
 0x351   : > { %6849 = vmatmul.mubr.bf16.gmra.mrb[64].mxu1 %v9888_v15 }
 0x352   : > { %v9980_v26 = vadd.f32 %v6493_v11, %v6406_v16  ;;  %6852 = vmatprep.mubr.msk.bf16.mxu1 %vm7470_vm13, %v10480_v34  ;;  %vm5707_vm13 = vcmask 1044484  }
 0x354   : > { %v6407_v42 = vpop.f32.mrb[28].mxu1  ;;  %v6500_v36 = vpop.f32.mrb[56].mxu0 }
 0x355   : > { %v6408_v52 = vpop.f32.mrb[29].mxu1  ;;  %v6501_v53 = vpop.f32.mrb[57].mxu0 }
 0x356   : > { %v6409_v50 = vadd.f32 %v6408_v52, %v6407_v42  ;;  %v6410_v6 = vpop.f32.mrb[30].mxu1  ;;  %v6502_v37 = vadd.f32 %v6501_v53, %v6500_v36  ;;  %v6503_v54 = vpop.f32.mrb[58].mxu0 }
 0x357   : > { %v6411_v10 = vpop.f32.mrb[31].mxu1  ;;  %v6504_v34 = vpop.f32.mrb[59].mxu0 }
 0x358   : > { %v9984_v33 = vadd.f32 %v6496_v27, %v6409_v50  ;;  %v6412_v15 = vadd.f32 %v6411_v10, %v6410_v6  ;;  %v6505_v2 = vadd.f32 %v6504_v34, %v6503_v54 }
 0x359   : > { %6853 = vmatmul.mubr.bf16.gmra.mrb[68].mxu1 %v4493_v5 }
 0x35a   : > { %v9988_v31 = vadd.f32 %v6499_v29, %v6412_v15 }
 0x35c   : > { %v6413_v20 = vpop.f32.mrb[32].mxu1  ;;  %v6539_v39 = vpop.f32.mrb[60].mxu0 }
 0x35d   : > { %v6414_v23 = vpop.f32.mrb[33].mxu1  ;;  %v6540_v0 = vpop.f32.mrb[61].mxu0 }
 0x35e   : > { %v6415_v22 = vadd.f32 %v6414_v23, %v6413_v20  ;;  %v6416_v17 = vpop.f32.mrb[34].mxu1  ;;  %v9992_v19 = vadd.f32 %v6540_v0, %v6539_v39  ;;  %v6542_v18 = vpop.f32.mrb[62].mxu0 }
 0x35f   : > { %v6417_v61 = vpop.f32.mrb[35].mxu1  ;;  %v6543_v4 = vpop.f32.mrb[63].mxu0 }
 0x360   : > { %v9990_v62 = vadd.f32 %v6502_v37, %v6415_v22  ;;  %v6418_v14 = vadd.f32 %v6417_v61, %v6416_v17  ;;  %v9996_v44 = vadd.f32 %v6543_v4, %v6542_v18 }
 0x362   : > { %v9994_v43 = vadd.f32 %v6505_v2, %v6418_v14 }
 0x364   : > { %v6545_v28 = vpop.f32.mrb[64].mxu0 }
 0x365   : > { %v6546_v32 = vpop.f32.mrb[65].mxu0 }
 0x366   : > { %v6547_v12 = vadd.f32 %v6546_v32, %v6545_v28  ;;  %v6548_v11 = vpop.f32.mrb[66].mxu0 }
 0x367   : > { %v6549_v45 = vpop.f32.mrb[67].mxu0 }
 0x368   : > { %v6550_v41 = vadd.f32 %v6549_v45, %v6548_v11  ;;  %v9999_v58 = vadd.f32 %v9940_v13, %v6547_v12 }
 0x36a   : > { %v10002_v16 = vadd.f32 %v9943_v24, %v6550_v41 }
 0x36e   : > { %v6551_v49 = vpop.f32.mrb[68].mxu0 }
 0x36f   : > { %v6552_v48 = vpop.f32.mrb[69].mxu0 }
 0x370   : > { %v6553_v51 = vadd.f32 %v6552_v48, %v6551_v49  ;;  %v6554_v59 = vpop.f32.mrb[70].mxu0 }
 0x371   : > { %v6555_v21 = vpop.f32.mrb[71].mxu0 }
 0x372   : > { %v6556_v7 = vadd.f32 %v6555_v21, %v6554_v59  ;;  %v10005_v25 = vadd.f32 %v9947_v38, %v6553_v51 }
 0x374   : > { %v10008_v52 = vadd.f32 %v9950_v8, %v6556_v7 }
 0x376   : > { %v6557_v27 = vpop.f32.mrb[72].mxu0 }
 0x377   : > { %v6558_v35 = vpop.f32.mrb[73].mxu0 }
 0x378   : > { %v6559_v46 = vadd.f32 %v6558_v35, %v6557_v27  ;;  %v6560_v29 = vpop.f32.mrb[74].mxu0 }
 0x379   : > { %v6561_v55 = vpop.f32.mrb[75].mxu0 }
 0x37a   : > { %v6562_v42 = vadd.f32 %v6561_v55, %v6560_v29  ;;  %v10011_v57 = vadd.f32 %v9954_v63, %v6559_v46 }
 0x37c   : > { %v10014_v53 = vadd.f32 %v9957_v60, %v6562_v42 }
 0x37e   : > { %v6563_v50 = vpop.f32.mrb[76].mxu0 }
 0x37f   : > { %v6564_v13 = vpop.f32.mrb[77].mxu0 }
 0x380   : > { %v6565_v6 = vadd.f32 %v6564_v13, %v6563_v50  ;;  %v6566_v36 = vpop.f32.mrb[78].mxu0 }
 0x381   : > { %v6567_v24 = vpop.f32.mrb[79].mxu0 }
 0x382   : > { %v6568_v10 = vadd.f32 %v6567_v24, %v6566_v36  ;;  %v10017_v54 = vadd.f32 %v9961_v1, %v6565_v6 }
 0x384   : > { %v10020_v2 = vadd.f32 %v9964_v9, %v6568_v10 }
 0x386   : > { %v6569_v15 = vpop.f32.mrb[80].mxu0 }
 0x387   : > { %v6570_v38 = vpop.f32.mrb[81].mxu0 }
 0x388   : > { %v6571_v37 = vadd.f32 %v6570_v38, %v6569_v15  ;;  %v6572_v5 = vpop.f32.mrb[82].mxu0 }
 0x389   : > { %v6573_v8 = vpop.f32.mrb[83].mxu0 }
 0x38a   : > { %v6574_v34 = vadd.f32 %v6573_v8, %v6572_v5  ;;  %v10023_v17 = vadd.f32 %v9968_v56, %v6571_v37  ;;  %v10527_v5 = vld [vmem:[#allocation11_spill] sm:$0xff] }
 0x38c   : > { %v10026_v61 = vadd.f32 %v9971_v47, %v6574_v34 }
 0x38e   : > { %v6575_v20 = vpop.f32.mrb[84].mxu0 }
 0x38f   : > { %v6576_v63 = vpop.f32.mrb[85].mxu0 }
 0x390   : > { %v6577_v23 = vadd.f32 %v6576_v63, %v6575_v20  ;;  %v6578_v22 = vpop.f32.mrb[86].mxu0 }
 0x391   : > { %v6579_v60 = vpop.f32.mrb[87].mxu0 }
 0x392   : > { %v6580_v39 = vadd.f32 %v6579_v60, %v6578_v22  ;;  %v10029_v4 = vadd.f32 %v9977_v40, %v6577_v23 }
 0x394   : > { %v10032_v32 = vadd.f32 %v9980_v26, %v6580_v39 }
 0x396   : > { %v6581_v0 = vpop.f32.mrb[88].mxu0 }
 0x397   : > { %v6582_v1 = vpop.f32.mrb[89].mxu0 }
 0x398   : > { %v6583_v14 = vadd.f32 %v6582_v1, %v6581_v0  ;;  %v6584_v18 = vpop.f32.mrb[90].mxu0 }
 0x399   : > { %v6585_v9 = vpop.f32.mrb[91].mxu0 }
 0x39a   : > { %v6586_v28 = vadd.f32 %v6585_v9, %v6584_v18  ;;  %v10035_v41 = vadd.f32 %v9984_v33, %v6583_v14 }
 0x39c   : > { %v10038_v48 = vadd.f32 %v9988_v31, %v6586_v28 }
 0x39e   : > { %v6587_v12 = vpop.f32.mrb[92].mxu0 }
 0x39f   : > { %v6588_v56 = vpop.f32.mrb[93].mxu0 }
 0x3a0   : > { %v6589_v11 = vadd.f32 %v6588_v56, %v6587_v12  ;;  %v6590_v45 = vpop.f32.mrb[94].mxu0 }
 0x3a1   : > { %v6591_v47 = vpop.f32.mrb[95].mxu0 }
 0x3a2   : > { %v6592_v49 = vadd.f32 %v6591_v47, %v6590_v45  ;;  %v10041_v21 = vadd.f32 %v9990_v62, %v6589_v11  ;;  %v10053_v62 = vld [vmem:[%s10279_s5] ss:$0 sm:$0xff] }
 0x3a4   : > { %v10044_v7 = vadd.f32 %v9994_v43, %v6592_v49 }
 0x3a6   : > { %v4804_v51 = vpop.f32.mrb[96].mxu0 }
 0x3a7   : > { %v6822_v40 = vpop.f32.mrb[97].mxu0 }
 0x3a8   : > { %v4807_v59 = vpop.f32.mrb[98].mxu0 }
 0x3a9   : > { %v6823_v26 = vpop.f32.mrb[99].mxu0 }
 0x3ac   : > { %v3978_v27 = vpop.f32.mrb[36].mxu1 }
 0x3ad   : > { %v6873_v35 = vadd.f32 %v9936_v3, %v3978_v27  ;;  %v6770_v33 = vpop.f32.mrb[37].mxu1  ;;  %v10059_v3 = vld [vmem:[%s10280_s6] ss:$0 sm:$0xff] }
 0x3ae   : > { %v3981_v46 = vpop.f32.mrb[38].mxu1 }
 0x3af   : > { %v6874_v29 = vadd.f32 %v6873_v35, %v9992_v19  ;;  %v6877_v31 = vadd.f32 %v9938_v30, %v3981_v46  ;;  %v6771_v55 = vpop.f32.mrb[39].mxu1  ;;  %v7471_v19 = vmov 1983009808  }
 0x3b0   : > { %v4981_v6 = vunpack.c.l.s4 %v7471_v19 }
 0x3b1   : > { %v6875_v42 = vadd.f32 %v6874_v29, %v4804_v51  ;;  %v6878_v50 = vadd.f32 %v6877_v31, %v9996_v44 }
 0x3b2   : > { %v4982_v44 = vunpack.c.0.s8 %v4981_v6 }
 0x3b3   : > { %v6879_v13 = vadd.f32 %v6878_v50, %v4807_v59  ;;  %v4900_v43 = vmul.f32 %v6875_v42, %v10053_v62 }
 0x3b4   : > { %v10066_v8 = vsub.s32 %v4982_v44, %v10527_v5 }
 0x3b5   : > { %v4925_v30 = vadd.f32 %v10059_v3, %v4900_v43  ;;  %v4901_v36 = vmul.f32 %v6879_v13, %v10053_v62 }
 0x3b7   : > { %v4943_v24 = vmax.f32 %v4925_v30, 0.0  ;;  %v4926_v10 = vadd.f32 %v10059_v3, %v4901_v36 }
 0x3b9   : > { %v4979_v22 = vcombine.high %v4943_v24, %v4943_v24  ;;  %v4944_v60 = vmax.f32 %v4926_v10, 0.0  ;;  %v4986_v1 = vrot.slane %v4943_v24, %v10066_v8 }
 0x3bb   : > { %v4993_v18 = vrot.slane %v4979_v22, %v10066_v8  ;;  %v4996_v9 = vcombine.high %v4944_v60, %v4944_v60  ;;  %v5003_v47 = vrot.slane %v4944_v60, %v10066_v8  ;;  %v4994_v49 = vcombine.high %v4986_v1, %v4986_v1 }
 0x3bd   : > { %v5010_v33 = vrot.slane %v4996_v9, %v10066_v8  ;;  %v4995_v46 = vcombine.high %v4993_v18, %v4993_v18  ;;  %v5011_v13 = vcombine.high %v5003_v47, %v5003_v47 }
 0x3f4   : > { %v4812_v15 = vpop.f32.mrb[40].mxu1 }
 0x3f5   : > { %v6882_v38 = vadd.f32 %v9999_v58, %v4812_v15  ;;  %v6826_v37 = vpop.f32.mrb[41].mxu1 }
 0x3f6   : > { %v4815_v34 = vpop.f32.mrb[42].mxu1 }
 0x3f7   : > { %v4902_v20 = vmul.f32 %v6882_v38, %v10053_v62  ;;  %v6885_v63 = vadd.f32 %v10002_v16, %v4815_v34  ;;  %v6827_v23 = vpop.f32.mrb[43].mxu1 }
 0x3f9   : > { %v4927_v39 = vadd.f32 %v10059_v3, %v4902_v20  ;;  %v4903_v0 = vmul.f32 %v6885_v63, %v10053_v62 }
 0x3fb   : > { %v4945_v14 = vmax.f32 %v4927_v39, 0.0  ;;  %v4928_v58 = vadd.f32 %v10059_v3, %v4903_v0 }
 0x3fc   : > { %v4820_v28 = vpop.f32.mrb[44].mxu1 }
 0x3fd   : > { %v5013_v12 = vcombine.high %v4945_v14, %v4945_v14  ;;  %v5020_v56 = vrot.slane %v4945_v14, %v10066_v8  ;;  %v4946_v16 = vmax.f32 %v4928_v58, 0.0  ;;  %v6888_v11 = vadd.f32 %v10005_v25, %v4820_v28  ;;  %v6830_v45 = vpop.f32.mrb[45].mxu1 }
 0x3fe   : > { %v4823_v51 = vpop.f32.mrb[46].mxu1 }
 0x3ff   : > { %v5027_v40 = vrot.slane %v5013_v12, %v10066_v8  ;;  %v5028_v59 = vcombine.high %v5020_v56, %v5020_v56  ;;  %v5030_v26 = vcombine.high %v4946_v16, %v4946_v16  ;;  %v5037_v27 = vrot.slane %v4946_v16, %v10066_v8  ;;  %v6831_v35 = vpop.f32.mrb[47].mxu1 }
 0x400   : > { %v4904_v29 = vmul.f32 %v6888_v11, %v10053_v62  ;;  %v6891_v31 = vadd.f32 %v10008_v52, %v4823_v51  ;;  %v5012_v51 = vcombine.high %v5010_v33, %v5010_v33 }
 0x401   : > { %v5029_v25 = vcombine.high %v5027_v40, %v5027_v40  ;;  %v5345_v55 = vadd.f32 %v5028_v59, %v4986_v1  ;;  %v5346_v42 = vadd.f32 %v5027_v40, %v4994_v49  ;;  %v5044_v50 = vrot.slane %v5030_v26, %v10066_v8 }
 0x402   : > { %v5045_v43 = vcombine.high %v5037_v27, %v5037_v27  ;;  %v5348_v19 = vadd.f32 %v5037_v27, %v4995_v46  ;;  %v4929_v6 = vadd.f32 %v10059_v3, %v4904_v29  ;;  %v4905_v0 = vmul.f32 %v6891_v31, %v10053_v62 }
 0x403   : > { %v5347_v30 = vadd.f32 %v5029_v25, %v4993_v18  ;;  %v6119_v36 = vrot.slane %v5345_v55, 9  ;;  %v6120_v44 = vrot.slane %v5346_v42, 9  ;;  %v5046_v24 = vcombine.high %v5044_v50, %v5044_v50 }
 0x404   : > { %v5349_v10 = vadd.f32 %v5045_v43, %v5003_v47  ;;  %v5350_v15 = vadd.f32 %v5044_v50, %v5011_v13  ;;  %v6122_v38 = vrot.slane %v5348_v19, 9  ;;  %v4947_v37 = vmax.f32 %v4929_v6, 0.0  ;;  %v4828_v52 = vpop.f32.mrb[48].mxu1 }
 0x405   : > { %v6121_v5 = vrot.slane %v5347_v30, 9  ;;  %v5505_v34 = vadd.f32 %v6119_v36, %v5345_v55  ;;  %v5506_v20 = vadd.f32 %v6120_v44, %v5346_v42  ;;  %v5351_v63 = vadd.f32 %v5046_v24, %v5010_v33  ;;  %v6834_v23 = vpop.f32.mrb[49].mxu1 }
 0x406   : > { %v6123_v22 = vrot.slane %v5349_v10, 9  ;;  %v6124_v60 = vrot.slane %v5350_v15, 9  ;;  %v5508_v39 = vadd.f32 %v6122_v38, %v5348_v19  ;;  %v4831_v1 = vpop.f32.mrb[50].mxu1  ;;  %v5054_v11 = vrot.slane %v4947_v37, %v10066_v8 }
 0x407   : > { %v5507_v14 = vadd.f32 %v6121_v5, %v5347_v30  ;;  %v6212_v58 = vpack.c.bf16 %v5505_v34, %v5505_v34  ;;  %v6213_v18 = vpack.c.bf16 %v5506_v20, %v5506_v20  ;;  %v6125_v9 = vrot.slane %v5351_v63, 9  ;;  %v6835_v28 = vpop.f32.mrb[51].mxu1 }
 0x408   : > { %v5509_v12 = vadd.f32 %v6123_v22, %v5349_v10  ;;  %v5510_v56 = vadd.f32 %v6124_v60, %v5350_v15  ;;  %v6215_v16 = vpack.c.bf16 %v5508_v39, %v5508_v39  ;;  %v5352_v31 = vadd.f32 %v5054_v11, %v5012_v51 }
 0x409   : > { %v6214_v45 = vpack.c.bf16 %v5507_v14, %v5507_v14  ;;  %v5666_v47 = vunpack.c.l.b16 %v6213_v18  ;;  %v5511_v49 = vadd.f32 %v6125_v9, %v5351_v63  ;;  %v5665_v40 = vunpack.c.l.b16 %v6212_v58 }
 0x40a   : > { %v6216_v59 = vpack.c.bf16 %v5509_v12, %v5509_v12  ;;  %v6217_v26 = vpack.c.bf16 %v5510_v56, %v5510_v56  ;;  %v5668_v27 = vunpack.c.l.b16 %v6215_v16  ;;  %v5047_v42 = vcombine.high %v4947_v37, %v4947_v37 }
 0x40b   : > { %v5667_v35 = vunpack.c.l.b16 %v6214_v45  ;;  %v5697_v46 = vrot.slane %v5666_v47, 7  ;;  %v6218_v29 = vpack.c.bf16 %v5511_v49, %v5511_v49  ;;  %v4930_v50 = vadd.f32 %v10059_v3, %v4905_v0 }
 0x40c   : > { %v5669_v25 = vunpack.c.l.b16 %v6216_v59  ;;  %v5670_v55 = vunpack.c.l.b16 %v6217_v26  ;;  %v4836_v13 = vpop.f32.mrb[52].mxu1  ;;  %v6126_v30 = vrot.slane %v5352_v31, 9  ;;  %v5703_v36 = vrot.slane %v5668_v27, 5 }
 0x40d   : > { %v5699_v43 = vsel %vm5698_vm0, %v5697_v46, %v5665_v40  ;;  %v5700_v19 = vrot.slane %v5667_v35, 6  ;;  %v5671_v6 = vunpack.c.l.b16 %v6218_v29  ;;  %v6838_v33 = vpop.f32.mrb[53].mxu1  ;;  %v4948_v44 = vmax.f32 %v4930_v50, 0.0 }
 0x40e   : > { %v6894_v24 = vadd.f32 %v10011_v57, %v4828_v52  ;;  %v4839_v10 = vpop.f32.mrb[54].mxu1  ;;  %v5706_v38 = vrot.slane %v5669_v25, 4  ;;  %v5512_v37 = vadd.f32 %v6126_v30, %v5352_v31  ;;  %v6897_v5 = vadd.f32 %v10014_v53, %v4831_v1 }
 0x40f   : > { %v5702_v15 = vsel %vm2499_vm10, %v5700_v19, %v5699_v43  ;;  %v6839_v34 = vpop.f32.mrb[55].mxu1  ;;  %v5709_v63 = vrot.slane %v5670_v55, 3  ;;  %v5061_v23 = vrot.slane %v5047_v42, %v10066_v8  ;;  %v5712_v39 = vrot.slane %v5671_v6, 2 }
 0x410   : > { %v5705_v20 = vsel %vm5704_vm15, %v5703_v36, %v5702_v15  ;;  %v4906_v22 = vmul.f32 %v6894_v24, %v10053_v62  ;;  %v6219_v57 = vpack.c.bf16 %v5512_v37, %v5512_v37  ;;  %v4907_v52 = vmul.f32 %v6897_v5, %v10053_v62 }
 0x411   : > { %v5708_v60 = vsel %vm5707_vm13, %v5706_v38, %v5705_v20  ;;  %v5063_v53 = vcombine.high %v4948_v44, %v4948_v44  ;;  %v6900_v9 = vadd.f32 %v10017_v54, %v4836_v13  ;;  %v5070_v28 = vrot.slane %v4948_v44, %v10066_v8 }
 0x412   : > { %v5711_v0 = vsel %vm5710_vm1, %v5709_v63, %v5708_v60  ;;  %v4931_v1 = vadd.f32 %v10059_v3, %v4906_v22  ;;  %v5672_v14 = vunpack.c.l.b16 %v6219_v57  ;;  %v4932_v18 = vadd.f32 %v10059_v3, %v4907_v52 }
 0x413   : > { %v5714_v58 = vsel %vm5713_vm4, %v5712_v39, %v5711_v0  ;;  %v5062_v56 = vcombine.high %v5061_v23, %v5061_v23  ;;  %v6903_v16 = vadd.f32 %v10020_v2, %v4839_v10  ;;  %v4908_v49 = vmul.f32 %v6900_v9, %v10053_v62 }
 0x414   : > { %v4949_v12 = vmax.f32 %v4931_v1, 0.0  ;;  %v4844_v11 = vpop.f32.mrb[56].mxu1  ;;  %v5715_v45 = vrot.slane %v5672_v14, 1  ;;  %v4950_v47 = vmax.f32 %v4932_v18, 0.0  ;;  %v5077_v59 = vrot.slane %v5063_v53, %v10066_v8 }
 0x415   : > { %v10109_v51 = vadd.f32 %v10023_v17, %v4844_v11  ;;  %v6842_v40 = vpop.f32.mrb[57].mxu1  ;;  %v4909_v27 = vmul.f32 %v6903_v16, %v10053_v62  ;;  %v4933_v31 = vadd.f32 %v10059_v3, %v4908_v49  ;;  %v5078_v17 = vcombine.high %v5070_v28, %v5070_v28 }
 0x416   : > { %v5080_v54 = vcombine.high %v4949_v12, %v4949_v12  ;;  %v5087_v26 = vrot.slane %v4949_v12, %v10066_v8  ;;  %v4847_v35 = vpop.f32.mrb[58].mxu1  ;;  %v5717_v46 = vsel %vm5716_vm5, %v5715_v45, %v5714_v58  ;;  %v5097_v2 = vcombine.high %v4950_v47, %v4950_v47 }
 0x417   : > { %v5104_v29 = vrot.slane %v4950_v47, %v10066_v8  ;;  %v6843_v25 = vpop.f32.mrb[59].mxu1  ;;  %v5760_v55 = vpack.c.b16 %v5717_v46, %v5717_v46  ;;  %v4934_v50 = vadd.f32 %v10059_v3, %v4909_v27  ;;  %v4951_v6 = vmax.f32 %v4933_v31, 0.0 }
 0x418   : > { %v5094_v42 = vrot.slane %v5080_v54, %v10066_v8  ;;  %v5111_v13 = vrot.slane %v5097_v2, %v10066_v8  ;;  %v5095_v30 = vcombine.high %v5087_v26, %v5087_v26  ;;  %v5079_v36 = vcombine.high %v5077_v59, %v5077_v59 }
 0x419   : > { %v5112_v43 = vcombine.high %v5104_v29, %v5104_v29  ;;  %v5354_v19 = vadd.f32 %v5104_v29, %v5062_v56  ;;  %5768 = vst [vmem:[%s10120_s17] sm:$0xf] %v5760_v55  ;;  %v10124_v44 = vadd.f32 %v10026_v61, %v4847_v35  ;;  %v5114_v5 = vcombine.high %v4951_v6, %v4951_v6 }
 0x41a   : > { %v5096_v33 = vcombine.high %v5094_v42, %v5094_v42  ;;  %v5113_v24 = vcombine.high %v5111_v13, %v5111_v13  ;;  %v5356_v15 = vadd.f32 %v5111_v13, %v5078_v17  ;;  %v5121_v34 = vrot.slane %v4951_v6, %v10066_v8 }
 0x41b   : > { %v5355_v10 = vadd.f32 %v5112_v43, %v5070_v28  ;;  %v6128_v38 = vrot.slane %v5354_v19, 9  ;;  %v10127_v20 = vmax.f32 %v4934_v50, 0.0  ;;  %v5128_v61 = vrot.slane %v5114_v5, %v10066_v8 }
 0x41c   : > { %v5353_v37 = vadd.f32 %v5096_v33, %v5061_v23  ;;  %v4852_v63 = vpop.f32.mrb[60].mxu1  ;;  %v5357_v22 = vadd.f32 %v5113_v24, %v5077_v59  ;;  %v6130_v39 = vrot.slane %v5356_v15, 9  ;;  %v5129_v53 = vcombine.high %v5121_v34, %v5121_v34 }
 0x41d   : > { %v6129_v60 = vrot.slane %v5355_v10, 9  ;;  %v5514_v57 = vadd.f32 %v6128_v38, %v5354_v19  ;;  %v6846_v52 = vpop.f32.mrb[61].mxu1  ;;  %v5358_v1 = vadd.f32 %v5121_v34, %v5079_v36  ;;  %v5360_v16 = vadd.f32 %v5128_v61, %v5095_v30 }
 0x41e   : > { %v6127_v0 = vrot.slane %v5353_v37, 9  ;;  %v4855_v14 = vpop.f32.mrb[62].mxu1  ;;  %v6131_v58 = vrot.slane %v5357_v22, 9  ;;  %v5516_v23 = vadd.f32 %v6130_v39, %v5356_v15  ;;  %v5359_v56 = vadd.f32 %v5129_v53, %v5087_v26 }
 0x41f   : > { %v5515_v18 = vadd.f32 %v6129_v60, %v5355_v10  ;;  %v6221_v9 = vpack.c.bf16 %v5514_v57, %v5514_v57  ;;  %v6847_v28 = vpop.f32.mrb[63].mxu1  ;;  %v6132_v11 = vrot.slane %v5358_v1, 9  ;;  %v6134_v27 = vrot.slane %v5360_v16, 9 }
 0x420   : > { %v5513_v12 = vadd.f32 %v6127_v0, %v5353_v37  ;;  %v5517_v45 = vadd.f32 %v6131_v58, %v5357_v22  ;;  %v6223_v49 = vpack.c.bf16 %v5516_v23, %v5516_v23  ;;  %v6133_v54 = vrot.slane %v5359_v56, 9 }
 0x421   : > { %v6222_v47 = vpack.c.bf16 %v5515_v18, %v5515_v18  ;;  %v5674_v40 = vunpack.c.l.b16 %v6221_v9  ;;  %v5518_v35 = vadd.f32 %v6132_v11, %v5358_v1  ;;  %v5520_v17 = vadd.f32 %v6134_v27, %v5360_v16 }
 0x422   : > { %v6220_v59 = vpack.c.bf16 %v5513_v12, %v5513_v12  ;;  %v6224_v46 = vpack.c.bf16 %v5517_v45, %v5517_v45  ;;  %v5676_v29 = vunpack.c.l.b16 %v6223_v49  ;;  %v5519_v55 = vadd.f32 %v6133_v54, %v5359_v56 }
 0x423   : > { %v5675_v2 = vunpack.c.l.b16 %v6222_v47  ;;  %v5718_v31 = vrot.slane %v5674_v40, 7  ;;  %v6225_v42 = vpack.c.bf16 %v5518_v35, %v5518_v35  ;;  %v4910_v19 = vmul.f32 %v10109_v51, %v10053_v62 }
 0x424   : > { %v5673_v25 = vunpack.c.l.b16 %v6220_v59  ;;  %v4860_v50 = vpop.f32.mrb[64].mxu1  ;;  %v5677_v26 = vunpack.c.l.b16 %v6224_v46  ;;  %v5722_v43 = vrot.slane %v5676_v29, 5  ;;  %v6226_v33 = vpack.c.bf16 %v5519_v55, %v5519_v55 }
 0x425   : > { %v5720_v13 = vrot.slane %v5675_v2, 6  ;;  %v6850_v6 = vpop.f32.mrb[65].mxu1  ;;  %v6227_v36 = vpack.c.bf16 %v5520_v17, %v5520_v17  ;;  %v5678_v24 = vunpack.c.l.b16 %v6225_v42  ;;  %v5130_v37 = vcombine.high %v10127_v20, %v10127_v20 }
 0x426   : > { %v5719_v30 = vsel %vm5698_vm0, %v5718_v31, %v5673_v25  ;;  %v4863_v10 = vpop.f32.mrb[66].mxu1  ;;  %v5724_v38 = vrot.slane %v5677_v26, 4  ;;  %v5679_v22 = vunpack.c.l.b16 %v6226_v33  ;;  %v4935_v57 = vadd.f32 %v10059_v3, %v4910_v19 }
 0x427   : > { %v5721_v15 = vsel %vm2499_vm10, %v5720_v13, %v5719_v30  ;;  %v6851_v5 = vpop.f32.mrb[67].mxu1  ;;  %v5680_v60 = vunpack.c.l.b16 %v6227_v36  ;;  %v5726_v39 = vrot.slane %v5678_v24, 3  ;;  %v4911_v52 = vmul.f32 %v10124_v44, %v10053_v62 }
 0x428   : > { %v5723_v34 = vsel %vm5704_vm15, %v5722_v43, %v5721_v15  ;;  %v6912_v0 = vadd.f32 %v10029_v4, %v4852_v63  ;;  %v5728_v53 = vrot.slane %v5679_v22, 2  ;;  %v5137_v58 = vrot.slane %v10127_v20, %v10066_v8 }
 0x429   : > { %v5725_v51 = vsel %vm5707_vm13, %v5724_v38, %v5723_v34  ;;  %v5730_v1 = vrot.slane %v5680_v60, 1  ;;  %v4953_v18 = vmax.f32 %v4935_v57, 0.0  ;;  %v4936_v23 = vadd.f32 %v10059_v3, %v4911_v52 }
 0x42a   : > { %v5727_v61 = vsel %vm5710_vm1, %v5726_v39, %v5725_v51  ;;  %v4912_v9 = vmul.f32 %v6912_v0, %v10053_v62  ;;  %v6915_v28 = vadd.f32 %v10032_v32, %v4855_v14  ;;  %v5144_v44 = vrot.slane %v5130_v37, %v10066_v8 }
 0x42b   : > { %v5729_v12 = vsel %vm5713_vm4, %v5728_v53, %v5727_v61  ;;  %v6918_v4 = vadd.f32 %v10035_v41, %v4860_v50  ;;  %v6921_v63 = vadd.f32 %v10038_v48, %v4863_v10  ;;  %v5147_v20 = vcombine.high %v4953_v18, %v4953_v18 }
 0x42c   : > { %v4868_v56 = vpop.f32.mrb[68].mxu1  ;;  %v5731_v16 = vsel %vm5716_vm5, %v5730_v1, %v5729_v12  ;;  %v5154_v11 = vrot.slane %v4953_v18, %v10066_v8  ;;  %v4954_v45 = vmax.f32 %v4936_v23, 0.0  ;;  %v4937_v32 = vadd.f32 %v10059_v3, %v4912_v9 }
 0x42d   : > { %v6854_v47 = vpop.f32.mrb[69].mxu1  ;;  %v5761_v49 = vpack.c.b16 %v5731_v16, %v5731_v16  ;;  %v4913_v14 = vmul.f32 %v6915_v28, %v10053_v62  ;;  %v4914_v40 = vmul.f32 %v6918_v4, %v10053_v62  ;;  %v5145_v41 = vcombine.high %v5137_v58, %v5137_v58 }
 0x42e   : > { %v10157_v59 = vpop.f32.mrb[70].mxu1  ;;  %v5164_v48 = vcombine.high %v4954_v45, %v4954_v45  ;;  %v5171_v54 = vrot.slane %v4954_v45, %v10066_v8  ;;  %v5161_v35 = vrot.slane %v5147_v20, %v10066_v8  ;;  %v4955_v46 = vmax.f32 %v4937_v32, 0.0 }
 0x42f   : > { %v6855_v27 = vpop.f32.mrb[71].mxu1  ;;  %5769 = vst [vmem:[%s10120_s17 + $0x4] sm:$0xf] %v5761_v49  ;;  %v5146_v2 = vcombine.high %v5144_v44, %v5144_v44  ;;  %v4938_v29 = vadd.f32 %v10059_v3, %v4913_v14  ;;  %v5162_v31 = vcombine.high %v5154_v11, %v5154_v11  ;;  %v10165_v17 = vadd.f32 %v10041_v21, %v4868_v56 }
 0x430   : > { %v5178_v25 = vrot.slane %v5164_v48, %v10066_v8  ;;  %v5179_v55 = vcombine.high %v5171_v54, %v5171_v54  ;;  %v5181_v42 = vcombine.high %v4955_v46, %v4955_v46  ;;  %v5188_v50 = vrot.slane %v4955_v46, %v10066_v8 }
 0x431   : > { %v10168_v26 = vmax.f32 %v4938_v29, 0.0  ;;  %v4939_v13 = vadd.f32 %v10059_v3, %v4914_v40  ;;  %v4915_v30 = vmul.f32 %v6921_v63, %v10053_v62  ;;  %v5163_v10 = vcombine.high %v5161_v35, %v5161_v35 }
 0x432   : > { %v5180_v43 = vcombine.high %v5178_v25, %v5178_v25  ;;  %v5361_v19 = vadd.f32 %v5179_v55, %v5137_v58  ;;  %v5362_v6 = vadd.f32 %v5178_v25, %v5145_v41  ;;  %v5195_v33 = vrot.slane %v5181_v42, %v10066_v8 }
 0x433   : > { %v5196_v36 = vcombine.high %v5188_v50, %v5188_v50  ;;  %v5364_v24 = vadd.f32 %v5188_v50, %v5146_v2  ;;  %v5205_v37 = vrot.slane %v10168_v26, %v10066_v8  ;;  %v4957_v52 = vmax.f32 %v4939_v13, 0.0 }
 0x434   : > { %v5363_v15 = vadd.f32 %v5180_v43, %v5144_v44  ;;  %v6135_v21 = vrot.slane %v5361_v19, 9  ;;  %v6136_v38 = vrot.slane %v5362_v6, 9  ;;  %v5197_v5 = vcombine.high %v5195_v33, %v5195_v33 }
 0x435   : > { %v5365_v34 = vadd.f32 %v5196_v36, %v5154_v11  ;;  %v5366_v22 = vadd.f32 %v5195_v33, %v5162_v31  ;;  %v6138_v60 = vrot.slane %v5364_v24, 9  ;;  %v5368_v9 = vadd.f32 %v5205_v37, %v5163_v10 }
 0x436   : > { %v6137_v39 = vrot.slane %v5363_v15, 9  ;;  %v5521_v51 = vadd.f32 %v6135_v21, %v5361_v19  ;;  %v5522_v57 = vadd.f32 %v6136_v38, %v5362_v6  ;;  %v5367_v0 = vadd.f32 %v5197_v5, %v5161_v35 }
 0x437   : > { %v6139_v61 = vrot.slane %v5365_v34, 9  ;;  %v6140_v53 = vrot.slane %v5366_v22, 9  ;;  %v5524_v1 = vadd.f32 %v6138_v60, %v5364_v24  ;;  %v6142_v16 = vrot.slane %v5368_v9, 9 }
 0x438   : > { %v5523_v58 = vadd.f32 %v6137_v39, %v5363_v15  ;;  %v6228_v18 = vpack.c.bf16 %v5521_v51, %v5521_v51  ;;  %v6229_v23 = vpack.c.bf16 %v5522_v57, %v5522_v57  ;;  %v6141_v28 = vrot.slane %v5367_v0, 9 }
 0x439   : > { %v5525_v12 = vadd.f32 %v6139_v61, %v5365_v34  ;;  %v5526_v44 = vadd.f32 %v6140_v53, %v5366_v22  ;;  %v6231_v4 = vpack.c.bf16 %v5524_v1, %v5524_v1  ;;  %v4940_v20 = vadd.f32 %v10059_v3, %v4915_v30 }
 0x43a   : > { %v6230_v63 = vpack.c.bf16 %v5523_v58, %v5523_v58  ;;  %v5682_v56 = vunpack.c.l.b16 %v6229_v23  ;;  %v5527_v11 = vadd.f32 %v6141_v28, %v5367_v0  ;;  %v5681_v32 = vunpack.c.l.b16 %v6228_v18 }
 0x43b   : > { %v6232_v45 = vpack.c.bf16 %v5525_v12, %v5525_v12  ;;  %v6233_v47 = vpack.c.bf16 %v5526_v44, %v5526_v44  ;;  %v5684_v49 = vunpack.c.l.b16 %v6231_v4  ;;  %v5528_v41 = vadd.f32 %v6142_v16, %v5368_v9 }
 0x43c   : > { %v5683_v14 = vunpack.c.l.b16 %v6230_v63  ;;  %v5732_v40 = vrot.slane %v5682_v56, 7  ;;  %v6234_v48 = vpack.c.bf16 %v5527_v11, %v5527_v11  ;;  %v5198_v29 = vcombine.high %v10168_v26, %v10168_v26 }
 0x43d   : > { %v5685_v54 = vunpack.c.l.b16 %v6232_v45  ;;  %v5686_v27 = vunpack.c.l.b16 %v6233_v47  ;;  %v5736_v35 = vrot.slane %v5684_v49, 5  ;;  %v6235_v31 = vpack.c.bf16 %v5528_v41, %v5528_v41 }
 0x43e   : > { %v5733_v46 = vsel %vm5698_vm0, %v5732_v40, %v5681_v32  ;;  %v5734_v2 = vrot.slane %v5683_v14, 6  ;;  %v5687_v25 = vunpack.c.l.b16 %v6234_v48  ;;  %v4958_v43 = vmax.f32 %v4940_v20, 0.0 }
 0x43f   : > { %v5738_v55 = vrot.slane %v5685_v54, 4  ;;  %v5740_v42 = vrot.slane %v5686_v27, 3  ;;  %v5688_v13 = vunpack.c.l.b16 %v6235_v31  ;;  %v4916_v30 = vmul.f32 %v10165_v17, %v10053_v62 }
 0x440   : > { %v5735_v50 = vsel %vm2499_vm10, %v5734_v2, %v5733_v46  ;;  %v5742_v6 = vrot.slane %v5687_v25, 2  ;;  %v5212_v36 = vrot.slane %v5198_v29, %v10066_v8  ;;  %v5214_v24 = vcombine.high %v4957_v52, %v4957_v52 }
 0x441   : > { %v5737_v19 = vsel %vm5704_vm15, %v5736_v35, %v5735_v50  ;;  %v5231_v26 = vcombine.high %v4958_v43, %v4958_v43  ;;  %v5744_v15 = vrot.slane %v5688_v13, 1  ;;  %v4941_v21 = vadd.f32 %v10059_v3, %v4916_v30 }
 0x442   : > { %v5739_v33 = vsel %vm5707_vm13, %v5738_v55, %v5737_v19  ;;  %v6927_v38 = vadd.f32 %v10044_v7, %v10157_v59  ;;  %v5221_v5 = vrot.slane %v4957_v52, %v10066_v8  ;;  %v5228_v51 = vrot.slane %v5214_v24, %v10066_v8 }
 0x443   : > { %v5741_v10 = vsel %vm5710_vm1, %v5740_v42, %v5739_v33  ;;  %v5245_v17 = vrot.slane %v5231_v26, %v10066_v8  ;;  %v4959_v22 = vmax.f32 %v4941_v21, 0.0  ;;  %v5213_v0 = vcombine.high %v5212_v36, %v5212_v36 }
 0x444   : > { %v5743_v37 = vsel %vm5713_vm4, %v5742_v6, %v5741_v10  ;;  %v4917_v60 = vmul.f32 %v6927_v38, %v10053_v62  ;;  %v5229_v59 = vcombine.high %v5221_v5, %v5221_v5  ;;  %v5238_v52 = vrot.slane %v4958_v43, %v10066_v8 }
 0x445   : > { %v5745_v34 = vsel %vm5716_vm5, %v5744_v15, %v5743_v37  ;;  %v5247_v57 = vcombine.high %v5245_v17, %v5245_v17  ;;  %v5248_v61 = vcombine.high %v4959_v22, %v4959_v22  ;;  %v5255_v53 = vrot.slane %v4959_v22, %v10066_v8 }
 0x446   : > { %v5762_v39 = vpack.c.b16 %v5745_v34, %v5745_v34  ;;  %v4942_v7 = vadd.f32 %v10059_v3, %v4917_v60  ;;  %v5230_v28 = vcombine.high %v5228_v51, %v5228_v51  ;;  %v5246_v56 = vcombine.high %v5238_v52, %v5238_v52 }
 0x447   : > { %v5369_v1 = vadd.f32 %v5247_v57, %v5212_v36  ;;  %v5262_v58 = vrot.slane %v5248_v61, %v10066_v8  ;;  %v5263_v18 = vcombine.high %v5255_v53, %v5255_v53  ;;  %v5370_v23 = vadd.f32 %v5255_v53, %v5213_v0 }
 0x448   : > { %5770 = vst [vmem:[%s10120_s17 + $0x8] sm:$0xf] %v5762_v39  ;;  %v4960_v62 = vmax.f32 %v4942_v7, 0.0 }
 0x449   : > { %v6143_v9 = vrot.slane %v5369_v1, 9  ;;  %v5264_v12 = vcombine.high %v5262_v58, %v5262_v58  ;;  %v5371_v44 = vadd.f32 %v5263_v18, %v5221_v5  ;;  %v5372_v4 = vadd.f32 %v5262_v58, %v5229_v59 }
 0x44a   : > { %v6144_v63 = vrot.slane %v5370_v23, 9  ;;  %v5265_v20 = vcombine.high %v4960_v62, %v4960_v62  ;;  %v5272_v3 = vrot.slane %v4960_v62, %v10066_v8 }
 0x44b   : > { %v5529_v16 = vadd.f32 %v6143_v9, %v5369_v1  ;;  %v5373_v11 = vadd.f32 %v5264_v12, %v5228_v51  ;;  %v6145_v45 = vrot.slane %v5371_v44, 9  ;;  %v6146_v47 = vrot.slane %v5372_v4, 9 }
 0x44c   : > { %v5530_v49 = vadd.f32 %v6144_v63, %v5370_v23  ;;  %v5279_v14 = vrot.slane %v5265_v20, %v10066_v8  ;;  %v5280_v40 = vcombine.high %v5272_v3, %v5272_v3  ;;  %v5374_v41 = vadd.f32 %v5272_v3, %v5230_v28 }
 0x44d   : > { %v6236_v32 = vpack.c.bf16 %v5529_v16, %v5529_v16  ;;  %v6147_v48 = vrot.slane %v5373_v11, 9  ;;  %v5531_v54 = vadd.f32 %v6145_v45, %v5371_v44  ;;  %v5532_v27 = vadd.f32 %v6146_v47, %v5372_v4 }
 0x44e   : > { %v6237_v35 = vpack.c.bf16 %v5530_v49, %v5530_v49  ;;  %v5375_v46 = vadd.f32 %v5280_v40, %v5238_v52  ;;  %v5376_v2 = vadd.f32 %v5279_v14, %v5246_v56  ;;  %v6148_v29 = vrot.slane %v5374_v41, 9 }
 0x44f   : > { %v5533_v31 = vadd.f32 %v6147_v48, %v5373_v11  ;;  %v6238_v25 = vpack.c.bf16 %v5531_v54, %v5531_v54  ;;  %v6239_v55 = vpack.c.bf16 %v5532_v27, %v5532_v27  ;;  %v5689_v50 = vunpack.c.l.b16 %v6236_v32 }
 0x450   : > { %v5690_v42 = vunpack.c.l.b16 %v6237_v35  ;;  %v6149_v13 = vrot.slane %v5375_v46, 9  ;;  %v6150_v43 = vrot.slane %v5376_v2, 9  ;;  %v5534_v19 = vadd.f32 %v6148_v29, %v5374_v41 }
 0x451   : > { %v6240_v8 = vpack.c.bf16 %v5533_v31, %v5533_v31  ;;  %v5691_v6 = vunpack.c.l.b16 %v6238_v25  ;;  %v5692_v30 = vunpack.c.l.b16 %v6239_v55 }
 0x452   : > { %v5746_v33 = vrot.slane %v5690_v42, 7  ;;  %v5535_v36 = vadd.f32 %v6149_v13, %v5375_v46  ;;  %v5536_v24 = vadd.f32 %v6150_v43, %v5376_v2  ;;  %v6241_v26 = vpack.c.bf16 %v5534_v19, %v5534_v19 }
 0x453   : > { %v5693_v10 = vunpack.c.l.b16 %v6240_v8  ;;  %v5748_v21 = vrot.slane %v5691_v6, 6  ;;  %v5750_v38 = vrot.slane %v5692_v30, 5 }
 0x454   : > { %v5747_v15 = vsel %vm5698_vm0, %v5746_v33, %v5689_v50  ;;  %v6242_v37 = vpack.c.bf16 %v5535_v36, %v5535_v36  ;;  %v6243_v5 = vpack.c.bf16 %v5536_v24, %v5536_v24  ;;  %v5694_v17 = vunpack.c.l.b16 %v6241_v26 }
 0x455   : > { %v5749_v34 = vsel %vm2499_vm10, %v5748_v21, %v5747_v15  ;;  %v5752_v22 = vrot.slane %v5693_v10, 4 }
 0x456   : > { %v5751_v60 = vsel %vm5704_vm15, %v5750_v38, %v5749_v34  ;;  %v5695_v39 = vunpack.c.l.b16 %v6242_v37  ;;  %v5696_v51 = vunpack.c.l.b16 %v6243_v5  ;;  %v5754_v57 = vrot.slane %v5694_v17, 3 }
 0x457   : > { %v5753_v0 = vsel %vm5707_vm13, %v5752_v22, %v5751_v60 }
 0x458   : > { %v5755_v61 = vsel %vm5710_vm1, %v5754_v57, %v5753_v0  ;;  %v5756_v53 = vrot.slane %v5695_v39, 2  ;;  %v5758_v7 = vrot.slane %v5696_v51, 1 }
 0x45a   : > { %v5757_v59 = vsel %vm5713_vm4, %v5756_v53, %v5755_v61 }
 0x45b   : > { %v5759_v52 = vsel %vm5716_vm5, %v5758_v7, %v5757_v59 }
 0x45c   : > { %v5763_v1 = vpack.c.b16 %v5759_v52, %v5759_v52 }
 0x45e   : > { %5771 = vst [vmem:[%s10120_s17 + $0xc] sm:$0xf] %v5763_v1 }
 0x45f   : > { %7376 = shalt.err (!%p7373_p11)
}
 0x460   : > { %s7377_s19 = scalar_lea.hbm %s10217_s11, 256  ;;  %s7381_s12 = scalar_lea.hbm %s10281_s7, 1024 }
 0x461   : > { %p7378_p13 = scmp.ne.s32.totalorder %s10217_s11, %s7377_s19  ;;  %p7382_p3 = scmp.lt.u32.totalorder %s10217_s11, %s10281_s7 }
 0x462   : > { %p7383_p8 = scmp.lt.u32.totalorder %s7381_s12, %s7377_s19  ;;  %p7385_p12 = scmp.lt.u32.totalorder %s7377_s19, %s10217_s11 }
 0x463   : > { %p7379_p1 = pnand %p7378_p13, %p10528_p0 }
 0x464   : > { %p7384_p10 = por %p7383_p8, %p7382_p3 }
 0x465   : > { %p7380_p4 = pneg %p7379_p1 }
 0x466   : > { %p7386_p2 = por %p7385_p12, %p7384_p10 }
 0x468   : > { %p7387_p5 = pnand %p7386_p2, %p7380_p4 }
 0x46a   : > { %7390 = shalt.err (!%p7387_p5)
}
 0x46b   : > { %s7473_s18 = smov 64   ;;  %s7474_s23 = smov 4  }
 0x46c   : > { %7096 = dma.vmem_to_hbm [thread:$0]  (%p10528_p0), %s10212_s27, 256, %s10217_s11, %s10222_s10, %s7473_s18, %s7473_s18, %s7474_s23  }
 0x46d PF: > { %p7108_p6 = scmp.ge.s32.totalorder %s7461_s8, 2  ;;  %s5803_s9 = sand.u32 1, %s7433_s24  }
 0x46e   : > { %p10529_p7 = scmp.ne.s32.totalorder %s10306_s16, 0  ;;  %s5804_s13 = scalar_lea.sflag [#allocation5], %s5803_s9 }
 0x470   : > { %p7103_p9 = pnand %p7108_p6, %p10529_p7 }
 0x472   : > { %7428 = dma.done.wait (!%p7103_p9), %s5804_s13, 256  }
 0x473   : > { %7430 = vsyncadd (!%p7103_p9), %s5804_s13, 4294967040  ;;  %s21_s8 = sadd.s32 1, %s7461_s8   ;;  %s10530_s15 = sld [smem:[#allocation9_spill]] }
 0x474   : > { %p18_p11 = scmp.ge.s32.totalorder %s21_s8, 6   ;;  %s10531_s11 = sld [smem:[#allocation10_spill]] }
 0x475   : > { %s10532_s24 = smov %s7437_s25  ;;  %s10533_s25 = smov %s7441_s26 }
 0x476   : > { %s10534_s26 = smov %s7594_s21  ;;  %s10535_s27 = smov %s7453_s29 }
 0x477   : > { %s10536_s28 = smov %s7457_s30  ;;  %20 = sbr.rel (!%p18_p11) target bundleno = 6 (0x6), region = 92 }
 0x479   : > { %s10537_s29 = smov %s10530_s15 }
 0x47a   : > { %s10538_s30 = smov %s10531_s11 }
 0x47e   :  { %5809 = vsyncpa [#allocation4], 1 }
 0x47f   :  { %5811 = vsyncpa [#allocation4 + $0x1], 1 }
 0x480   :  { %5812 = vsyncpa [#allocation5], 1 }
 0x481   :  { %5814 = vsyncpa [#allocation5 + $0x1], 1 }

</bundles_post_ra>
